<compile_context>
chip_gen: v7x
topology: tpu7x:2x2x1
jax: 0.10.0
libtpu: 0.0.40
codegen_flags: <defaults>
</compile_context>

<pallas_src>
import functools
import math

import jax
import jax.numpy as jnp
from jax.experimental import pallas as pl
from jax.experimental.pallas import tpu as pltpu


_COMPUTE_DTYPE = jnp.bfloat16          # MXU operand dtype; accumulation is f32
_LN_EPS = 1e-5


def _vmem_limit_bytes():
    # ~100 MiB on 128-MiB parts (v5e/v6e), ~51 MiB on 64-MiB parts (v7x).
    try:
        cap = int(pltpu.get_tpu_info().vmem_capacity_bytes)
        return min(int(cap * 0.8), 100 * 1024 * 1024)
    except Exception:
        return 64 * 1024 * 1024


_VMEM_LIMIT = _vmem_limit_bytes()


def _compiler_params(dim_sem):
    return pltpu.CompilerParams(dimension_semantics=dim_sem,
                                vmem_limit_bytes=_VMEM_LIMIT)


def _layernorm_f32(y, gamma, beta, eps):
    mean = jnp.mean(y, axis=-1, keepdims=True)
    yc = y - mean
    var = jnp.mean(yc * yc, axis=-1, keepdims=True)
    inv = jax.lax.rsqrt(var + eps)
    return (yc * inv) * gamma + beta


# ---------------------------------------------------------------------------
# Fused kernels
# ---------------------------------------------------------------------------

def _attn_block_kernel(xq_ref, xkv_ref, wq_ref, bq_ref, wkv_ref, bkv_ref,
                       wo_ref, bo_ref, g_ref, b_ref, o_ref, attn_sc, *,
                       n_heads, causal, eps):
    """One (batch, query-tile) step: LN(xq + proj(MHA(xq, xkv, xkv)))."""
    cd = _COMPUTE_DTYPE
    xq = xq_ref[0]                       # [tq, D] f32 (also the residual)
    xkv = xkv_ref[0]                     # [S, D]  f32
    tq, D = xq.shape
    S = xkv.shape[0]
    E = D // n_heads
    scale = 1.0 / math.sqrt(E)

    # fused Q and (K|V) projections: bf16 weights already resident, f32 accum
    q = jnp.dot(xq.astype(cd), wq_ref[...],
                preferred_element_type=jnp.float32) + bq_ref[...]
    kv = jnp.dot(xkv.astype(cd), wkv_ref[...],
                 preferred_element_type=jnp.float32) + bkv_ref[...]
    q_cd = q.astype(cd)                          # [tq, D]
    kT_cd = kv[:, :D].astype(cd).T               # [D, S]  single bulk transpose
    v_cd = kv[:, D:].astype(cd)                  # [S, D]

    if causal:
        q0 = pl.program_id(1) * tq
        row = jax.lax.broadcasted_iota(jnp.int32, (tq, S), 0) + q0
        col = jax.lax.broadcasted_iota(jnp.int32, (tq, S), 1)
        neg = jnp.where(col > row, jnp.float32(-1e9), jnp.float32(0.0))

    # each head's PV result goes straight into the VMEM slab (no concat)
    for h in range(n_heads):
        sl = slice(h * E, (h + 1) * E)
        s = jnp.dot(q_cd[:, sl], kT_cd[sl, :],
                    preferred_element_type=jnp.float32) * scale
        if causal:
            s = s + neg
        m = jnp.max(s, axis=-1, keepdims=True)
        p = jnp.exp(s - m)
        p = p / jnp.sum(p, axis=-1, keepdims=True)     # exact divide (parity)
        attn_sc[:, sl] = jnp.dot(p.astype(cd), v_cd[:, sl],
                                 preferred_element_type=jnp.float32)

    # fused output projection + residual add + LayerNorm epilogue
    proj = jnp.dot(attn_sc[...].astype(cd), wo_ref[...],
                   preferred_element_type=jnp.float32) + bo_ref[...]
    y = proj + xq
    o_ref[0] = _layernorm_f32(y, g_ref[...], b_ref[...], eps).astype(o_ref.dtype)


def _ffn_block_kernel(x_ref, w1_ref, b1_ref, w2_ref, b2_ref, g_ref, b_ref,
                      o_ref, *, activation, eps):
    """LN(x + linear2(act(linear1(x)))) for one row tile."""
    cd = _COMPUTE_DTYPE
    x = x_ref[...]                                  # [tm, D] f32 (residual)
    h = jnp.dot(x.astype(cd), w1_ref[...],
                preferred_element_type=jnp.float32) + b1_ref[...]
    if activation == "relu":
        h = jnp.maximum(h, 0.0)
    else:
        h = jax.nn.gelu(h, approximate=True)
    y = jnp.dot(h.astype(cd), w2_ref[...],
                preferred_element_type=jnp.float32) + b2_ref[...]
    y = y + x
    o_ref[...] = _layernorm_f32(y, g_ref[...], b_ref[...], eps).astype(o_ref.dtype)


def _ln_proj_kernel(x_ref, g_ref, b_ref, w_ref, bias_ref, o_ref, xn_sc, *, eps):
    """Final LayerNorm computed once per row tile, reused across vocab tiles."""
    @pl.when(pl.program_id(1) == 0)
    def _():
        xn_sc[...] = _layernorm_f32(x_ref[...], g_ref[...], b_ref[...],
                                    eps).astype(xn_sc.dtype)
    y = jnp.dot(xn_sc[...], w_ref[...],
                preferred_element_type=jnp.float32) + bias_ref[...]
    o_ref[...] = y.astype(o_ref.dtype)


# ---------------------------------------------------------------------------
# Pallas wrappers
# ---------------------------------------------------------------------------

def _row_tile(m):
    return m if m <= 512 else 512


def attention_block(xq, xkv, wq, bq, wkv, bkv, wo, bo, ln_g, ln_b, *,
                    n_heads, causal, eps=_LN_EPS):
    B, L, D = xq.shape
    S = xkv.shape[1]
    tq = min(L, 128)
    cd = _COMPUTE_DTYPE

    def wconst(shape):  # never re-fetched across the grid -> single buffer
        return pl.BlockSpec(shape, lambda b, q: (0, 0),
                            pipeline_mode=pl.Buffered(1))

    kern = functools.partial(_attn_block_kernel, n_heads=n_heads,
                             causal=causal, eps=eps)
    return pl.pallas_call(
        kern,
        out_shape=jax.ShapeDtypeStruct((B, L, D), jnp.float32),
        grid=(B, pl.cdiv(L, tq)),
        in_specs=[
            pl.BlockSpec((1, tq, D), lambda b, q: (b, q, 0)),
            pl.BlockSpec((1, S, D), lambda b, q: (b, 0, 0)),
            wconst((D, D)),        # wq (bf16)
            wconst((1, D)),        # bq
            wconst((D, 2 * D)),    # wkv (bf16)
            wconst((1, 2 * D)),    # bkv
            wconst((D, D)),        # wo (bf16)
            wconst((1, D)),        # bo
            wconst((1, D)),        # ln gamma
            wconst((1, D)),        # ln beta
        ],
        out_specs=pl.BlockSpec((1, tq, D), lambda b, q: (b, q, 0)),
        scratch_shapes=[pltpu.VMEM((tq, D), jnp.float32)],
        compiler_params=_compiler_params(("parallel", "parallel")),
    )(xq, xkv, wq.astype(cd), bq.reshape(1, D), wkv.astype(cd),
      bkv.reshape(1, 2 * D), wo.astype(cd), bo.reshape(1, D),
      ln_g.reshape(1, D), ln_b.reshape(1, D))


def ffn_block(x, w1, b1, w2, b2, ln_g, ln_b, *, activation="relu", eps=_LN_EPS):
    # TODO(synk): for very large d_ff on v7x, add an "arbitrary" reduction grid
    # axis over F with an f32 accumulator instead of fully-resident w1/w2.
    B, L, D = x.shape
    M = B * L
    F = w1.shape[1]
    tm = _row_tile(M)
    cd = _COMPUTE_DTYPE

    def wconst(shape):
        return pl.BlockSpec(shape, lambda i: (0, 0),
                            pipeline_mode=pl.Buffered(1))

    out = pl.pallas_call(
        functools.partial(_ffn_block_kernel, activation=activation, eps=eps),
        out_shape=jax.ShapeDtypeStruct((M, D), jnp.float32),
        grid=(pl.cdiv(M, tm),),
        in_specs=[
            pl.BlockSpec((tm, D), lambda i: (i, 0)),
            wconst((D, F)),        # w1 (bf16)
            wconst((1, F)),        # b1
            wconst((F, D)),        # w2 (bf16)
            wconst((1, D)),        # b2
            wconst((1, D)),        # ln gamma
            wconst((1, D)),        # ln beta
        ],
        out_specs=pl.BlockSpec((tm, D), lambda i: (i, 0)),
        compiler_params=_compiler_params(("parallel",)),
    )(x.reshape(M, D), w1.astype(cd), b1.reshape(1, F), w2.astype(cd),
      b2.reshape(1, D), ln_g.reshape(1, D), ln_b.reshape(1, D))
    return out.reshape(B, L, D)


def final_norm_project(x, g, b, w, bias, *, eps=_LN_EPS):
    B, L, D = x.shape
    M = B * L
    V = w.shape[1]
    tm = _row_tile(M)
    tv = V if V <= 2048 else 512       # 512 = multiple of 256 (v6e/v7x MXU)
    cd = _COMPUTE_DTYPE
    out = pl.pallas_call(
        functools.partial(_ln_proj_kernel, eps=eps),
        out_shape=jax.ShapeDtypeStruct((M, V), jnp.float32),
        grid=(pl.cdiv(M, tm), pl.cdiv(V, tv)),
        in_specs=[
            pl.BlockSpec((tm, D), lambda i, j: (i, 0)),   # x resident across vocab tiles
            pl.BlockSpec((1, D), lambda i, j: (0, 0),
                         pipeline_mode=pl.Buffered(1)),
            pl.BlockSpec((1, D), lambda i, j: (0, 0),
                         pipeline_mode=pl.Buffered(1)),
            pl.BlockSpec((D, tv), lambda i, j: (0, j)),
            pl.BlockSpec((1, tv), lambda i, j: (0, j)),
        ],
        out_specs=pl.BlockSpec((tm, tv), lambda i, j: (i, j)),
        scratch_shapes=[pltpu.VMEM((tm, D), cd)],
        # vocab axis "arbitrary": the LN scratch written at j==0 is reused across j
        compiler_params=_compiler_params(("parallel", "arbitrary")),
    )(x.reshape(M, D), g.reshape(1, D), b.reshape(1, D), w.astype(cd),
      bias.reshape(1, V))
    return out.reshape(B, L, V)


# ---------------------------------------------------------------------------
# Decoder forward (parameter plumbing only; no JAX-level transposes/masks)
# ---------------------------------------------------------------------------

def decoder_forward(dec_embeds, cross, params, n_heads, activation="relu"):
    # TODO(synk): padding_mask handling omitted (forward is called with padding_mask=None);
    # the causal self-attention mask is generated inside the attention kernel.
    x = dec_embeds
    for lp in params["layers"]:
        sa = lp["self_attn"]
        x = attention_block(x, x, sa["wq"], sa["bq"], sa["wkv"], sa["bkv"],
                            sa["wo"], sa["bo"], lp["ln1_g"], lp["ln1_b"],
                            n_heads=n_heads, causal=True)
        ca = lp["cross_attn"]
        x = attention_block(x, cross, ca["wq"], ca["bq"], ca["wkv"], ca["bkv"],
                            ca["wo"], ca["bo"], lp["ln2_g"], lp["ln2_b"],
                            n_heads=n_heads, causal=False)
        x = ffn_block(x, lp["w1"], lp["b1"], lp["w2"], lp["b2"],
                      lp["ln3_g"], lp["ln3_b"], activation=activation)
    return final_norm_project(x, params["norm_g"], params["norm_b"],
                              params["proj_w"], params["proj_b"])


# ---------------------------------------------------------------------------
# Deterministic parameter initialization
# ---------------------------------------------------------------------------

def _init_linear(key, d_in, d_out):
    kw, kb = jax.random.split(key)
    bound = 1.0 / math.sqrt(d_in)
    w = jax.random.uniform(kw, (d_in, d_out), jnp.float32, -bound, bound)
    b = jax.random.uniform(kb, (d_out,), jnp.float32, -bound, bound)
    return w, b


def _init_attn(key, d_model):
    ks = jax.random.split(key, 4)
    wq, bq = _init_linear(ks[0], d_model, d_model)
    wk, bk = _init_linear(ks[1], d_model, d_model)
    wv, bv = _init_linear(ks[2], d_model, d_model)
    wo, bo = _init_linear(ks[3], d_model, d_model)
    return dict(wq=wq, bq=bq,
                wkv=jnp.concatenate([wk, wv], axis=1),
                bkv=jnp.concatenate([bk, bv], axis=0),
                wo=wo, bo=bo)


def init_decoder_params(key, num_layers, d_model, d_ff, vocab_size):
    keys = jax.random.split(key, num_layers + 1)
    layers = []
    for i in range(num_layers):
        ks = jax.random.split(keys[i], 4)
        w1, b1 = _init_linear(ks[2], d_model, d_ff)
        w2, b2 = _init_linear(ks[3], d_ff, d_model)
        layers.append(dict(
            self_attn=_init_attn(ks[0], d_model),
            cross_attn=_init_attn(ks[1], d_model),
            w1=w1, b1=b1, w2=w2, b2=b2,
            ln1_g=jnp.ones((d_model,), jnp.float32), ln1_b=jnp.zeros((d_model,), jnp.float32),
            ln2_g=jnp.ones((d_model,), jnp.float32), ln2_b=jnp.zeros((d_model,), jnp.float32),
            ln3_g=jnp.ones((d_model,), jnp.float32), ln3_b=jnp.zeros((d_model,), jnp.float32),
        ))
    proj_w, proj_b = _init_linear(keys[-1], d_model, vocab_size)
    return dict(
        layers=layers,
        norm_g=jnp.ones((d_model,), jnp.float32),
        norm_b=jnp.zeros((d_model,), jnp.float32),
        proj_w=proj_w, proj_b=proj_b,
    )


# ---------------------------------------------------------------------------
# Main
# ---------------------------------------------------------------------------

if __name__ == "__main__":
    B, L_DEC, L_ENC = 2, 8, 12
    D_MODEL, N_HEADS, D_FF = 32, 4, 64
    N_LAYERS, VOCAB = 2, 16

    key = jax.random.PRNGKey(0)
    k_params, k_dec, k_enc = jax.random.split(key, 3)

    params = init_decoder_params(k_params, N_LAYERS, D_MODEL, D_FF, VOCAB)
    dec_embeds = jax.random.normal(k_dec, (B, L_DEC, D_MODEL), jnp.float32)
    cross = jax.random.normal(k_enc, (B, L_ENC, D_MODEL), jnp.float32)

    fwd = jax.jit(functools.partial(decoder_forward, n_heads=N_HEADS))
    out = fwd(dec_embeds, cross, params)
    jax.block_until_ready(out)

    assert out.shape == (B, L_DEC, VOCAB)
    assert bool(jnp.all(jnp.isfinite(out)))
    print("KERNEL_OK")
</pallas_src>

<mosaic_0001>
module attributes {stable_mosaic.version = 11 : i64} {
  func.func @_attn_block_kernel(%arg0: i32, %arg1: i32, %arg2: memref<1x8x32xf32, #tpu.memory_space<vmem>>, %arg3: memref<1x8x32xf32, #tpu.memory_space<vmem>>, %arg4: memref<32x32xbf16, #tpu.memory_space<vmem>>, %arg5: memref<1x32xf32, #tpu.memory_space<vmem>>, %arg6: memref<32x64xbf16, #tpu.memory_space<vmem>>, %arg7: memref<1x64xf32, #tpu.memory_space<vmem>>, %arg8: memref<32x32xbf16, #tpu.memory_space<vmem>>, %arg9: memref<1x32xf32, #tpu.memory_space<vmem>>, %arg10: memref<1x32xf32, #tpu.memory_space<vmem>>, %arg11: memref<1x32xf32, #tpu.memory_space<vmem>>, %arg12: memref<1x8x32xf32, #tpu.memory_space<vmem>>, %arg13: memref<8x32xf32, #tpu.memory_space<vmem>>) attributes {dimension_semantics = [#tpu.dimension_semantics<parallel>, #tpu.dimension_semantics<parallel>], iteration_bounds = array<i64: 2, 1>, scalar_prefetch = 0 : i64, scratch_operands = 1 : i64, tpu.core_type = #tpu.core_type<tc>, window_params = [{transform_indices = @transform_0, window_bounds = array<i64: 1, 8, 32>}, {transform_indices = @transform_1, window_bounds = array<i64: 1, 8, 32>}, {pipeline_mode = #tpu.pipeline_mode<synchronous>, transform_indices = @transform_2, window_bounds = array<i64: 32, 32>}, {pipeline_mode = #tpu.pipeline_mode<synchronous>, transform_indices = @transform_3, window_bounds = array<i64: 1, 32>}, {pipeline_mode = #tpu.pipeline_mode<synchronous>, transform_indices = @transform_4, window_bounds = array<i64: 32, 64>}, {pipeline_mode = #tpu.pipeline_mode<synchronous>, transform_indices = @transform_5, window_bounds = array<i64: 1, 64>}, {pipeline_mode = #tpu.pipeline_mode<synchronous>, transform_indices = @transform_6, window_bounds = array<i64: 32, 32>}, {pipeline_mode = #tpu.pipeline_mode<synchronous>, transform_indices = @transform_7, window_bounds = array<i64: 1, 32>}, {pipeline_mode = #tpu.pipeline_mode<synchronous>, transform_indices = @transform_8, window_bounds = array<i64: 1, 32>}, {pipeline_mode = #tpu.pipeline_mode<synchronous>, transform_indices = @transform_9, window_bounds = array<i64: 1, 32>}, {transform_indices = @transform_10, window_bounds = array<i64: 1, 8, 32>}]} {
    %c0 = arith.constant 0 : index
    %c0_0 = arith.constant 0 : index
    %c0_1 = arith.constant 0 : index
    %0 = vector.load %arg2[%c0, %c0_0, %c0_1] : memref<1x8x32xf32, #tpu.memory_space<vmem>>, vector<1x8x32xf32>
    %1 = vector.shape_cast %0 : vector<1x8x32xf32> to vector<8x32xf32>
    %c0_2 = arith.constant 0 : index
    %c0_3 = arith.constant 0 : index
    %c0_4 = arith.constant 0 : index
    %2 = vector.load %arg3[%c0_2, %c0_3, %c0_4] : memref<1x8x32xf32, #tpu.memory_space<vmem>>, vector<1x8x32xf32>
    %3 = vector.shape_cast %2 : vector<1x8x32xf32> to vector<8x32xf32>
    %4 = arith.truncf %1 : vector<8x32xf32> to vector<8x32xbf16>
    %c0_5 = arith.constant 0 : index
    %c0_6 = arith.constant 0 : index
    %5 = vector.load %arg4[%c0_5, %c0_6] : memref<32x32xbf16, #tpu.memory_space<vmem>>, vector<32x32xbf16>
    %cst = arith.constant dense<0.000000e+00> : vector<8x32xf32>
    %6 = tpu.matmul %4, %5, %cst {dimension_numbers = #tpu.dot_dimension_numbers<[1], [0], [0], [1], [0, 0, 1, 1], [], []>} : vector<8x32xbf16>, vector<32x32xbf16>, vector<8x32xf32> -> vector<8x32xf32>
    %c0_7 = arith.constant 0 : index
    %c0_8 = arith.constant 0 : index
    %7 = vector.load %arg5[%c0_7, %c0_8] : memref<1x32xf32, #tpu.memory_space<vmem>>, vector<1x32xf32>
    %8 = vector.broadcast %7 : vector<1x32xf32> to vector<8x32xf32>
    %9 = arith.addf %6, %8 : vector<8x32xf32>
    %10 = arith.truncf %3 : vector<8x32xf32> to vector<8x32xbf16>
    %c0_9 = arith.constant 0 : index
    %c0_10 = arith.constant 0 : index
    %11 = vector.load %arg6[%c0_9, %c0_10] : memref<32x64xbf16, #tpu.memory_space<vmem>>, vector<32x64xbf16>
    %cst_11 = arith.constant dense<0.000000e+00> : vector<8x64xf32>
    %12 = tpu.matmul %10, %11, %cst_11 {dimension_numbers = #tpu.dot_dimension_numbers<[1], [0], [0], [1], [0, 0, 1, 1], [], []>} : vector<8x32xbf16>, vector<32x64xbf16>, vector<8x64xf32> -> vector<8x64xf32>
    %c0_12 = arith.constant 0 : index
    %c0_13 = arith.constant 0 : index
    %13 = vector.load %arg7[%c0_12, %c0_13] : memref<1x64xf32, #tpu.memory_space<vmem>>, vector<1x64xf32>
    %14 = vector.broadcast %13 : vector<1x64xf32> to vector<8x64xf32>
    %15 = arith.addf %12, %14 : vector<8x64xf32>
    %16 = arith.truncf %9 : vector<8x32xf32> to vector<8x32xbf16>
    %17 = vector.extract_strided_slice %15 {offsets = [0, 0], sizes = [8, 32], strides = [1, 1]} : vector<8x64xf32> to vector<8x32xf32>
    %18 = arith.truncf %17 : vector<8x32xf32> to vector<8x32xbf16>
    %19 = tpu.transpose %18, [1, 0] : vector<8x32xbf16> -> vector<32x8xbf16>
    %20 = vector.extract_strided_slice %15 {offsets = [0, 32], sizes = [8, 32], strides = [1, 1]} : vector<8x64xf32> to vector<8x32xf32>
    %21 = arith.truncf %20 : vector<8x32xf32> to vector<8x32xbf16>
    %c8_i32 = arith.constant 8 : i32
    %22 = arith.muli %arg1, %c8_i32 : i32
    %23 = tpu.iota {dimensions = array<i32: 0>} : vector<8x8xi32>
    %24 = vector.broadcast %22 : i32 to vector<8x8xi32>
    %25 = arith.addi %23, %24 : vector<8x8xi32>
    %26 = tpu.iota {dimensions = array<i32: 1>} : vector<8x8xi32>
    %27 = arith.cmpi sgt, %26, %25 : vector<8x8xi32>
    %cst_14 = arith.constant -1.000000e+09 : f32
    %cst_15 = arith.constant 0.000000e+00 : f32
    %28 = vector.broadcast %cst_14 : f32 to vector<8x8xf32>
    %29 = vector.broadcast %cst_15 : f32 to vector<8x8xf32>
    %30 = arith.select %27, %28, %29 : vector<8x8xi1>, vector<8x8xf32>
    %31 = vector.extract_strided_slice %16 {offsets = [0, 0], sizes = [8, 8], strides = [1, 1]} : vector<8x32xbf16> to vector<8x8xbf16>
    %32 = vector.extract_strided_slice %19 {offsets = [0, 0], sizes = [8, 8], strides = [1, 1]} : vector<32x8xbf16> to vector<8x8xbf16>
    %cst_16 = arith.constant dense<0.000000e+00> : vector<8x8xf32>
    %33 = tpu.matmul %31, %32, %cst_16 {dimension_numbers = #tpu.dot_dimension_numbers<[1], [0], [0], [1], [0, 0, 1, 1], [], []>} : vector<8x8xbf16>, vector<8x8xbf16>, vector<8x8xf32> -> vector<8x8xf32>
    %cst_17 = arith.constant 0.353553385 : f32
    %34 = vector.broadcast %cst_17 : f32 to vector<8x8xf32>
    %35 = arith.mulf %33, %34 : vector<8x8xf32>
    %36 = arith.addf %35, %30 : vector<8x8xf32>
    %cst_18 = arith.constant dense<0xFF800000> : vector<8xf32>
    %37 = vector.multi_reduction <maximumf>, %36, %cst_18 [1] : vector<8x8xf32> to vector<8xf32>
    %38 = vector.shape_cast %37 : vector<8xf32> to vector<8x1xf32>
    %39 = vector.broadcast %38 : vector<8x1xf32> to vector<8x8xf32>
    %40 = arith.subf %36, %39 : vector<8x8xf32>
    %41 = math.exp %40 : vector<8x8xf32>
    %cst_19 = arith.constant dense<0.000000e+00> : vector<8xf32>
    %42 = vector.multi_reduction <add>, %41, %cst_19 [1] : vector<8x8xf32> to vector<8xf32>
    %43 = vector.shape_cast %42 : vector<8xf32> to vector<8x1xf32>
    %44 = vector.broadcast %43 : vector<8x1xf32> to vector<8x8xf32>
    %45 = arith.divf %41, %44 : vector<8x8xf32>
    %46 = arith.truncf %45 : vector<8x8xf32> to vector<8x8xbf16>
    %47 = vector.extract_strided_slice %21 {offsets = [0, 0], sizes = [8, 8], strides = [1, 1]} : vector<8x32xbf16> to vector<8x8xbf16>
    %cst_20 = arith.constant dense<0.000000e+00> : vector<8x8xf32>
    %48 = tpu.matmul %46, %47, %cst_20 {dimension_numbers = #tpu.dot_dimension_numbers<[1], [0], [0], [1], [0, 0, 1, 1], [], []>} : vector<8x8xbf16>, vector<8x8xbf16>, vector<8x8xf32> -> vector<8x8xf32>
    %c0_21 = arith.constant 0 : index
    %c0_22 = arith.constant 0 : index
    %49 = vector.load %arg13[%c0_21, %c0_22] : memref<8x32xf32, #tpu.memory_space<vmem>>, vector<8x8xf32>
    tpu.vector_store %arg13[%c0_21, %c0_22], %48 {strides = array<i32>} : memref<8x32xf32, #tpu.memory_space<vmem>>, vector<8x8xf32>,
    %50 = vector.extract_strided_slice %16 {offsets = [0, 8], sizes = [8, 8], strides = [1, 1]} : vector<8x32xbf16> to vector<8x8xbf16>
    %51 = vector.extract_strided_slice %19 {offsets = [8, 0], sizes = [8, 8], strides = [1, 1]} : vector<32x8xbf16> to vector<8x8xbf16>
    %cst_23 = arith.constant dense<0.000000e+00> : vector<8x8xf32>
    %52 = tpu.matmul %50, %51, %cst_23 {dimension_numbers = #tpu.dot_dimension_numbers<[1], [0], [0], [1], [0, 0, 1, 1], [], []>} : vector<8x8xbf16>, vector<8x8xbf16>, vector<8x8xf32> -> vector<8x8xf32>
    %cst_24 = arith.constant 0.353553385 : f32
    %53 = vector.broadcast %cst_24 : f32 to vector<8x8xf32>
    %54 = arith.mulf %52, %53 : vector<8x8xf32>
    %55 = arith.addf %54, %30 : vector<8x8xf32>
    %cst_25 = arith.constant dense<0xFF800000> : vector<8xf32>
    %56 = vector.multi_reduction <maximumf>, %55, %cst_25 [1] : vector<8x8xf32> to vector<8xf32>
    %57 = vector.shape_cast %56 : vector<8xf32> to vector<8x1xf32>
    %58 = vector.broadcast %57 : vector<8x1xf32> to vector<8x8xf32>
    %59 = arith.subf %55, %58 : vector<8x8xf32>
    %60 = math.exp %59 : vector<8x8xf32>
    %cst_26 = arith.constant dense<0.000000e+00> : vector<8xf32>
    %61 = vector.multi_reduction <add>, %60, %cst_26 [1] : vector<8x8xf32> to vector<8xf32>
    %62 = vector.shape_cast %61 : vector<8xf32> to vector<8x1xf32>
    %63 = vector.broadcast %62 : vector<8x1xf32> to vector<8x8xf32>
    %64 = arith.divf %60, %63 : vector<8x8xf32>
    %65 = arith.truncf %64 : vector<8x8xf32> to vector<8x8xbf16>
    %66 = vector.extract_strided_slice %21 {offsets = [0, 8], sizes = [8, 8], strides = [1, 1]} : vector<8x32xbf16> to vector<8x8xbf16>
    %cst_27 = arith.constant dense<0.000000e+00> : vector<8x8xf32>
    %67 = tpu.matmul %65, %66, %cst_27 {dimension_numbers = #tpu.dot_dimension_numbers<[1], [0], [0], [1], [0, 0, 1, 1], [], []>} : vector<8x8xbf16>, vector<8x8xbf16>, vector<8x8xf32> -> vector<8x8xf32>
    %c0_28 = arith.constant 0 : index
    %c8 = arith.constant 8 : index
    %68 = vector.load %arg13[%c0_28, %c8] : memref<8x32xf32, #tpu.memory_space<vmem>>, vector<8x8xf32>
    tpu.vector_store %arg13[%c0_28, %c8], %67 {strides = array<i32>} : memref<8x32xf32, #tpu.memory_space<vmem>>, vector<8x8xf32>,
    %69 = vector.extract_strided_slice %16 {offsets = [0, 16], sizes = [8, 8], strides = [1, 1]} : vector<8x32xbf16> to vector<8x8xbf16>
    %70 = vector.extract_strided_slice %19 {offsets = [16, 0], sizes = [8, 8], strides = [1, 1]} : vector<32x8xbf16> to vector<8x8xbf16>
    %cst_29 = arith.constant dense<0.000000e+00> : vector<8x8xf32>
    %71 = tpu.matmul %69, %70, %cst_29 {dimension_numbers = #tpu.dot_dimension_numbers<[1], [0], [0], [1], [0, 0, 1, 1], [], []>} : vector<8x8xbf16>, vector<8x8xbf16>, vector<8x8xf32> -> vector<8x8xf32>
    %cst_30 = arith.constant 0.353553385 : f32
    %72 = vector.broadcast %cst_30 : f32 to vector<8x8xf32>
    %73 = arith.mulf %71, %72 : vector<8x8xf32>
    %74 = arith.addf %73, %30 : vector<8x8xf32>
    %cst_31 = arith.constant dense<0xFF800000> : vector<8xf32>
    %75 = vector.multi_reduction <maximumf>, %74, %cst_31 [1] : vector<8x8xf32> to vector<8xf32>
    %76 = vector.shape_cast %75 : vector<8xf32> to vector<8x1xf32>
    %77 = vector.broadcast %76 : vector<8x1xf32> to vector<8x8xf32>
    %78 = arith.subf %74, %77 : vector<8x8xf32>
    %79 = math.exp %78 : vector<8x8xf32>
    %cst_32 = arith.constant dense<0.000000e+00> : vector<8xf32>
    %80 = vector.multi_reduction <add>, %79, %cst_32 [1] : vector<8x8xf32> to vector<8xf32>
    %81 = vector.shape_cast %80 : vector<8xf32> to vector<8x1xf32>
    %82 = vector.broadcast %81 : vector<8x1xf32> to vector<8x8xf32>
    %83 = arith.divf %79, %82 : vector<8x8xf32>
    %84 = arith.truncf %83 : vector<8x8xf32> to vector<8x8xbf16>
    %85 = vector.extract_strided_slice %21 {offsets = [0, 16], sizes = [8, 8], strides = [1, 1]} : vector<8x32xbf16> to vector<8x8xbf16>
    %cst_33 = arith.constant dense<0.000000e+00> : vector<8x8xf32>
    %86 = tpu.matmul %84, %85, %cst_33 {dimension_numbers = #tpu.dot_dimension_numbers<[1], [0], [0], [1], [0, 0, 1, 1], [], []>} : vector<8x8xbf16>, vector<8x8xbf16>, vector<8x8xf32> -> vector<8x8xf32>
    %c0_34 = arith.constant 0 : index
    %c16 = arith.constant 16 : index
    %87 = vector.load %arg13[%c0_34, %c16] : memref<8x32xf32, #tpu.memory_space<vmem>>, vector<8x8xf32>
    tpu.vector_store %arg13[%c0_34, %c16], %86 {strides = array<i32>} : memref<8x32xf32, #tpu.memory_space<vmem>>, vector<8x8xf32>,
    %88 = vector.extract_strided_slice %16 {offsets = [0, 24], sizes = [8, 8], strides = [1, 1]} : vector<8x32xbf16> to vector<8x8xbf16>
    %89 = vector.extract_strided_slice %19 {offsets = [24, 0], sizes = [8, 8], strides = [1, 1]} : vector<32x8xbf16> to vector<8x8xbf16>
    %cst_35 = arith.constant dense<0.000000e+00> : vector<8x8xf32>
    %90 = tpu.matmul %88, %89, %cst_35 {dimension_numbers = #tpu.dot_dimension_numbers<[1], [0], [0], [1], [0, 0, 1, 1], [], []>} : vector<8x8xbf16>, vector<8x8xbf16>, vector<8x8xf32> -> vector<8x8xf32>
    %cst_36 = arith.constant 0.353553385 : f32
    %91 = vector.broadcast %cst_36 : f32 to vector<8x8xf32>
    %92 = arith.mulf %90, %91 : vector<8x8xf32>
    %93 = arith.addf %92, %30 : vector<8x8xf32>
    %cst_37 = arith.constant dense<0xFF800000> : vector<8xf32>
    %94 = vector.multi_reduction <maximumf>, %93, %cst_37 [1] : vector<8x8xf32> to vector<8xf32>
    %95 = vector.shape_cast %94 : vector<8xf32> to vector<8x1xf32>
    %96 = vector.broadcast %95 : vector<8x1xf32> to vector<8x8xf32>
    %97 = arith.subf %93, %96 : vector<8x8xf32>
    %98 = math.exp %97 : vector<8x8xf32>
    %cst_38 = arith.constant dense<0.000000e+00> : vector<8xf32>
    %99 = vector.multi_reduction <add>, %98, %cst_38 [1] : vector<8x8xf32> to vector<8xf32>
    %100 = vector.shape_cast %99 : vector<8xf32> to vector<8x1xf32>
    %101 = vector.broadcast %100 : vector<8x1xf32> to vector<8x8xf32>
    %102 = arith.divf %98, %101 : vector<8x8xf32>
    %103 = arith.truncf %102 : vector<8x8xf32> to vector<8x8xbf16>
    %104 = vector.extract_strided_slice %21 {offsets = [0, 24], sizes = [8, 8], strides = [1, 1]} : vector<8x32xbf16> to vector<8x8xbf16>
    %cst_39 = arith.constant dense<0.000000e+00> : vector<8x8xf32>
    %105 = tpu.matmul %103, %104, %cst_39 {dimension_numbers = #tpu.dot_dimension_numbers<[1], [0], [0], [1], [0, 0, 1, 1], [], []>} : vector<8x8xbf16>, vector<8x8xbf16>, vector<8x8xf32> -> vector<8x8xf32>
    %c0_40 = arith.constant 0 : index
    %c24 = arith.constant 24 : index
    %106 = vector.load %arg13[%c0_40, %c24] : memref<8x32xf32, #tpu.memory_space<vmem>>, vector<8x8xf32>
    tpu.vector_store %arg13[%c0_40, %c24], %105 {strides = array<i32>} : memref<8x32xf32, #tpu.memory_space<vmem>>, vector<8x8xf32>,
    %c0_41 = arith.constant 0 : index
    %c0_42 = arith.constant 0 : index
    %107 = vector.load %arg13[%c0_41, %c0_42] : memref<8x32xf32, #tpu.memory_space<vmem>>, vector<8x32xf32>
    %108 = arith.truncf %107 : vector<8x32xf32> to vector<8x32xbf16>
    %c0_43 = arith.constant 0 : index
    %c0_44 = arith.constant 0 : index
    %109 = vector.load %arg8[%c0_43, %c0_44] : memref<32x32xbf16, #tpu.memory_space<vmem>>, vector<32x32xbf16>
    %cst_45 = arith.constant dense<0.000000e+00> : vector<8x32xf32>
    %110 = tpu.matmul %108, %109, %cst_45 {dimension_numbers = #tpu.dot_dimension_numbers<[1], [0], [0], [1], [0, 0, 1, 1], [], []>} : vector<8x32xbf16>, vector<32x32xbf16>, vector<8x32xf32> -> vector<8x32xf32>
    %c0_46 = arith.constant 0 : index
    %c0_47 = arith.constant 0 : index
    %111 = vector.load %arg9[%c0_46, %c0_47] : memref<1x32xf32, #tpu.memory_space<vmem>>, vector<1x32xf32>
    %112 = vector.broadcast %111 : vector<1x32xf32> to vector<8x32xf32>
    %113 = arith.addf %110, %112 : vector<8x32xf32>
    %114 = arith.addf %113, %1 : vector<8x32xf32>
    %c0_48 = arith.constant 0 : index
    %c0_49 = arith.constant 0 : index
    %115 = vector.load %arg10[%c0_48, %c0_49] : memref<1x32xf32, #tpu.memory_space<vmem>>, vector<1x32xf32>
    %c0_50 = arith.constant 0 : index
    %c0_51 = arith.constant 0 : index
    %116 = vector.load %arg11[%c0_50, %c0_51] : memref<1x32xf32, #tpu.memory_space<vmem>>, vector<1x32xf32>
    %cst_52 = arith.constant dense<0.000000e+00> : vector<8xf32>
    %117 = vector.multi_reduction <add>, %114, %cst_52 [1] : vector<8x32xf32> to vector<8xf32>
    %118 = vector.shape_cast %117 : vector<8xf32> to vector<8x1xf32>
    %cst_53 = arith.constant 3.200000e+01 : f32
    %119 = vector.broadcast %cst_53 : f32 to vector<8x1xf32>
    %120 = arith.divf %118, %119 : vector<8x1xf32>
    %121 = vector.broadcast %120 : vector<8x1xf32> to vector<8x32xf32>
    %122 = arith.subf %114, %121 : vector<8x32xf32>
    %123 = arith.mulf %122, %122 : vector<8x32xf32>
    %cst_54 = arith.constant dense<0.000000e+00> : vector<8xf32>
    %124 = vector.multi_reduction <add>, %123, %cst_54 [1] : vector<8x32xf32> to vector<8xf32>
    %125 = vector.shape_cast %124 : vector<8xf32> to vector<8x1xf32>
    %cst_55 = arith.constant 3.200000e+01 : f32
    %126 = vector.broadcast %cst_55 : f32 to vector<8x1xf32>
    %127 = arith.divf %125, %126 : vector<8x1xf32>
    %cst_56 = arith.constant 9.99999974E-6 : f32
    %128 = vector.broadcast %cst_56 : f32 to vector<8x1xf32>
    %129 = arith.addf %127, %128 : vector<8x1xf32>
    %130 = math.rsqrt %129 : vector<8x1xf32>
    %131 = vector.broadcast %130 : vector<8x1xf32> to vector<8x32xf32>
    %132 = arith.mulf %122, %131 : vector<8x32xf32>
    %133 = vector.broadcast %115 : vector<1x32xf32> to vector<8x32xf32>
    %134 = arith.mulf %132, %133 : vector<8x32xf32>
    %135 = vector.broadcast %116 : vector<1x32xf32> to vector<8x32xf32>
    %136 = arith.addf %134, %135 : vector<8x32xf32>
    %c0_57 = arith.constant 0 : index
    %c0_58 = arith.constant 0 : index
    %c0_59 = arith.constant 0 : index
    %137 = vector.load %arg12[%c0_57, %c0_58, %c0_59] : memref<1x8x32xf32, #tpu.memory_space<vmem>>, vector<1x8x32xf32>
    %138 = vector.shape_cast %137 : vector<1x8x32xf32> to vector<8x32xf32>
    %139 = vector.shape_cast %136 : vector<8x32xf32> to vector<1x8x32xf32>
    tpu.vector_store %arg12[%c0_57, %c0_58, %c0_59], %139 {strides = array<i32>} : memref<1x8x32xf32, #tpu.memory_space<vmem>>, vector<1x8x32xf32>,
    return
  }
  func.func @transform_0(%arg0: i32, %arg1: i32) -> (i32, i32, i32) {
    %c0_i32 = arith.constant 0 : i32
    %c0_i32_0 = arith.constant 0 : i32
    return %arg0, %arg1, %c0_i32 : i32, i32, i32
  }
  func.func @transform_1(%arg0: i32, %arg1: i32) -> (i32, i32, i32) {
    %c0_i32 = arith.constant 0 : i32
    %c0_i32_0 = arith.constant 0 : i32
    %c0_i32_1 = arith.constant 0 : i32
    return %arg0, %c0_i32, %c0_i32_0 : i32, i32, i32
  }
  func.func @transform_2(%arg0: i32, %arg1: i32) -> (i32, i32) {
    %c0_i32 = arith.constant 0 : i32
    %c0_i32_0 = arith.constant 0 : i32
    %c0_i32_1 = arith.constant 0 : i32
    return %c0_i32, %c0_i32_0 : i32, i32
  }
  func.func @transform_3(%arg0: i32, %arg1: i32) -> (i32, i32) {
    %c0_i32 = arith.constant 0 : i32
    %c0_i32_0 = arith.constant 0 : i32
    %c0_i32_1 = arith.constant 0 : i32
    return %c0_i32, %c0_i32_0 : i32, i32
  }
  func.func @transform_4(%arg0: i32, %arg1: i32) -> (i32, i32) {
    %c0_i32 = arith.constant 0 : i32
    %c0_i32_0 = arith.constant 0 : i32
    %c0_i32_1 = arith.constant 0 : i32
    return %c0_i32, %c0_i32_0 : i32, i32
  }
  func.func @transform_5(%arg0: i32, %arg1: i32) -> (i32, i32) {
    %c0_i32 = arith.constant 0 : i32
    %c0_i32_0 = arith.constant 0 : i32
    %c0_i32_1 = arith.constant 0 : i32
    return %c0_i32, %c0_i32_0 : i32, i32
  }
  func.func @transform_6(%arg0: i32, %arg1: i32) -> (i32, i32) {
    %c0_i32 = arith.constant 0 : i32
    %c0_i32_0 = arith.constant 0 : i32
    %c0_i32_1 = arith.constant 0 : i32
    return %c0_i32, %c0_i32_0 : i32, i32
  }
  func.func @transform_7(%arg0: i32, %arg1: i32) -> (i32, i32) {
    %c0_i32 = arith.constant 0 : i32
    %c0_i32_0 = arith.constant 0 : i32
    %c0_i32_1 = arith.constant 0 : i32
    return %c0_i32, %c0_i32_0 : i32, i32
  }
  func.func @transform_8(%arg0: i32, %arg1: i32) -> (i32, i32) {
    %c0_i32 = arith.constant 0 : i32
    %c0_i32_0 = arith.constant 0 : i32
    %c0_i32_1 = arith.constant 0 : i32
    return %c0_i32, %c0_i32_0 : i32, i32
  }
  func.func @transform_9(%arg0: i32, %arg1: i32) -> (i32, i32) {
    %c0_i32 = arith.constant 0 : i32
    %c0_i32_0 = arith.constant 0 : i32
    %c0_i32_1 = arith.constant 0 : i32
    return %c0_i32, %c0_i32_0 : i32, i32
  }
  func.func @transform_10(%arg0: i32, %arg1: i32) -> (i32, i32, i32) {
    %c0_i32 = arith.constant 0 : i32
    %c0_i32_0 = arith.constant 0 : i32
    return %arg0, %arg1, %c0_i32 : i32, i32, i32
  }
}

module attributes {stable_mosaic.version = 11 : i64} {
  func.func @_attn_block_kernel(%arg0: i32, %arg1: i32, %arg2: memref<1x8x32xf32, #tpu.memory_space<vmem>>, %arg3: memref<1x12x32xf32, #tpu.memory_space<vmem>>, %arg4: memref<32x32xbf16, #tpu.memory_space<vmem>>, %arg5: memref<1x32xf32, #tpu.memory_space<vmem>>, %arg6: memref<32x64xbf16, #tpu.memory_space<vmem>>, %arg7: memref<1x64xf32, #tpu.memory_space<vmem>>, %arg8: memref<32x32xbf16, #tpu.memory_space<vmem>>, %arg9: memref<1x32xf32, #tpu.memory_space<vmem>>, %arg10: memref<1x32xf32, #tpu.memory_space<vmem>>, %arg11: memref<1x32xf32, #tpu.memory_space<vmem>>, %arg12: memref<1x8x32xf32, #tpu.memory_space<vmem>>, %arg13: memref<8x32xf32, #tpu.memory_space<vmem>>) attributes {dimension_semantics = [#tpu.dimension_semantics<parallel>, #tpu.dimension_semantics<parallel>], iteration_bounds = array<i64: 2, 1>, scalar_prefetch = 0 : i64, scratch_operands = 1 : i64, tpu.core_type = #tpu.core_type<tc>, window_params = [{transform_indices = @transform_0, window_bounds = array<i64: 1, 8, 32>}, {transform_indices = @transform_1, window_bounds = array<i64: 1, 12, 32>}, {pipeline_mode = #tpu.pipeline_mode<synchronous>, transform_indices = @transform_2, window_bounds = array<i64: 32, 32>}, {pipeline_mode = #tpu.pipeline_mode<synchronous>, transform_indices = @transform_3, window_bounds = array<i64: 1, 32>}, {pipeline_mode = #tpu.pipeline_mode<synchronous>, transform_indices = @transform_4, window_bounds = array<i64: 32, 64>}, {pipeline_mode = #tpu.pipeline_mode<synchronous>, transform_indices = @transform_5, window_bounds = array<i64: 1, 64>}, {pipeline_mode = #tpu.pipeline_mode<synchronous>, transform_indices = @transform_6, window_bounds = array<i64: 32, 32>}, {pipeline_mode = #tpu.pipeline_mode<synchronous>, transform_indices = @transform_7, window_bounds = array<i64: 1, 32>}, {pipeline_mode = #tpu.pipeline_mode<synchronous>, transform_indices = @transform_8, window_bounds = array<i64: 1, 32>}, {pipeline_mode = #tpu.pipeline_mode<synchronous>, transform_indices = @transform_9, window_bounds = array<i64: 1, 32>}, {transform_indices = @transform_10, window_bounds = array<i64: 1, 8, 32>}]} {
    %c0 = arith.constant 0 : index
    %c0_0 = arith.constant 0 : index
    %c0_1 = arith.constant 0 : index
    %0 = vector.load %arg2[%c0, %c0_0, %c0_1] : memref<1x8x32xf32, #tpu.memory_space<vmem>>, vector<1x8x32xf32>
    %1 = vector.shape_cast %0 : vector<1x8x32xf32> to vector<8x32xf32>
    %c0_2 = arith.constant 0 : index
    %c0_3 = arith.constant 0 : index
    %c0_4 = arith.constant 0 : index
    %2 = vector.load %arg3[%c0_2, %c0_3, %c0_4] : memref<1x12x32xf32, #tpu.memory_space<vmem>>, vector<1x12x32xf32>
    %3 = vector.shape_cast %2 : vector<1x12x32xf32> to vector<12x32xf32>
    %4 = arith.truncf %1 : vector<8x32xf32> to vector<8x32xbf16>
    %c0_5 = arith.constant 0 : index
    %c0_6 = arith.constant 0 : index
    %5 = vector.load %arg4[%c0_5, %c0_6] : memref<32x32xbf16, #tpu.memory_space<vmem>>, vector<32x32xbf16>
    %cst = arith.constant dense<0.000000e+00> : vector<8x32xf32>
    %6 = tpu.matmul %4, %5, %cst {dimension_numbers = #tpu.dot_dimension_numbers<[1], [0], [0], [1], [0, 0, 1, 1], [], []>} : vector<8x32xbf16>, vector<32x32xbf16>, vector<8x32xf32> -> vector<8x32xf32>
    %c0_7 = arith.constant 0 : index
    %c0_8 = arith.constant 0 : index
    %7 = vector.load %arg5[%c0_7, %c0_8] : memref<1x32xf32, #tpu.memory_space<vmem>>, vector<1x32xf32>
    %8 = vector.broadcast %7 : vector<1x32xf32> to vector<8x32xf32>
    %9 = arith.addf %6, %8 : vector<8x32xf32>
    %10 = arith.truncf %3 : vector<12x32xf32> to vector<12x32xbf16>
    %c0_9 = arith.constant 0 : index
    %c0_10 = arith.constant 0 : index
    %11 = vector.load %arg6[%c0_9, %c0_10] : memref<32x64xbf16, #tpu.memory_space<vmem>>, vector<32x64xbf16>
    %cst_11 = arith.constant dense<0.000000e+00> : vector<12x64xf32>
    %12 = tpu.matmul %10, %11, %cst_11 {dimension_numbers = #tpu.dot_dimension_numbers<[1], [0], [0], [1], [0, 0, 1, 1], [], []>} : vector<12x32xbf16>, vector<32x64xbf16>, vector<12x64xf32> -> vector<12x64xf32>
    %c0_12 = arith.constant 0 : index
    %c0_13 = arith.constant 0 : index
    %13 = vector.load %arg7[%c0_12, %c0_13] : memref<1x64xf32, #tpu.memory_space<vmem>>, vector<1x64xf32>
    %14 = vector.broadcast %13 : vector<1x64xf32> to vector<12x64xf32>
    %15 = arith.addf %12, %14 : vector<12x64xf32>
    %16 = arith.truncf %9 : vector<8x32xf32> to vector<8x32xbf16>
    %17 = vector.extract_strided_slice %15 {offsets = [0, 0], sizes = [12, 32], strides = [1, 1]} : vector<12x64xf32> to vector<12x32xf32>
    %18 = arith.truncf %17 : vector<12x32xf32> to vector<12x32xbf16>
    %19 = tpu.transpose %18, [1, 0] : vector<12x32xbf16> -> vector<32x12xbf16>
    %20 = vector.extract_strided_slice %15 {offsets = [0, 32], sizes = [12, 32], strides = [1, 1]} : vector<12x64xf32> to vector<12x32xf32>
    %21 = arith.truncf %20 : vector<12x32xf32> to vector<12x32xbf16>
    %22 = vector.extract_strided_slice %16 {offsets = [0, 0], sizes = [8, 8], strides = [1, 1]} : vector<8x32xbf16> to vector<8x8xbf16>
    %23 = vector.extract_strided_slice %19 {offsets = [0, 0], sizes = [8, 12], strides = [1, 1]} : vector<32x12xbf16> to vector<8x12xbf16>
    %cst_14 = arith.constant dense<0.000000e+00> : vector<8x12xf32>
    %24 = tpu.matmul %22, %23, %cst_14 {dimension_numbers = #tpu.dot_dimension_numbers<[1], [0], [0], [1], [0, 0, 1, 1], [], []>} : vector<8x8xbf16>, vector<8x12xbf16>, vector<8x12xf32> -> vector<8x12xf32>
    %cst_15 = arith.constant 0.353553385 : f32
    %25 = vector.broadcast %cst_15 : f32 to vector<8x12xf32>
    %26 = arith.mulf %24, %25 : vector<8x12xf32>
    %cst_16 = arith.constant dense<0xFF800000> : vector<8xf32>
    %27 = vector.multi_reduction <maximumf>, %26, %cst_16 [1] : vector<8x12xf32> to vector<8xf32>
    %28 = vector.shape_cast %27 : vector<8xf32> to vector<8x1xf32>
    %29 = vector.broadcast %28 : vector<8x1xf32> to vector<8x12xf32>
    %30 = arith.subf %26, %29 : vector<8x12xf32>
    %31 = math.exp %30 : vector<8x12xf32>
    %cst_17 = arith.constant dense<0.000000e+00> : vector<8xf32>
    %32 = vector.multi_reduction <add>, %31, %cst_17 [1] : vector<8x12xf32> to vector<8xf32>
    %33 = vector.shape_cast %32 : vector<8xf32> to vector<8x1xf32>
    %34 = vector.broadcast %33 : vector<8x1xf32> to vector<8x12xf32>
    %35 = arith.divf %31, %34 : vector<8x12xf32>
    %36 = arith.truncf %35 : vector<8x12xf32> to vector<8x12xbf16>
    %37 = vector.extract_strided_slice %21 {offsets = [0, 0], sizes = [12, 8], strides = [1, 1]} : vector<12x32xbf16> to vector<12x8xbf16>
    %cst_18 = arith.constant dense<0.000000e+00> : vector<8x8xf32>
    %38 = tpu.matmul %36, %37, %cst_18 {dimension_numbers = #tpu.dot_dimension_numbers<[1], [0], [0], [1], [0, 0, 1, 1], [], []>} : vector<8x12xbf16>, vector<12x8xbf16>, vector<8x8xf32> -> vector<8x8xf32>
    %c0_19 = arith.constant 0 : index
    %c0_20 = arith.constant 0 : index
    %39 = vector.load %arg13[%c0_19, %c0_20] : memref<8x32xf32, #tpu.memory_space<vmem>>, vector<8x8xf32>
    tpu.vector_store %arg13[%c0_19, %c0_20], %38 {strides = array<i32>} : memref<8x32xf32, #tpu.memory_space<vmem>>, vector<8x8xf32>,
    %40 = vector.extract_strided_slice %16 {offsets = [0, 8], sizes = [8, 8], strides = [1, 1]} : vector<8x32xbf16> to vector<8x8xbf16>
    %41 = vector.extract_strided_slice %19 {offsets = [8, 0], sizes = [8, 12], strides = [1, 1]} : vector<32x12xbf16> to vector<8x12xbf16>
    %cst_21 = arith.constant dense<0.000000e+00> : vector<8x12xf32>
    %42 = tpu.matmul %40, %41, %cst_21 {dimension_numbers = #tpu.dot_dimension_numbers<[1], [0], [0], [1], [0, 0, 1, 1], [], []>} : vector<8x8xbf16>, vector<8x12xbf16>, vector<8x12xf32> -> vector<8x12xf32>
    %cst_22 = arith.constant 0.353553385 : f32
    %43 = vector.broadcast %cst_22 : f32 to vector<8x12xf32>
    %44 = arith.mulf %42, %43 : vector<8x12xf32>
    %cst_23 = arith.constant dense<0xFF800000> : vector<8xf32>
    %45 = vector.multi_reduction <maximumf>, %44, %cst_23 [1] : vector<8x12xf32> to vector<8xf32>
    %46 = vector.shape_cast %45 : vector<8xf32> to vector<8x1xf32>
    %47 = vector.broadcast %46 : vector<8x1xf32> to vector<8x12xf32>
    %48 = arith.subf %44, %47 : vector<8x12xf32>
    %49 = math.exp %48 : vector<8x12xf32>
    %cst_24 = arith.constant dense<0.000000e+00> : vector<8xf32>
    %50 = vector.multi_reduction <add>, %49, %cst_24 [1] : vector<8x12xf32> to vector<8xf32>
    %51 = vector.shape_cast %50 : vector<8xf32> to vector<8x1xf32>
    %52 = vector.broadcast %51 : vector<8x1xf32> to vector<8x12xf32>
    %53 = arith.divf %49, %52 : vector<8x12xf32>
    %54 = arith.truncf %53 : vector<8x12xf32> to vector<8x12xbf16>
    %55 = vector.extract_strided_slice %21 {offsets = [0, 8], sizes = [12, 8], strides = [1, 1]} : vector<12x32xbf16> to vector<12x8xbf16>
    %cst_25 = arith.constant dense<0.000000e+00> : vector<8x8xf32>
    %56 = tpu.matmul %54, %55, %cst_25 {dimension_numbers = #tpu.dot_dimension_numbers<[1], [0], [0], [1], [0, 0, 1, 1], [], []>} : vector<8x12xbf16>, vector<12x8xbf16>, vector<8x8xf32> -> vector<8x8xf32>
    %c0_26 = arith.constant 0 : index
    %c8 = arith.constant 8 : index
    %57 = vector.load %arg13[%c0_26, %c8] : memref<8x32xf32, #tpu.memory_space<vmem>>, vector<8x8xf32>
    tpu.vector_store %arg13[%c0_26, %c8], %56 {strides = array<i32>} : memref<8x32xf32, #tpu.memory_space<vmem>>, vector<8x8xf32>,
    %58 = vector.extract_strided_slice %16 {offsets = [0, 16], sizes = [8, 8], strides = [1, 1]} : vector<8x32xbf16> to vector<8x8xbf16>
    %59 = vector.extract_strided_slice %19 {offsets = [16, 0], sizes = [8, 12], strides = [1, 1]} : vector<32x12xbf16> to vector<8x12xbf16>
    %cst_27 = arith.constant dense<0.000000e+00> : vector<8x12xf32>
    %60 = tpu.matmul %58, %59, %cst_27 {dimension_numbers = #tpu.dot_dimension_numbers<[1], [0], [0], [1], [0, 0, 1, 1], [], []>} : vector<8x8xbf16>, vector<8x12xbf16>, vector<8x12xf32> -> vector<8x12xf32>
    %cst_28 = arith.constant 0.353553385 : f32
    %61 = vector.broadcast %cst_28 : f32 to vector<8x12xf32>
    %62 = arith.mulf %60, %61 : vector<8x12xf32>
    %cst_29 = arith.constant dense<0xFF800000> : vector<8xf32>
    %63 = vector.multi_reduction <maximumf>, %62, %cst_29 [1] : vector<8x12xf32> to vector<8xf32>
    %64 = vector.shape_cast %63 : vector<8xf32> to vector<8x1xf32>
    %65 = vector.broadcast %64 : vector<8x1xf32> to vector<8x12xf32>
    %66 = arith.subf %62, %65 : vector<8x12xf32>
    %67 = math.exp %66 : vector<8x12xf32>
    %cst_30 = arith.constant dense<0.000000e+00> : vector<8xf32>
    %68 = vector.multi_reduction <add>, %67, %cst_30 [1] : vector<8x12xf32> to vector<8xf32>
    %69 = vector.shape_cast %68 : vector<8xf32> to vector<8x1xf32>
    %70 = vector.broadcast %69 : vector<8x1xf32> to vector<8x12xf32>
    %71 = arith.divf %67, %70 : vector<8x12xf32>
    %72 = arith.truncf %71 : vector<8x12xf32> to vector<8x12xbf16>
    %73 = vector.extract_strided_slice %21 {offsets = [0, 16], sizes = [12, 8], strides = [1, 1]} : vector<12x32xbf16> to vector<12x8xbf16>
    %cst_31 = arith.constant dense<0.000000e+00> : vector<8x8xf32>
    %74 = tpu.matmul %72, %73, %cst_31 {dimension_numbers = #tpu.dot_dimension_numbers<[1], [0], [0], [1], [0, 0, 1, 1], [], []>} : vector<8x12xbf16>, vector<12x8xbf16>, vector<8x8xf32> -> vector<8x8xf32>
    %c0_32 = arith.constant 0 : index
    %c16 = arith.constant 16 : index
    %75 = vector.load %arg13[%c0_32, %c16] : memref<8x32xf32, #tpu.memory_space<vmem>>, vector<8x8xf32>
    tpu.vector_store %arg13[%c0_32, %c16], %74 {strides = array<i32>} : memref<8x32xf32, #tpu.memory_space<vmem>>, vector<8x8xf32>,
    %76 = vector.extract_strided_slice %16 {offsets = [0, 24], sizes = [8, 8], strides = [1, 1]} : vector<8x32xbf16> to vector<8x8xbf16>
    %77 = vector.extract_strided_slice %19 {offsets = [24, 0], sizes = [8, 12], strides = [1, 1]} : vector<32x12xbf16> to vector<8x12xbf16>
    %cst_33 = arith.constant dense<0.000000e+00> : vector<8x12xf32>
    %78 = tpu.matmul %76, %77, %cst_33 {dimension_numbers = #tpu.dot_dimension_numbers<[1], [0], [0], [1], [0, 0, 1, 1], [], []>} : vector<8x8xbf16>, vector<8x12xbf16>, vector<8x12xf32> -> vector<8x12xf32>
    %cst_34 = arith.constant 0.353553385 : f32
    %79 = vector.broadcast %cst_34 : f32 to vector<8x12xf32>
    %80 = arith.mulf %78, %79 : vector<8x12xf32>
    %cst_35 = arith.constant dense<0xFF800000> : vector<8xf32>
    %81 = vector.multi_reduction <maximumf>, %80, %cst_35 [1] : vector<8x12xf32> to vector<8xf32>
    %82 = vector.shape_cast %81 : vector<8xf32> to vector<8x1xf32>
    %83 = vector.broadcast %82 : vector<8x1xf32> to vector<8x12xf32>
    %84 = arith.subf %80, %83 : vector<8x12xf32>
    %85 = math.exp %84 : vector<8x12xf32>
    %cst_36 = arith.constant dense<0.000000e+00> : vector<8xf32>
    %86 = vector.multi_reduction <add>, %85, %cst_36 [1] : vector<8x12xf32> to vector<8xf32>
    %87 = vector.shape_cast %86 : vector<8xf32> to vector<8x1xf32>
    %88 = vector.broadcast %87 : vector<8x1xf32> to vector<8x12xf32>
    %89 = arith.divf %85, %88 : vector<8x12xf32>
    %90 = arith.truncf %89 : vector<8x12xf32> to vector<8x12xbf16>
    %91 = vector.extract_strided_slice %21 {offsets = [0, 24], sizes = [12, 8], strides = [1, 1]} : vector<12x32xbf16> to vector<12x8xbf16>
    %cst_37 = arith.constant dense<0.000000e+00> : vector<8x8xf32>
    %92 = tpu.matmul %90, %91, %cst_37 {dimension_numbers = #tpu.dot_dimension_numbers<[1], [0], [0], [1], [0, 0, 1, 1], [], []>} : vector<8x12xbf16>, vector<12x8xbf16>, vector<8x8xf32> -> vector<8x8xf32>
    %c0_38 = arith.constant 0 : index
    %c24 = arith.constant 24 : index
    %93 = vector.load %arg13[%c0_38, %c24] : memref<8x32xf32, #tpu.memory_space<vmem>>, vector<8x8xf32>
    tpu.vector_store %arg13[%c0_38, %c24], %92 {strides = array<i32>} : memref<8x32xf32, #tpu.memory_space<vmem>>, vector<8x8xf32>,
    %c0_39 = arith.constant 0 : index
    %c0_40 = arith.constant 0 : index
    %94 = vector.load %arg13[%c0_39, %c0_40] : memref<8x32xf32, #tpu.memory_space<vmem>>, vector<8x32xf32>
    %95 = arith.truncf %94 : vector<8x32xf32> to vector<8x32xbf16>
    %c0_41 = arith.constant 0 : index
    %c0_42 = arith.constant 0 : index
    %96 = vector.load %arg8[%c0_41, %c0_42] : memref<32x32xbf16, #tpu.memory_space<vmem>>, vector<32x32xbf16>
    %cst_43 = arith.constant dense<0.000000e+00> : vector<8x32xf32>
    %97 = tpu.matmul %95, %96, %cst_43 {dimension_numbers = #tpu.dot_dimension_numbers<[1], [0], [0], [1], [0, 0, 1, 1], [], []>} : vector<8x32xbf16>, vector<32x32xbf16>, vector<8x32xf32> -> vector<8x32xf32>
    %c0_44 = arith.constant 0 : index
    %c0_45 = arith.constant 0 : index
    %98 = vector.load %arg9[%c0_44, %c0_45] : memref<1x32xf32, #tpu.memory_space<vmem>>, vector<1x32xf32>
    %99 = vector.broadcast %98 : vector<1x32xf32> to vector<8x32xf32>
    %100 = arith.addf %97, %99 : vector<8x32xf32>
    %101 = arith.addf %100, %1 : vector<8x32xf32>
    %c0_46 = arith.constant 0 : index
    %c0_47 = arith.constant 0 : index
    %102 = vector.load %arg10[%c0_46, %c0_47] : memref<1x32xf32, #tpu.memory_space<vmem>>, vector<1x32xf32>
    %c0_48 = arith.constant 0 : index
    %c0_49 = arith.constant 0 : index
    %103 = vector.load %arg11[%c0_48, %c0_49] : memref<1x32xf32, #tpu.memory_space<vmem>>, vector<1x32xf32>
    %cst_50 = arith.constant dense<0.000000e+00> : vector<8xf32>
    %104 = vector.multi_reduction <add>, %101, %cst_50 [1] : vector<8x32xf32> to vector<8xf32>
    %105 = vector.shape_cast %104 : vector<8xf32> to vector<8x1xf32>
    %cst_51 = arith.constant 3.200000e+01 : f32
    %106 = vector.broadcast %cst_51 : f32 to vector<8x1xf32>
    %107 = arith.divf %105, %106 : vector<8x1xf32>
    %108 = vector.broadcast %107 : vector<8x1xf32> to vector<8x32xf32>
    %109 = arith.subf %101, %108 : vector<8x32xf32>
    %110 = arith.mulf %109, %109 : vector<8x32xf32>
    %cst_52 = arith.constant dense<0.000000e+00> : vector<8xf32>
    %111 = vector.multi_reduction <add>, %110, %cst_52 [1] : vector<8x32xf32> to vector<8xf32>
    %112 = vector.shape_cast %111 : vector<8xf32> to vector<8x1xf32>
    %cst_53 = arith.constant 3.200000e+01 : f32
    %113 = vector.broadcast %cst_53 : f32 to vector<8x1xf32>
    %114 = arith.divf %112, %113 : vector<8x1xf32>
    %cst_54 = arith.constant 9.99999974E-6 : f32
    %115 = vector.broadcast %cst_54 : f32 to vector<8x1xf32>
    %116 = arith.addf %114, %115 : vector<8x1xf32>
    %117 = math.rsqrt %116 : vector<8x1xf32>
    %118 = vector.broadcast %117 : vector<8x1xf32> to vector<8x32xf32>
    %119 = arith.mulf %109, %118 : vector<8x32xf32>
    %120 = vector.broadcast %102 : vector<1x32xf32> to vector<8x32xf32>
    %121 = arith.mulf %119, %120 : vector<8x32xf32>
    %122 = vector.broadcast %103 : vector<1x32xf32> to vector<8x32xf32>
    %123 = arith.addf %121, %122 : vector<8x32xf32>
    %c0_55 = arith.constant 0 : index
    %c0_56 = arith.constant 0 : index
    %c0_57 = arith.constant 0 : index
    %124 = vector.load %arg12[%c0_55, %c0_56, %c0_57] : memref<1x8x32xf32, #tpu.memory_space<vmem>>, vector<1x8x32xf32>
    %125 = vector.shape_cast %124 : vector<1x8x32xf32> to vector<8x32xf32>
    %126 = vector.shape_cast %123 : vector<8x32xf32> to vector<1x8x32xf32>
    tpu.vector_store %arg12[%c0_55, %c0_56, %c0_57], %126 {strides = array<i32>} : memref<1x8x32xf32, #tpu.memory_space<vmem>>, vector<1x8x32xf32>,
    return
  }
  func.func @transform_0(%arg0: i32, %arg1: i32) -> (i32, i32, i32) {
    %c0_i32 = arith.constant 0 : i32
    %c0_i32_0 = arith.constant 0 : i32
    return %arg0, %arg1, %c0_i32 : i32, i32, i32
  }
  func.func @transform_1(%arg0: i32, %arg1: i32) -> (i32, i32, i32) {
    %c0_i32 = arith.constant 0 : i32
    %c0_i32_0 = arith.constant 0 : i32
    %c0_i32_1 = arith.constant 0 : i32
    return %arg0, %c0_i32, %c0_i32_0 : i32, i32, i32
  }
  func.func @transform_2(%arg0: i32, %arg1: i32) -> (i32, i32) {
    %c0_i32 = arith.constant 0 : i32
    %c0_i32_0 = arith.constant 0 : i32
    %c0_i32_1 = arith.constant 0 : i32
    return %c0_i32, %c0_i32_0 : i32, i32
  }
  func.func @transform_3(%arg0: i32, %arg1: i32) -> (i32, i32) {
    %c0_i32 = arith.constant 0 : i32
    %c0_i32_0 = arith.constant 0 : i32
    %c0_i32_1 = arith.constant 0 : i32
    return %c0_i32, %c0_i32_0 : i32, i32
  }
  func.func @transform_4(%arg0: i32, %arg1: i32) -> (i32, i32) {
    %c0_i32 = arith.constant 0 : i32
    %c0_i32_0 = arith.constant 0 : i32
    %c0_i32_1 = arith.constant 0 : i32
    return %c0_i32, %c0_i32_0 : i32, i32
  }
  func.func @transform_5(%arg0: i32, %arg1: i32) -> (i32, i32) {
    %c0_i32 = arith.constant 0 : i32
    %c0_i32_0 = arith.constant 0 : i32
    %c0_i32_1 = arith.constant 0 : i32
    return %c0_i32, %c0_i32_0 : i32, i32
  }
  func.func @transform_6(%arg0: i32, %arg1: i32) -> (i32, i32) {
    %c0_i32 = arith.constant 0 : i32
    %c0_i32_0 = arith.constant 0 : i32
    %c0_i32_1 = arith.constant 0 : i32
    return %c0_i32, %c0_i32_0 : i32, i32
  }
  func.func @transform_7(%arg0: i32, %arg1: i32) -> (i32, i32) {
    %c0_i32 = arith.constant 0 : i32
    %c0_i32_0 = arith.constant 0 : i32
    %c0_i32_1 = arith.constant 0 : i32
    return %c0_i32, %c0_i32_0 : i32, i32
  }
  func.func @transform_8(%arg0: i32, %arg1: i32) -> (i32, i32) {
    %c0_i32 = arith.constant 0 : i32
    %c0_i32_0 = arith.constant 0 : i32
    %c0_i32_1 = arith.constant 0 : i32
    return %c0_i32, %c0_i32_0 : i32, i32
  }
  func.func @transform_9(%arg0: i32, %arg1: i32) -> (i32, i32) {
    %c0_i32 = arith.constant 0 : i32
    %c0_i32_0 = arith.constant 0 : i32
    %c0_i32_1 = arith.constant 0 : i32
    return %c0_i32, %c0_i32_0 : i32, i32
  }
  func.func @transform_10(%arg0: i32, %arg1: i32) -> (i32, i32, i32) {
    %c0_i32 = arith.constant 0 : i32
    %c0_i32_0 = arith.constant 0 : i32
    return %arg0, %arg1, %c0_i32 : i32, i32, i32
  }
}

module attributes {stable_mosaic.version = 11 : i64} {
  func.func @_ffn_block_kernel(%arg0: i32, %arg1: memref<16x32xf32, #tpu.memory_space<vmem>>, %arg2: memref<32x64xbf16, #tpu.memory_space<vmem>>, %arg3: memref<1x64xf32, #tpu.memory_space<vmem>>, %arg4: memref<64x32xbf16, #tpu.memory_space<vmem>>, %arg5: memref<1x32xf32, #tpu.memory_space<vmem>>, %arg6: memref<1x32xf32, #tpu.memory_space<vmem>>, %arg7: memref<1x32xf32, #tpu.memory_space<vmem>>, %arg8: memref<16x32xf32, #tpu.memory_space<vmem>>) attributes {dimension_semantics = [#tpu.dimension_semantics<parallel>], iteration_bounds = array<i64: 1>, scalar_prefetch = 0 : i64, scratch_operands = 0 : i64, tpu.core_type = #tpu.core_type<tc>, window_params = [{transform_indices = @transform_0, window_bounds = array<i64: 16, 32>}, {pipeline_mode = #tpu.pipeline_mode<synchronous>, transform_indices = @transform_1, window_bounds = array<i64: 32, 64>}, {pipeline_mode = #tpu.pipeline_mode<synchronous>, transform_indices = @transform_2, window_bounds = array<i64: 1, 64>}, {pipeline_mode = #tpu.pipeline_mode<synchronous>, transform_indices = @transform_3, window_bounds = array<i64: 64, 32>}, {pipeline_mode = #tpu.pipeline_mode<synchronous>, transform_indices = @transform_4, window_bounds = array<i64: 1, 32>}, {pipeline_mode = #tpu.pipeline_mode<synchronous>, transform_indices = @transform_5, window_bounds = array<i64: 1, 32>}, {pipeline_mode = #tpu.pipeline_mode<synchronous>, transform_indices = @transform_6, window_bounds = array<i64: 1, 32>}, {transform_indices = @transform_7, window_bounds = array<i64: 16, 32>}]} {
    %c0 = arith.constant 0 : index
    %c0_0 = arith.constant 0 : index
    %0 = vector.load %arg1[%c0, %c0_0] : memref<16x32xf32, #tpu.memory_space<vmem>>, vector<16x32xf32>
    %1 = arith.truncf %0 : vector<16x32xf32> to vector<16x32xbf16>
    %c0_1 = arith.constant 0 : index
    %c0_2 = arith.constant 0 : index
    %2 = vector.load %arg2[%c0_1, %c0_2] : memref<32x64xbf16, #tpu.memory_space<vmem>>, vector<32x64xbf16>
    %cst = arith.constant dense<0.000000e+00> : vector<16x64xf32>
    %3 = tpu.matmul %1, %2, %cst {dimension_numbers = #tpu.dot_dimension_numbers<[1], [0], [0], [1], [0, 0, 1, 1], [], []>} : vector<16x32xbf16>, vector<32x64xbf16>, vector<16x64xf32> -> vector<16x64xf32>
    %c0_3 = arith.constant 0 : index
    %c0_4 = arith.constant 0 : index
    %4 = vector.load %arg3[%c0_3, %c0_4] : memref<1x64xf32, #tpu.memory_space<vmem>>, vector<1x64xf32>
    %5 = vector.broadcast %4 : vector<1x64xf32> to vector<16x64xf32>
    %6 = arith.addf %3, %5 : vector<16x64xf32>
    %cst_5 = arith.constant 0.000000e+00 : f32
    %7 = vector.broadcast %cst_5 : f32 to vector<16x64xf32>
    %8 = arith.maximumf %6, %7 : vector<16x64xf32>
    %9 = arith.truncf %8 : vector<16x64xf32> to vector<16x64xbf16>
    %c0_6 = arith.constant 0 : index
    %c0_7 = arith.constant 0 : index
    %10 = vector.load %arg4[%c0_6, %c0_7] : memref<64x32xbf16, #tpu.memory_space<vmem>>, vector<64x32xbf16>
    %cst_8 = arith.constant dense<0.000000e+00> : vector<16x32xf32>
    %11 = tpu.matmul %9, %10, %cst_8 {dimension_numbers = #tpu.dot_dimension_numbers<[1], [0], [0], [1], [0, 0, 1, 1], [], []>} : vector<16x64xbf16>, vector<64x32xbf16>, vector<16x32xf32> -> vector<16x32xf32>
    %c0_9 = arith.constant 0 : index
    %c0_10 = arith.constant 0 : index
    %12 = vector.load %arg5[%c0_9, %c0_10] : memref<1x32xf32, #tpu.memory_space<vmem>>, vector<1x32xf32>
    %13 = vector.broadcast %12 : vector<1x32xf32> to vector<16x32xf32>
    %14 = arith.addf %11, %13 : vector<16x32xf32>
    %15 = arith.addf %14, %0 : vector<16x32xf32>
    %c0_11 = arith.constant 0 : index
    %c0_12 = arith.constant 0 : index
    %16 = vector.load %arg6[%c0_11, %c0_12] : memref<1x32xf32, #tpu.memory_space<vmem>>, vector<1x32xf32>
    %c0_13 = arith.constant 0 : index
    %c0_14 = arith.constant 0 : index
    %17 = vector.load %arg7[%c0_13, %c0_14] : memref<1x32xf32, #tpu.memory_space<vmem>>, vector<1x32xf32>
    %cst_15 = arith.constant dense<0.000000e+00> : vector<16xf32>
    %18 = vector.multi_reduction <add>, %15, %cst_15 [1] : vector<16x32xf32> to vector<16xf32>
    %19 = vector.shape_cast %18 : vector<16xf32> to vector<16x1xf32>
    %cst_16 = arith.constant 3.200000e+01 : f32
    %20 = vector.broadcast %cst_16 : f32 to vector<16x1xf32>
    %21 = arith.divf %19, %20 : vector<16x1xf32>
    %22 = vector.broadcast %21 : vector<16x1xf32> to vector<16x32xf32>
    %23 = arith.subf %15, %22 : vector<16x32xf32>
    %24 = arith.mulf %23, %23 : vector<16x32xf32>
    %cst_17 = arith.constant dense<0.000000e+00> : vector<16xf32>
    %25 = vector.multi_reduction <add>, %24, %cst_17 [1] : vector<16x32xf32> to vector<16xf32>
    %26 = vector.shape_cast %25 : vector<16xf32> to vector<16x1xf32>
    %cst_18 = arith.constant 3.200000e+01 : f32
    %27 = vector.broadcast %cst_18 : f32 to vector<16x1xf32>
    %28 = arith.divf %26, %27 : vector<16x1xf32>
    %cst_19 = arith.constant 9.99999974E-6 : f32
    %29 = vector.broadcast %cst_19 : f32 to vector<16x1xf32>
    %30 = arith.addf %28, %29 : vector<16x1xf32>
    %31 = math.rsqrt %30 : vector<16x1xf32>
    %32 = vector.broadcast %31 : vector<16x1xf32> to vector<16x32xf32>
    %33 = arith.mulf %23, %32 : vector<16x32xf32>
    %34 = vector.broadcast %16 : vector<1x32xf32> to vector<16x32xf32>
    %35 = arith.mulf %33, %34 : vector<16x32xf32>
    %36 = vector.broadcast %17 : vector<1x32xf32> to vector<16x32xf32>
    %37 = arith.addf %35, %36 : vector<16x32xf32>
    %c0_20 = arith.constant 0 : index
    %c0_21 = arith.constant 0 : index
    %38 = vector.load %arg8[%c0_20, %c0_21] : memref<16x32xf32, #tpu.memory_space<vmem>>, vector<16x32xf32>
    tpu.vector_store %arg8[%c0_20, %c0_21], %37 {strides = array<i32>} : memref<16x32xf32, #tpu.memory_space<vmem>>, vector<16x32xf32>,
    return
  }
  func.func @transform_0(%arg0: i32) -> (i32, i32) {
    %c0_i32 = arith.constant 0 : i32
    %c0_i32_0 = arith.constant 0 : i32
    return %arg0, %c0_i32 : i32, i32
  }
  func.func @transform_1(%arg0: i32) -> (i32, i32) {
    %c0_i32 = arith.constant 0 : i32
    %c0_i32_0 = arith.constant 0 : i32
    %c0_i32_1 = arith.constant 0 : i32
    return %c0_i32, %c0_i32_0 : i32, i32
  }
  func.func @transform_2(%arg0: i32) -> (i32, i32) {
    %c0_i32 = arith.constant 0 : i32
    %c0_i32_0 = arith.constant 0 : i32
    %c0_i32_1 = arith.constant 0 : i32
    return %c0_i32, %c0_i32_0 : i32, i32
  }
  func.func @transform_3(%arg0: i32) -> (i32, i32) {
    %c0_i32 = arith.constant 0 : i32
    %c0_i32_0 = arith.constant 0 : i32
    %c0_i32_1 = arith.constant 0 : i32
    return %c0_i32, %c0_i32_0 : i32, i32
  }
  func.func @transform_4(%arg0: i32) -> (i32, i32) {
    %c0_i32 = arith.constant 0 : i32
    %c0_i32_0 = arith.constant 0 : i32
    %c0_i32_1 = arith.constant 0 : i32
    return %c0_i32, %c0_i32_0 : i32, i32
  }
  func.func @transform_5(%arg0: i32) -> (i32, i32) {
    %c0_i32 = arith.constant 0 : i32
    %c0_i32_0 = arith.constant 0 : i32
    %c0_i32_1 = arith.constant 0 : i32
    return %c0_i32, %c0_i32_0 : i32, i32
  }
  func.func @transform_6(%arg0: i32) -> (i32, i32) {
    %c0_i32 = arith.constant 0 : i32
    %c0_i32_0 = arith.constant 0 : i32
    %c0_i32_1 = arith.constant 0 : i32
    return %c0_i32, %c0_i32_0 : i32, i32
  }
  func.func @transform_7(%arg0: i32) -> (i32, i32) {
    %c0_i32 = arith.constant 0 : i32
    %c0_i32_0 = arith.constant 0 : i32
    return %arg0, %c0_i32 : i32, i32
  }
}

module attributes {stable_mosaic.version = 11 : i64} {
  func.func @_ln_proj_kernel(%arg0: i32, %arg1: i32, %arg2: memref<16x32xf32, #tpu.memory_space<vmem>>, %arg3: memref<1x32xf32, #tpu.memory_space<vmem>>, %arg4: memref<1x32xf32, #tpu.memory_space<vmem>>, %arg5: memref<32x16xbf16, #tpu.memory_space<vmem>>, %arg6: memref<1x16xf32, #tpu.memory_space<vmem>>, %arg7: memref<16x16xf32, #tpu.memory_space<vmem>>, %arg8: memref<16x32xbf16, #tpu.memory_space<vmem>>) attributes {dimension_semantics = [#tpu.dimension_semantics<parallel>, #tpu.dimension_semantics<arbitrary>], iteration_bounds = array<i64: 1, 1>, scalar_prefetch = 0 : i64, scratch_operands = 1 : i64, tpu.core_type = #tpu.core_type<tc>, window_params = [{transform_indices = @transform_0, window_bounds = array<i64: 16, 32>}, {pipeline_mode = #tpu.pipeline_mode<synchronous>, transform_indices = @transform_1, window_bounds = array<i64: 1, 32>}, {pipeline_mode = #tpu.pipeline_mode<synchronous>, transform_indices = @transform_2, window_bounds = array<i64: 1, 32>}, {transform_indices = @transform_3, window_bounds = array<i64: 32, 16>}, {transform_indices = @transform_4, window_bounds = array<i64: 1, 16>}, {transform_indices = @transform_5, window_bounds = array<i64: 16, 16>}]} {
    %c0_i32 = arith.constant 0 : i32
    %0 = arith.cmpi eq, %arg1, %c0_i32 : i32
    %1 = arith.extui %0 : i1 to i32
    %c0_i32_0 = arith.constant 0 : i32
    %2 = arith.cmpi ne, %1, %c0_i32_0 : i32
    scf.if %2 {
      %c0_8 = arith.constant 0 : index
      %c0_9 = arith.constant 0 : index
      %10 = vector.load %arg2[%c0_8, %c0_9] : memref<16x32xf32, #tpu.memory_space<vmem>>, vector<16x32xf32>
      %c0_10 = arith.constant 0 : index
      %c0_11 = arith.constant 0 : index
      %11 = vector.load %arg3[%c0_10, %c0_11] : memref<1x32xf32, #tpu.memory_space<vmem>>, vector<1x32xf32>
      %c0_12 = arith.constant 0 : index
      %c0_13 = arith.constant 0 : index
      %12 = vector.load %arg4[%c0_12, %c0_13] : memref<1x32xf32, #tpu.memory_space<vmem>>, vector<1x32xf32>
      %cst_14 = arith.constant dense<0.000000e+00> : vector<16xf32>
      %13 = vector.multi_reduction <add>, %10, %cst_14 [1] : vector<16x32xf32> to vector<16xf32>
      %14 = vector.shape_cast %13 : vector<16xf32> to vector<16x1xf32>
      %cst_15 = arith.constant 3.200000e+01 : f32
      %15 = vector.broadcast %cst_15 : f32 to vector<16x1xf32>
      %16 = arith.divf %14, %15 : vector<16x1xf32>
      %17 = vector.broadcast %16 : vector<16x1xf32> to vector<16x32xf32>
      %18 = arith.subf %10, %17 : vector<16x32xf32>
      %19 = arith.mulf %18, %18 : vector<16x32xf32>
      %cst_16 = arith.constant dense<0.000000e+00> : vector<16xf32>
      %20 = vector.multi_reduction <add>, %19, %cst_16 [1] : vector<16x32xf32> to vector<16xf32>
      %21 = vector.shape_cast %20 : vector<16xf32> to vector<16x1xf32>
      %cst_17 = arith.constant 3.200000e+01 : f32
      %22 = vector.broadcast %cst_17 : f32 to vector<16x1xf32>
      %23 = arith.divf %21, %22 : vector<16x1xf32>
      %cst_18 = arith.constant 9.99999974E-6 : f32
      %24 = vector.broadcast %cst_18 : f32 to vector<16x1xf32>
      %25 = arith.addf %23, %24 : vector<16x1xf32>
      %26 = math.rsqrt %25 : vector<16x1xf32>
      %27 = vector.broadcast %26 : vector<16x1xf32> to vector<16x32xf32>
      %28 = arith.mulf %18, %27 : vector<16x32xf32>
      %29 = vector.broadcast %11 : vector<1x32xf32> to vector<16x32xf32>
      %30 = arith.mulf %28, %29 : vector<16x32xf32>
      %31 = vector.broadcast %12 : vector<1x32xf32> to vector<16x32xf32>
      %32 = arith.addf %30, %31 : vector<16x32xf32>
      %33 = arith.truncf %32 : vector<16x32xf32> to vector<16x32xbf16>
      %c0_19 = arith.constant 0 : index
      %c0_20 = arith.constant 0 : index
      %34 = vector.load %arg8[%c0_19, %c0_20] : memref<16x32xbf16, #tpu.memory_space<vmem>>, vector<16x32xbf16>
      tpu.vector_store %arg8[%c0_19, %c0_20], %33 {strides = array<i32>} : memref<16x32xbf16, #tpu.memory_space<vmem>>, vector<16x32xbf16>,
    } else {
    }
    %c0 = arith.constant 0 : index
    %c0_1 = arith.constant 0 : index
    %3 = vector.load %arg8[%c0, %c0_1] : memref<16x32xbf16, #tpu.memory_space<vmem>>, vector<16x32xbf16>
    %c0_2 = arith.constant 0 : index
    %c0_3 = arith.constant 0 : index
    %4 = vector.load %arg5[%c0_2, %c0_3] : memref<32x16xbf16, #tpu.memory_space<vmem>>, vector<32x16xbf16>
    %cst = arith.constant dense<0.000000e+00> : vector<16x16xf32>
    %5 = tpu.matmul %3, %4, %cst {dimension_numbers = #tpu.dot_dimension_numbers<[1], [0], [0], [1], [0, 0, 1, 1], [], []>} : vector<16x32xbf16>, vector<32x16xbf16>, vector<16x16xf32> -> vector<16x16xf32>
    %c0_4 = arith.constant 0 : index
    %c0_5 = arith.constant 0 : index
    %6 = vector.load %arg6[%c0_4, %c0_5] : memref<1x16xf32, #tpu.memory_space<vmem>>, vector<1x16xf32>
    %7 = vector.broadcast %6 : vector<1x16xf32> to vector<16x16xf32>
    %8 = arith.addf %5, %7 : vector<16x16xf32>
    %c0_6 = arith.constant 0 : index
    %c0_7 = arith.constant 0 : index
    %9 = vector.load %arg7[%c0_6, %c0_7] : memref<16x16xf32, #tpu.memory_space<vmem>>, vector<16x16xf32>
    tpu.vector_store %arg7[%c0_6, %c0_7], %8 {strides = array<i32>} : memref<16x16xf32, #tpu.memory_space<vmem>>, vector<16x16xf32>,
    return
  }
  func.func @transform_0(%arg0: i32, %arg1: i32) -> (i32, i32) {
    %c0_i32 = arith.constant 0 : i32
    %c0_i32_0 = arith.constant 0 : i32
    return %arg0, %c0_i32 : i32, i32
  }
  func.func @transform_1(%arg0: i32, %arg1: i32) -> (i32, i32) {
    %c0_i32 = arith.constant 0 : i32
    %c0_i32_0 = arith.constant 0 : i32
    %c0_i32_1 = arith.constant 0 : i32
    return %c0_i32, %c0_i32_0 : i32, i32
  }
  func.func @transform_2(%arg0: i32, %arg1: i32) -> (i32, i32) {
    %c0_i32 = arith.constant 0 : i32
    %c0_i32_0 = arith.constant 0 : i32
    %c0_i32_1 = arith.constant 0 : i32
    return %c0_i32, %c0_i32_0 : i32, i32
  }
  func.func @transform_3(%arg0: i32, %arg1: i32) -> (i32, i32) {
    %c0_i32 = arith.constant 0 : i32
    %c0_i32_0 = arith.constant 0 : i32
    return %c0_i32, %arg1 : i32, i32
  }
  func.func @transform_4(%arg0: i32, %arg1: i32) -> (i32, i32) {
    %c0_i32 = arith.constant 0 : i32
    %c0_i32_0 = arith.constant 0 : i32
    return %c0_i32, %arg1 : i32, i32
  }
  func.func @transform_5(%arg0: i32, %arg1: i32) -> (i32, i32) {
    %c0_i32 = arith.constant 0 : i32
    return %arg0, %arg1 : i32, i32
  }
}

</mosaic_0001>

<bundles_post_ra>
// kernel: decoder_forward.9
= control target key start
LH: loop header
LB: loop body
LE: loop exit
PB: predicated region body
PF: predicated region fallthrough
CT: control target
= control target key end

     0   :  { %12 = vsyncpa [#allocation3], 0  ;;  %s755_s0 = inlined_call_operand.hbm [shape: f32[16,32], index: 0, kind: input, shape index: {}]   ;;  %s756_s1 = inlined_call_operand.hbm [shape: bf16[32,64], index: 1, kind: input, shape index: {}]   ;;  %s757_s2 = inlined_call_operand.hbm [shape: f32[1,64], index: 2, kind: input, shape index: {}]   ;;  %s758_s3 = inlined_call_operand.hbm [shape: bf16[64,32], index: 3, kind: input, shape index: {}]   ;;  %s759_s4 = inlined_call_operand.hbm [shape: f32[1,32], index: 4, kind: input, shape index: {}]   ;;  %s760_s5 = inlined_call_operand.hbm [shape: f32[1,32], index: 5, kind: input, shape index: {}]   ;;  %s761_s6 = inlined_call_operand.hbm [shape: f32[1,32], index: 6, kind: input, shape index: {}]   ;;  %s762_s7 = inlined_call_operand.hbm [shape: f32[16,32], index: 7, kind: output, shape index: {}]  }
   0x1   :  { %13 = vsyncpa [#allocation6], 0 }
   0x2   :  { %14 = vsyncpa [#allocation9], 0 }
   0x3   :  { %15 = vsyncpa [#allocation12], 0 }
   0x4   :  { %16 = vsyncpa [#allocation4], 0  ;;  %s592_s24 = smov [#allocation5]   ;;  %s406_s28 = scalar_lea.hbm %s756_s1, 256 }
   0x5   :  { %s34_s25 = sshll.u32 %s592_s24, 4  ;;  %p407_p0 = scmp.ne.s32.totalorder %s756_s1, %s406_s28  ;;  %s35_s25 = int_to_ptr.vmem [resolvable:$true] %s34_s25 }
   0x6   :  { %p410_p1 = scmp.lt.u32.totalorder %s406_s28, %s756_s1 }
   0x8   :  { %p412_p2 = pnand %p410_p1, %p407_p0 }
   0xa   :  { %415 = shalt.err (!%p412_p2)
}
   0xb   :  { %s416_s10 = scalar_lea.vmem %s35_s25, 256  ;;  %p421_p4 = scmp.lt.s32.totalorder %s35_s25, %s35_s25 }
   0xc   :  { %p417_p3 = scmp.ne.s32.totalorder %s35_s25, %s416_s10  ;;  %p422_p5 = scmp.lt.s32.totalorder %s416_s10, %s416_s10 }
   0xe   :  { %p423_p6 = por %p422_p5, %p421_p4 }
  0x10   :  { %p424_p7 = pnand %p423_p6, %p417_p3 }
  0x12   :  { %427 = shalt.err (!%p424_p7)
}
  0x13   :  { %s593_s11 = smov 64   ;;  %s594_s12 = smov 4  }
  0x14   :  { %40 = dma.hbm_to_vmem [thread:$0]  %s756_s1, 256, %s35_s25, [#allocation6], %s593_s11, %s593_s11, %s594_s12  }
  0x15   :  { %s595_s15 = smov [#allocation8]   ;;  %s596_s17 = smov [#allocation11]  }
  0x16   :  { %s56_s16 = sshll.u32 %s595_s15, 4  ;;  %s79_s18 = sshll.u32 %s596_s17, 4  ;;  %s57_s16 = int_to_ptr.vmem [resolvable:$true] %s56_s16  ;;  %s80_s18 = int_to_ptr.vmem [resolvable:$true] %s79_s18 }
  0x17   :  { %s428_s21 = scalar_lea.hbm %s758_s3, 512 }
  0x18   :  { %p429_p8 = scmp.ne.s32.totalorder %s758_s3, %s428_s21  ;;  %p432_p9 = scmp.lt.u32.totalorder %s428_s21, %s758_s3 }
  0x1a   :  { %p434_p10 = pnand %p432_p9, %p429_p8 }
  0x1c   :  { %437 = shalt.err (!%p434_p10)
}
  0x1d   :  { %s438_s1 = scalar_lea.vmem %s57_s16, 512  ;;  %p443_p12 = scmp.lt.s32.totalorder %s57_s16, %s57_s16 }
  0x1e   :  { %p439_p11 = scmp.ne.s32.totalorder %s57_s16, %s438_s1  ;;  %p444_p13 = scmp.lt.s32.totalorder %s438_s1, %s438_s1 }
  0x20   :  { %p445_p0 = por %p444_p13, %p443_p12 }
  0x22   :  { %p446_p1 = pnand %p445_p0, %p439_p11 }
  0x24   :  { %449 = shalt.err (!%p446_p1)
}
  0x25   :  { %62 = dma.hbm_to_vmem [thread:$0]  %s758_s3, 512, %s57_s16, [#allocation9], %s593_s11, %s593_s11, %s594_s12  }
  0x26   :  { %s450_s30 = scalar_lea.hbm %s760_s5, 16 }
  0x27   :  { %p451_p2 = scmp.ne.s32.totalorder %s760_s5, %s450_s30  ;;  %p454_p3 = scmp.lt.u32.totalorder %s450_s30, %s760_s5 }
  0x29   :  { %p456_p4 = pnand %p454_p3, %p451_p2 }
  0x2b   :  { %459 = shalt.err (!%p456_p4)
}
  0x2c   :  { %s460_s14 = scalar_lea.vmem %s80_s18, 16  ;;  %s464_s15 = scalar_lea.vmem %s80_s18, 32 }
  0x2d   :  { %p461_p5 = scmp.ne.s32.totalorder %s80_s18, %s460_s14  ;;  %p465_p6 = scmp.lt.s32.totalorder %s80_s18, %s80_s18 }
  0x2e   :  { %p466_p7 = scmp.lt.s32.totalorder %s464_s15, %s460_s14 }
  0x30   :  { %p467_p8 = por %p466_p7, %p465_p6 }
  0x32   :  { %p468_p9 = pnand %p467_p8, %p461_p5 }
  0x34   :  { %471 = shalt.err (!%p468_p9)
}
  0x35   :  { %82 = dma.hbm_to_vmem [thread:$0]  %s760_s5, 16, %s80_s18, [#allocation12]  }
  0x36   :  { %s597_s12 = smov [#allocation2]   ;;  %s472_s20 = scalar_lea.hbm %s755_s0, 256 }
  0x37   :  { %s22_s16 = sshll.u32 %s597_s12, 4  ;;  %p473_p10 = scmp.ne.s32.totalorder %s755_s0, %s472_s20  ;;  %s23_s16 = int_to_ptr.vmem [resolvable:$true] %s22_s16 }
  0x38   :  { %p476_p11 = scmp.lt.u32.totalorder %s472_s20, %s755_s0 }
  0x3a   :  { %p478_p12 = pnand %p476_p11, %p473_p10 }
  0x3c   :  { %481 = shalt.err (!%p478_p12)
}
  0x3d   :  { %s482_s26 = scalar_lea.vmem %s23_s16, 256  ;;  %p487_p0 = scmp.lt.s32.totalorder %s23_s16, %s23_s16 }
  0x3e   :  { %p483_p13 = scmp.ne.s32.totalorder %s23_s16, %s482_s26  ;;  %p488_p1 = scmp.lt.s32.totalorder %s482_s26, %s482_s26 }
  0x40   :  { %p489_p2 = por %p488_p1, %p487_p0 }
  0x42   :  { %p490_p3 = pnand %p489_p2, %p483_p13 }
  0x44   :  { %493 = shalt.err (!%p490_p3)
}
  0x45   :  { %s598_s5 = smov 128   ;;  %s599_s18 = smov 8  }
  0x46   :  { %28 = dma.hbm_to_vmem [thread:$0]  %s755_s0, 256, %s23_s16, [#allocation3], %s598_s5, %s598_s5, %s599_s18  }
  0x47   :  { %s600_s27 = smov [#allocation7]   ;;  %s601_s29 = smov [#allocation10]  }
  0x48   :  { %s47_s28 = sshll.u32 %s600_s27, 4  ;;  %s69_s30 = sshll.u32 %s601_s29, 4  ;;  %s48_s28 = int_to_ptr.vmem [resolvable:$true] %s47_s28  ;;  %s70_s30 = int_to_ptr.vmem [resolvable:$true] %s69_s30 }
  0x49   :  { %s494_s10 = scalar_lea.hbm %s757_s2, 16 }
  0x4a   :  { %p495_p4 = scmp.ne.s32.totalorder %s757_s2, %s494_s10  ;;  %p498_p5 = scmp.lt.u32.totalorder %s494_s10, %s757_s2 }
  0x4c   :  { %p500_p6 = pnand %p498_p5, %p495_p4 }
  0x4e   :  { %503 = shalt.err (!%p500_p6)
}
  0x4f   :  { %s504_s0 = scalar_lea.vmem %s48_s28, 16  ;;  %s508_s11 = scalar_lea.vmem %s48_s28, 32 }
  0x50   :  { %p505_p7 = scmp.ne.s32.totalorder %s48_s28, %s504_s0  ;;  %p509_p8 = scmp.lt.s32.totalorder %s48_s28, %s48_s28 }
  0x51   :  { %p510_p9 = scmp.lt.s32.totalorder %s508_s11, %s504_s0 }
  0x53   :  { %p511_p10 = por %p510_p9, %p509_p8 }
  0x55   :  { %p512_p11 = pnand %p511_p10, %p505_p7 }
  0x57   :  { %515 = shalt.err (!%p512_p11)
}
  0x58   :  { %50 = dma.hbm_to_vmem [thread:$0]  %s757_s2, 16, %s48_s28, [#allocation6]  }
  0x59   :  { %s516_s20 = scalar_lea.hbm %s759_s4, 16 }
  0x5a   :  { %p517_p12 = scmp.ne.s32.totalorder %s759_s4, %s516_s20  ;;  %p520_p13 = scmp.lt.u32.totalorder %s516_s20, %s759_s4 }
  0x5c   :  { %p522_p0 = pnand %p520_p13, %p517_p12 }
  0x5e   :  { %525 = shalt.err (!%p522_p0)
}
  0x5f   :  { %s526_s26 = scalar_lea.vmem %s70_s30, 16  ;;  %s530_s1 = scalar_lea.vmem %s70_s30, 32 }
  0x60   :  { %p527_p1 = scmp.ne.s32.totalorder %s70_s30, %s526_s26  ;;  %p531_p2 = scmp.lt.s32.totalorder %s70_s30, %s70_s30 }
  0x61   :  { %p532_p3 = scmp.lt.s32.totalorder %s530_s1, %s526_s26 }
  0x63   :  { %p533_p4 = por %p532_p3, %p531_p2 }
  0x65   :  { %p534_p5 = pnand %p533_p4, %p527_p1 }
  0x67   :  { %537 = shalt.err (!%p534_p5)
}
  0x68   :  { %72 = dma.hbm_to_vmem [thread:$0]  %s759_s4, 16, %s70_s30, [#allocation9]  }
  0x69   :  { %s602_s27 = smov [#allocation13]   ;;  %s538_s9 = scalar_lea.hbm %s761_s6, 16 }
  0x6a   :  { %s89_s28 = sshll.u32 %s602_s27, 4  ;;  %p539_p6 = scmp.ne.s32.totalorder %s761_s6, %s538_s9  ;;  %s90_s28 = int_to_ptr.vmem [resolvable:$true] %s89_s28 }
  0x6b   :  { %p542_p7 = scmp.lt.u32.totalorder %s538_s9, %s761_s6 }
  0x6d   :  { %p544_p8 = pnand %p542_p7, %p539_p6 }
  0x6f   :  { %547 = shalt.err (!%p544_p8)
}
  0x70   :  { %s548_s3 = scalar_lea.vmem %s90_s28, 16  ;;  %s552_s4 = scalar_lea.vmem %s90_s28, 32 }
  0x71   :  { %p549_p9 = scmp.ne.s32.totalorder %s90_s28, %s548_s3  ;;  %p553_p10 = scmp.lt.s32.totalorder %s90_s28, %s90_s28 }
  0x72   :  { %p554_p11 = scmp.lt.s32.totalorder %s552_s4, %s548_s3 }
  0x74   :  { %p555_p12 = por %p554_p11, %p553_p10 }
  0x76   :  { %p556_p13 = pnand %p555_p12, %p549_p9 }
  0x78   :  { %559 = shalt.err (!%p556_p13)
}
  0x79   :  { %92 = dma.hbm_to_vmem [thread:$0]  %s761_s6, 16, %s90_s28, [#allocation12]  }
  0x7a   :  { %582 = dma.done.wait [#allocation3], 256  }
  0x7b   :  { %583 = vsyncadd [#allocation3], 4294967040 }
  0x7c   :  { %584 = dma.done.wait [#allocation6], 272  }
  0x7d   :  { %585 = vsyncadd [#allocation6], 4294967024 }
  0x7e   :  { %586 = dma.done.wait [#allocation9], 528  }
  0x7f   :  { %587 = vsyncadd [#allocation9], 4294966768 }
  0x80   :  { %588 = dma.done.wait [#allocation12], 32  }
  0x81   :  { %589 = vsyncadd [#allocation12], 4294967264  ;;  %v603_v0 = vmov 0.0   ;;  %vm604_vm0 = vmmov 0   ;;  %v396_v1 = vld [vmem:[#allocation5] sm:$0xff]   ;;  %v397_v2 = vld [vmem:[#allocation5 + $0x8] sm:$0xff]  }
  0x82   :  { %362 = vmatprep.subr.bf16.mxu0 %v603_v0  ;;  %366 = vmatprep.mubr.msk.bf16.mxu0 %vm604_vm0, %v603_v0  ;;  %v115_v3 = vld [vmem:[#allocation2] sm:$0xff]  ;;  %v116_v4 = vld [vmem:[#allocation2 + $0x8] sm:$0xff]  ;;  %vm141_vm1 = vcmask 261120   ;;  %v400_v8 = vld [vmem:[#allocation8 + $0x10] sm:$0xff]   ;;  %vm228_vm2 = vcmask 523264   ;;  %s605_s6 = smov [#allocation14]  }
  0x83   :  { %370 = vmatprep.subr.bf16.mxu1 %v603_v0  ;;  %378 = vmatprep.mubr.msk.bf16.mxu1 %vm604_vm0, %v603_v0  ;;  %v398_v5 = vld [vmem:[#allocation8] sm:$0xff]   ;;  %v399_v6 = vld [vmem:[#allocation8 + $0x8] sm:$0xff]   ;;  %v117_v7 = vpack.c.bf16 %v116_v4, %v115_v3  ;;  %v401_v9 = vld [vmem:[#allocation8 + $0x18] sm:$0xff]   ;;  %s327_s11 = sshll.u32 %s605_s6, 4  ;;  %s328_s11 = int_to_ptr.vmem [resolvable:$true] %s327_s11 }
  0x84   :  { %363 = vmatpush3.bf16.msra.mxu0 %v396_v1  ;;  %371 = vmatpush3.bf16.msra.mxu1 %v398_v5  ;;  %v342_v10 = vld [vmem:[#allocation7] ss:$0 sm:$0xff]  ;;  %v346_v20 = vld [vmem:[#allocation10] ss:$0 sm:$0xff]  ;;  %v352_v48 = vld [vmem:[#allocation11] ss:$0 sm:$0xff]  ;;  %p565_p1 = scmp.lt.s32.totalorder %s328_s11, %s328_s11 }
  0x85   :  { %364 = vmatprep.subr.bf16.mxu0 %v603_v0  ;;  %372 = vmatprep.subr.bf16.mxu1 %v603_v0  ;;  %v353_v50 = vld [vmem:[#allocation13] ss:$0 sm:$0xff]  ;;  %s560_s12 = scalar_lea.vmem %s328_s11, 256 }
  0x86   :  { %p561_p0 = scmp.ne.s32.totalorder %s328_s11, %s560_s12  ;;  %p566_p2 = scmp.lt.s32.totalorder %s560_s12, %s560_s12 }
  0x88   :  { %365 = vmatpush3.bf16.msra.mxu0 %v397_v2  ;;  %373 = vmatpush3.bf16.msra.mxu1 %v399_v6  ;;  %p567_p3 = por %p566_p2, %p565_p1 }
  0x89   :  { %374 = vmatprep.subr.bf16.mxu1 %v603_v0 }
  0x8a   :  { %p568_p4 = pnand %p567_p3, %p561_p0 }
  0x8b   :  { %367 = vmatmul.mubr.msk.bf16.vlgmr.msra.gmra.mrb[0].mxu0 %vm141_vm1, %v117_v7 }
  0x8c   :  { %375 = vmatpush3.bf16.msra.mxu1 %v400_v8 }
  0x8d   :  { %376 = vmatprep.subr.bf16.mxu1 %v603_v0 }
  0x90   :  { %377 = vmatpush3.bf16.msra.mxu1 %v401_v9 }
 0x15e   :  { %v179_v11 = vpop.f32.mrb[0].mxu0 }
 0x15f   :  { %v180_v12 = vadd.f32 %v342_v10, %v179_v11  ;;  %v368_v13 = vpop.f32.mrb[1].mxu0 }
 0x160   :  { %v182_v14 = vpop.f32.mrb[2].mxu0 }
 0x161   :  { %v183_v15 = vadd.f32 %v342_v10, %v182_v14  ;;  %v369_v16 = vpop.f32.mrb[3].mxu0  ;;  %v186_v17 = vmax.f32 %v180_v12, 0.0 }
 0x163   :  { %v187_v18 = vmax.f32 %v183_v15, 0.0 }
 0x165   :  { %v188_v19 = vpack.c.bf16 %v187_v18, %v186_v17 }
 0x167   :  { %379 = vmatmul.mubr.msk.bf16.vlgmr.msra.gmra.mrb[0].mxu1 %vm228_vm2, %v188_v19 }
 0x23a   :  { %v266_v21 = vpop.f32.mrb[0].mxu1 }
 0x23b   :  { %v267_v22 = vadd.f32 %v346_v20, %v266_v21  ;;  %v380_v23 = vpop.f32.mrb[1].mxu1 }
 0x23c   :  { %v269_v24 = vpop.f32.mrb[2].mxu1 }
 0x23d   :  { %v270_v25 = vadd.f32 %v346_v20, %v269_v24  ;;  %v381_v26 = vpop.f32.mrb[3].mxu1  ;;  %v273_v27 = vadd.f32 %v267_v22, %v115_v3 }
 0x23f   :  { %v277_v28 = vsel %vm141_vm1, %v273_v27, 0.0  ;;  %v274_v29 = vadd.f32 %v270_v25, %v116_v4 }
 0x240   :  { %278 = vadd.xlane.f32.xlu0 %v277_v28 }
 0x241   :  { %v280_v30 = vsel %vm141_vm1, %v274_v29, 0.0 }
 0x244   :  { %281 = vadd.xlane.f32.xlu0 %v280_v30 }
 0x2cd   :  { %v279_v31 = vpop.xlane.xlu0 %278 }
 0x2ce   :  { %v284_v32 = vmul.f32 0.03125, %v279_v31 }
 0x2d0   :  { %v286_v33 = vsub.f32 %v273_v27, %v284_v32 }
 0x2d1   :  { %v282_v34 = vpop.xlane.xlu0 %281 }
 0x2d2   :  { %v285_v35 = vmul.f32 0.03125, %v282_v34  ;;  %v288_v36 = vmul.f32 %v286_v33, %v286_v33 }
 0x2d4   :  { %v287_v37 = vsub.f32 %v274_v29, %v285_v35  ;;  %v290_v38 = vsel %vm141_vm1, %v288_v36, 0.0 }
 0x2d5   :  { %291 = vadd.xlane.f32.xlu1 %v290_v38 }
 0x2d6   :  { %v289_v39 = vmul.f32 %v287_v37, %v287_v37 }
 0x2d8   :  { %v293_v40 = vsel %vm141_vm1, %v289_v39, 0.0 }
 0x2d9   :  { %294 = vadd.xlane.f32.xlu1 %v293_v40 }
 0x362   :  { %v292_v41 = vpop.xlane.xlu1 %291 }
 0x363   :  { %v296_v42 = vmul.f32 0.03125, %v292_v41 }
 0x365   :  { %v298_v43 = vadd.f32 1e-05, %v296_v42 }
 0x366   :  { %v295_v44 = vpop.xlane.xlu1 %294 }
 0x367   :  { %402 = vrsqrt.f32 %v298_v43  ;;  %v297_v45 = vmul.f32 0.03125, %v295_v44 }
 0x369   :  { %v299_v46 = vadd.f32 1e-05, %v297_v45 }
 0x36b   :  { %404 = vrsqrt.f32 %v299_v46 }
 0x371   :  { %v403_v47 = vpop.eup %402 }
 0x372   :  { %v302_v49 = vmul.f32 %v403_v47, %v286_v33 }
 0x374   :  { %v310_v51 = vmul.f32 %v352_v48, %v302_v49 }
 0x375   :  { %v405_v52 = vpop.eup %404 }
 0x376   :  { %v303_v53 = vmul.f32 %v405_v52, %v287_v37  ;;  %v318_v54 = vadd.f32 %v353_v50, %v310_v51 }
 0x378   :  { %v311_v55 = vmul.f32 %v352_v48, %v303_v53  ;;  %320 = vst.msk [vmem:[#allocation14] sm:$0xff] %vm141_vm1, %v318_v54 }
 0x37a   :  { %v319_v56 = vadd.f32 %v353_v50, %v311_v55 }
 0x37c   :  { %321 = vst.msk [vmem:[#allocation14 + $0x8] sm:$0xff] %vm141_vm1, %v319_v56 }
 0x37d   :  { %571 = shalt.err (!%p568_p4)
}
 0x37e   :  { %s572_s19 = scalar_lea.hbm %s762_s7, 256 }
 0x37f   :  { %p573_p5 = scmp.ne.s32.totalorder %s762_s7, %s572_s19  ;;  %p576_p6 = scmp.lt.u32.totalorder %s572_s19, %s762_s7 }
 0x381   :  { %p578_p7 = pnand %p576_p6, %p573_p5 }
 0x383   :  { %581 = shalt.err (!%p578_p7)
}
 0x384   :  { %333 = dma.vmem_to_hbm [thread:$0]  %s328_s11, 256, %s762_s7, [#allocation4], %s598_s5, %s598_s5, %s599_s18  }
 0x385   :  { %590 = dma.done.wait [#allocation4], 256  }
 0x386   :  { %591 = vsyncadd [#allocation4], 4294967040 }
 0x387   :  { %337 = vsyncpa [#allocation3], 1 }
 0x388   :  { %338 = vsyncpa [#allocation6], 1 }
 0x389   :  { %339 = vsyncpa [#allocation9], 1 }
 0x38a   :  { %340 = vsyncpa [#allocation12], 1 }
 0x38b   :  { %341 = vsyncpa [#allocation4], 1 }

// kernel: decoder_forward.13
= control target key start
LH: loop header
LB: loop body
LE: loop exit
PB: predicated region body
PF: predicated region fallthrough
CT: control target
= control target key end

     0   :  { %10 = vsyncpa [#allocation4], 0  ;;  %s537_s0 = inlined_call_operand.hbm [shape: f32[16,32], index: 0, kind: input, shape index: {}]   ;;  %s538_s1 = inlined_call_operand.hbm [shape: f32[1,32], index: 1, kind: input, shape index: {}]   ;;  %s539_s2 = inlined_call_operand.hbm [shape: f32[1,32], index: 2, kind: input, shape index: {}]   ;;  %s540_s3 = inlined_call_operand.hbm [shape: bf16[32,16], index: 3, kind: input, shape index: {}]   ;;  %s541_s4 = inlined_call_operand.hbm [shape: f32[1,16], index: 4, kind: input, shape index: {}]   ;;  %s542_s5 = inlined_call_operand.hbm [shape: f32[16,16], index: 5, kind: output, shape index: {}]  }
   0x1   :  { %11 = vsyncpa [#allocation7], 0 }
   0x2   :  { %12 = vsyncpa [#allocation10], 0 }
   0x3   :  { %13 = vsyncpa [#allocation5], 0  ;;  %s404_s18 = smov [#allocation6]   ;;  %s405_s20 = smov [#allocation9]  }
   0x4   :  { %s32_s19 = sshll.u32 %s404_s18, 4  ;;  %s51_s21 = sshll.u32 %s405_s20, 4  ;;  %s33_s19 = int_to_ptr.vmem [resolvable:$true] %s32_s19  ;;  %s446_s21 = int_to_ptr.vmem [resolvable:$true] %s51_s21 }
   0x5   :  { %s264_s24 = scalar_lea.hbm %s538_s1, 16 }
   0x6   :  { %p265_p0 = scmp.ne.s32.totalorder %s538_s1, %s264_s24  ;;  %p268_p1 = scmp.lt.u32.totalorder %s264_s24, %s538_s1 }
   0x8   :  { %p270_p2 = pnand %p268_p1, %p265_p0 }
   0xa   :  { %273 = shalt.err (!%p270_p2)
}
   0xb   :  { %s274_s29 = scalar_lea.vmem %s33_s19, 16  ;;  %s278_s30 = scalar_lea.vmem %s33_s19, 32 }
   0xc   :  { %p275_p3 = scmp.ne.s32.totalorder %s33_s19, %s274_s29  ;;  %p279_p4 = scmp.lt.s32.totalorder %s33_s19, %s33_s19 }
   0xd   :  { %p280_p5 = scmp.lt.s32.totalorder %s278_s30, %s274_s29 }
   0xf   :  { %p281_p6 = por %p280_p5, %p279_p4 }
  0x11   :  { %p282_p7 = pnand %p281_p6, %p275_p3 }
  0x13   :  { %285 = shalt.err (!%p282_p7)
}
  0x14   :  { %35 = dma.hbm_to_vmem [thread:$0]  %s538_s1, 16, %s33_s19, [#allocation7]  }
  0x15   :  { %s286_s10 = scalar_lea.hbm %s540_s3, 256 }
  0x16   :  { %p287_p8 = scmp.ne.s32.totalorder %s540_s3, %s286_s10  ;;  %p290_p9 = scmp.lt.u32.totalorder %s286_s10, %s540_s3 }
  0x18   :  { %p292_p10 = pnand %p290_p9, %p287_p8 }
  0x1a   :  { %295 = shalt.err (!%p292_p10)
}
  0x1b   :  { %s296_s15 = scalar_lea.vmem %s446_s21, 256  ;;  %p301_p12 = scmp.lt.s32.totalorder %s446_s21, %s446_s21 }
  0x1c   :  { %p297_p11 = scmp.ne.s32.totalorder %s446_s21, %s296_s15  ;;  %p302_p13 = scmp.lt.s32.totalorder %s296_s15, %s296_s15 }
  0x1e   :  { %p303_p0 = por %p302_p13, %p301_p12 }
  0x20   :  { %p304_p1 = pnand %p303_p0, %p297_p11 }
  0x22   :  { %307 = shalt.err (!%p304_p1)
}
  0x23   :  { %s406_s1 = smov 64   ;;  %s407_s16 = smov 4  }
  0x24   :  { %57 = dma.hbm_to_vmem [thread:$0]  %s540_s3, 256, %s446_s21, [#allocation10], %s406_s1, %s406_s1, %s407_s16  }
  0x25   :  { %s408_s19 = smov [#allocation3]   ;;  %s308_s24 = scalar_lea.hbm %s537_s0, 256 }
  0x26   :  { %s19_s20 = sshll.u32 %s408_s19, 4  ;;  %p309_p2 = scmp.ne.s32.totalorder %s537_s0, %s308_s24  ;;  %s20_s20 = int_to_ptr.vmem [resolvable:$true] %s19_s20 }
  0x27   :  { %p312_p3 = scmp.lt.u32.totalorder %s308_s24, %s537_s0 }
  0x29   :  { %p314_p4 = pnand %p312_p3, %p309_p2 }
  0x2b   :  { %317 = shalt.err (!%p314_p4)
}
  0x2c   :  { %s318_s29 = scalar_lea.vmem %s20_s20, 256  ;;  %p323_p6 = scmp.lt.s32.totalorder %s20_s20, %s20_s20 }
  0x2d   :  { %p319_p5 = scmp.ne.s32.totalorder %s20_s20, %s318_s29  ;;  %p324_p7 = scmp.lt.s32.totalorder %s318_s29, %s318_s29 }
  0x2f   :  { %p325_p8 = por %p324_p7, %p323_p6 }
  0x31   :  { %p326_p9 = pnand %p325_p8, %p319_p5 }
  0x33   :  { %329 = shalt.err (!%p326_p9)
}
  0x34   :  { %s409_s3 = smov 128   ;;  %s410_s21 = smov 8  }
  0x35   :  { %25 = dma.hbm_to_vmem [thread:$0]  %s537_s0, 256, %s20_s20, [#allocation4], %s409_s3, %s409_s3, %s410_s21  }
  0x36   :  { %s411_s7 = smov [#allocation8]   ;;  %s412_s9 = smov [#allocation11]  }
  0x37   :  { %s42_s8 = sshll.u32 %s411_s7, 4  ;;  %s64_s10 = sshll.u32 %s412_s9, 4  ;;  %s43_s8 = int_to_ptr.vmem [resolvable:$true] %s42_s8  ;;  %s65_s10 = int_to_ptr.vmem [resolvable:$true] %s64_s10 }
  0x38   :  { %s330_s13 = scalar_lea.hbm %s539_s2, 16 }
  0x39   :  { %p331_p10 = scmp.ne.s32.totalorder %s539_s2, %s330_s13  ;;  %p334_p11 = scmp.lt.u32.totalorder %s330_s13, %s539_s2 }
  0x3b   :  { %p336_p12 = pnand %p334_p11, %p331_p10 }
  0x3d   :  { %339 = shalt.err (!%p336_p12)
}
  0x3e   :  { %s340_s0 = scalar_lea.vmem %s43_s8, 16  ;;  %s344_s17 = scalar_lea.vmem %s43_s8, 32 }
  0x3f   :  { %p341_p13 = scmp.ne.s32.totalorder %s43_s8, %s340_s0  ;;  %p345_p0 = scmp.lt.s32.totalorder %s43_s8, %s43_s8 }
  0x40   :  { %p346_p1 = scmp.lt.s32.totalorder %s344_s17, %s340_s0 }
  0x42   :  { %p347_p2 = por %p346_p1, %p345_p0 }
  0x44   :  { %p348_p3 = pnand %p347_p2, %p341_p13 }
  0x46   :  { %351 = shalt.err (!%p348_p3)
}
  0x47   :  { %45 = dma.hbm_to_vmem [thread:$0]  %s539_s2, 16, %s43_s8, [#allocation7]  }
  0x48   :  { %s352_s23 = scalar_lea.hbm %s541_s4, 16 }
  0x49   :  { %p353_p4 = scmp.ne.s32.totalorder %s541_s4, %s352_s23  ;;  %p356_p5 = scmp.lt.u32.totalorder %s352_s23, %s541_s4 }
  0x4b   :  { %p358_p6 = pnand %p356_p5, %p353_p4 }
  0x4d   :  { %361 = shalt.err (!%p358_p6)
}
  0x4e   :  { %s362_s28 = scalar_lea.vmem %s65_s10, 16  ;;  %s366_s29 = scalar_lea.vmem %s65_s10, 32 }
  0x4f   :  { %p363_p7 = scmp.ne.s32.totalorder %s65_s10, %s362_s28  ;;  %p367_p8 = scmp.lt.s32.totalorder %s65_s10, %s65_s10 }
  0x50   :  { %p368_p9 = scmp.lt.s32.totalorder %s366_s29, %s362_s28 }
  0x52   :  { %p369_p10 = por %p368_p9, %p367_p8 }
  0x54   :  { %p370_p11 = pnand %p369_p10, %p363_p7 }
  0x56   :  { %373 = shalt.err (!%p370_p11)
}
  0x57   :  { %67 = dma.hbm_to_vmem [thread:$0]  %s541_s4, 16, %s65_s10, [#allocation10]  }
  0x58   :  { %396 = dma.done.wait [#allocation4], 256  }
  0x59   :  { %397 = vsyncadd [#allocation4], 4294967040 }
  0x5a   :  { %398 = dma.done.wait [#allocation7], 32  }
  0x5b   :  { %399 = vsyncadd [#allocation7], 4294967264 }
  0x5c   :  { %400 = dma.done.wait [#allocation10], 272  }
  0x5d   :  { %401 = vsyncadd [#allocation10], 4294967024  ;;  %vm92_vm0 = vcmask 261120   ;;  %v88_v0 = vld [vmem:[#allocation3] sm:$0xff]  ;;  %v89_v1 = vld [vmem:[#allocation3 + $0x8] sm:$0xff]  ;;  %v413_v15 = vmov 0.0  }
  0x5e   :  { %v93_v2 = vsel %vm92_vm0, %v88_v0, 0.0  ;;  %v96_v3 = vsel %vm92_vm0, %v89_v1, 0.0  ;;  %v258_v14 = vld [vmem:[#allocation9] sm:$0xff]   ;;  %238 = vmatprep.subr.bf16.mxu0 %v413_v15  ;;  %v259_v16 = vld [vmem:[#allocation9 + $0x8] sm:$0xff]   ;;  %vm414_vm1 = vmmov 0   ;;  %vm207_vm2 = vcmask 130048  }
  0x5f   :  { %94 = vadd.xlane.f32.xlu0 %v93_v2  ;;  %239 = vmatpush3.bf16.msra.mxu0 %v258_v14  ;;  %v229_v25 = vld [vmem:[#allocation6] ss:$0 sm:$0xff]  ;;  %v230_v29 = vld [vmem:[#allocation8] ss:$0 sm:$0xff]  ;;  %v231_v35 = vld [vmem:[#allocation11] ss:$0 sm:$0xff] }
  0x60   :  { %242 = vmatprep.mubr.msk.bf16.mxu0 %vm414_vm1, %v413_v15  ;;  %240 = vmatprep.subr.bf16.mxu0 %v413_v15  ;;  %s415_s4 = smov [#allocation12]  }
  0x61   :  { %s215_s6 = sshll.u32 %s415_s4, 4  ;;  %s216_s6 = int_to_ptr.vmem [resolvable:$true] %s215_s6 }
  0x62   :  { %s374_s7 = scalar_lea.vmem %s216_s6, 256  ;;  %p379_p13 = scmp.lt.s32.totalorder %s216_s6, %s216_s6 }
  0x63   :  { %97 = vadd.xlane.f32.xlu0 %v96_v3  ;;  %241 = vmatpush3.bf16.msra.mxu0 %v259_v16  ;;  %p375_p12 = scmp.ne.s32.totalorder %s216_s6, %s374_s7  ;;  %p380_p0 = scmp.lt.s32.totalorder %s374_s7, %s374_s7 }
  0x65   :  { %p381_p1 = por %p380_p0, %p379_p13 }
  0x67   :  { %p382_p2 = pnand %p381_p1, %p375_p12 }
  0xec   :  { %v95_v4 = vpop.xlane.xlu0 %94 }
  0xed   :  { %v100_v5 = vmul.f32 0.03125, %v95_v4 }
  0xef   :  { %v102_v6 = vsub.f32 %v88_v0, %v100_v5 }
  0xf0   :  { %v98_v7 = vpop.xlane.xlu0 %97 }
  0xf1   :  { %v101_v8 = vmul.f32 0.03125, %v98_v7  ;;  %v104_v9 = vmul.f32 %v102_v6, %v102_v6 }
  0xf3   :  { %v103_v10 = vsub.f32 %v89_v1, %v101_v8  ;;  %v106_v11 = vsel %vm92_vm0, %v104_v9, 0.0 }
  0xf4   :  { %107 = vadd.xlane.f32.xlu1 %v106_v11 }
  0xf5   :  { %v105_v12 = vmul.f32 %v103_v10, %v103_v10 }
  0xf7   :  { %v109_v13 = vsel %vm92_vm0, %v105_v12, 0.0 }
  0xf8   :  { %110 = vadd.xlane.f32.xlu1 %v109_v13 }
 0x181   :  { %v108_v17 = vpop.xlane.xlu1 %107 }
 0x182   :  { %v112_v18 = vmul.f32 0.03125, %v108_v17 }
 0x184   :  { %v114_v19 = vadd.f32 1e-05, %v112_v18 }
 0x185   :  { %v111_v20 = vpop.xlane.xlu1 %110 }
 0x186   :  { %260 = vrsqrt.f32 %v114_v19  ;;  %v113_v21 = vmul.f32 0.03125, %v111_v20 }
 0x188   :  { %v115_v22 = vadd.f32 1e-05, %v113_v21 }
 0x18a   :  { %262 = vrsqrt.f32 %v115_v22 }
 0x190   :  { %v261_v23 = vpop.eup %260 }
 0x191   :  { %v118_v24 = vmul.f32 %v261_v23, %v102_v6 }
 0x193   :  { %v126_v27 = vmul.f32 %v229_v25, %v118_v24 }
 0x194   :  { %v263_v26 = vpop.eup %262 }
 0x195   :  { %v119_v28 = vmul.f32 %v263_v26, %v103_v10  ;;  %v134_v31 = vadd.f32 %v230_v29, %v126_v27 }
 0x197   :  { %v127_v30 = vmul.f32 %v229_v25, %v119_v28 }
 0x199   :  { %v135_v32 = vadd.f32 %v230_v29, %v127_v30 }
 0x19b   :  { %v136_v33 = vpack.c.bf16 %v135_v32, %v134_v31 }
 0x19d   :  { %137 = vst.msk [vmem:[#allocation2] sm:$0xff] %vm92_vm0, %v136_v33 }
 0x1a4   :  { %v138_v34 = vld [vmem:[#allocation2] sm:$0xff] }
 0x1a5   :  { %243 = vmatmul.mubr.msk.bf16.vlgmr.msra.gmra.mrb[0].mxu0 %vm92_vm0, %v138_v34 }
 0x278   :  { %v200_v36 = vpop.f32.mrb[0].mxu0 }
 0x279   :  { %v201_v37 = vadd.f32 %v231_v35, %v200_v36  ;;  %v244_v38 = vpop.f32.mrb[1].mxu0 }
 0x27a   :  { %v203_v39 = vpop.f32.mrb[2].mxu0 }
 0x27b   :  { %v204_v40 = vadd.f32 %v231_v35, %v203_v39  ;;  %v245_v41 = vpop.f32.mrb[3].mxu0  ;;  %208 = vst.msk [vmem:[#allocation12] sm:$0xff] %vm207_vm2, %v201_v37 }
 0x27d   :  { %209 = vst.msk [vmem:[#allocation12 + $0x8] sm:$0xff] %vm207_vm2, %v204_v40 }
 0x27e   :  { %385 = shalt.err (!%p382_p2)
}
 0x27f   :  { %s386_s10 = scalar_lea.hbm %s542_s5, 256 }
 0x280   :  { %p387_p3 = scmp.ne.s32.totalorder %s542_s5, %s386_s10  ;;  %p390_p4 = scmp.lt.u32.totalorder %s386_s10, %s542_s5 }
 0x282   :  { %p392_p5 = pnand %p390_p4, %p387_p3 }
 0x284   :  { %395 = shalt.err (!%p392_p5)
}
 0x285   :  { %221 = dma.vmem_to_hbm [thread:$0]  %s216_s6, 256, %s542_s5, [#allocation5], %s409_s3, %s409_s3, %s410_s21  }
 0x286   :  { %402 = dma.done.wait [#allocation5], 256  }
 0x287   :  { %403 = vsyncadd [#allocation5], 4294967040 }
 0x288   :  { %225 = vsyncpa [#allocation4], 1 }
 0x289   :  { %226 = vsyncpa [#allocation7], 1 }
 0x28a   :  { %227 = vsyncpa [#allocation10], 1 }
 0x28b   :  { %228 = vsyncpa [#allocation5], 1 }

// kernel: decoder_forward.8
= control target key start
LH: loop header
LB: loop body
LE: loop exit
PB: predicated region body
PF: predicated region fallthrough
CT: control target
= control target key end

     0   :  { %s2775_s0 = inlined_call_operand.hbm [shape: f32[2,8,32], index: 0, kind: input, shape index: {}]   ;;  %s2776_s1 = inlined_call_operand.hbm [shape: f32[2,12,32], index: 1, kind: input, shape index: {}]   ;;  %s2777_s2 = inlined_call_operand.hbm [shape: bf16[32,32], index: 2, kind: input, shape index: {}]   ;;  %s2778_s3 = inlined_call_operand.hbm [shape: f32[1,32], index: 3, kind: input, shape index: {}]   ;;  %s2779_s4 = inlined_call_operand.hbm [shape: bf16[32,64], index: 4, kind: input, shape index: {}]   ;;  %s2780_s5 = inlined_call_operand.hbm [shape: f32[1,64], index: 5, kind: input, shape index: {}]   ;;  %s2781_s6 = inlined_call_operand.hbm [shape: bf16[32,32], index: 6, kind: input, shape index: {}]   ;;  %s2782_s7 = inlined_call_operand.hbm [shape: f32[1,32], index: 7, kind: input, shape index: {}]   ;;  %s2783_s8 = inlined_call_operand.hbm [shape: f32[1,32], index: 8, kind: input, shape index: {}]   ;;  %s2784_s9 = inlined_call_operand.hbm [shape: f32[1,32], index: 9, kind: input, shape index: {}]   ;;  %s2785_s10 = inlined_call_operand.hbm [shape: f32[2,8,32], index: 10, kind: output, shape index: {}]  }
   0x1   :  { %2794 = sst [smem:[#allocation31_spill]] %s2775_s0 }
   0x2   :  { %2795 = sst [smem:[#allocation32_spill]] %s2776_s1 }
   0x3   :  { %2796 = sst [smem:[#allocation33_spill]] %s2777_s2 }
   0x4   :  { %2797 = sst [smem:[#allocation34_spill]] %s2778_s3 }
   0x5   :  { %2798 = sst [smem:[#allocation35_spill]] %s2779_s4 }
   0x6   :  { %2799 = sst [smem:[#allocation36_spill]] %s2780_s5 }
   0x7   :  { %2800 = sst [smem:[#allocation37_spill]] %s2785_s10 }
   0x8   :  { %15 = vsyncpa [#allocation4], 0 }
   0x9   :  { %17 = vsyncpa [#allocation4 + $0x1], 0 }
   0xa   :  { %18 = vsyncpa [#allocation7], 0 }
   0xb   :  { %20 = vsyncpa [#allocation7 + $0x1], 0 }
   0xc   :  { %21 = vsyncpa [#allocation10], 0 }
   0xd   :  { %22 = vsyncpa [#allocation13], 0 }
   0xe   :  { %23 = vsyncpa [#allocation16], 0 }
   0xf   :  { %24 = vsyncpa [#allocation19], 0 }
  0x10   :  { %25 = vsyncpa [#allocation5], 0 }
  0x11   :  { %27 = vsyncpa [#allocation5 + $0x1], 0  ;;  %s2253_s13 = smov 0   ;;  %s2255_s14 = smov 0  }
  0x12   :  { %s2257_s15 = smov 0   ;;  %s2259_s16 = smov 0  }
  0x13   :  { %s2261_s17 = smov 0   ;;  %s2263_s18 = smov 0  }
  0x14 LB: > { %2801 = sst [smem:[#allocation29_spill]] %s2161_s16  ;;  %s2284_s19 = sadd.s32 4294967295, %s2169_s18   ;;  %s2169_s18 = sphi %s2263_s18, %s33_s18   ;;  %s2165_s17 = sphi %s2261_s17, %s2841_s17   ;;  %s2161_s16 = sphi %s2259_s16, %s2840_s16   ;;  %s2157_s15 = sphi %s2257_s15, %s2839_s15   ;;  %s2153_s14 = sphi %s2255_s14, %s2838_s14   ;;  %s2149_s13 = sphi %s2253_s13, %s2837_s13  }
  0x15   : > { %p1440_p0 = scmp.ge.s32.totalorder %s2169_s18, 1  ;;  %p2789_p1 = scmp.eq.s32.totalorder %s2284_s19, 0 }
  0x16   : > { %p300_p2 = scmp.lt.s32.totalorder %s2169_s18, 3  ;;  %s2171_s21 = smov [#allocation8]  }
  0x17   : > { %s312_s22 = sshll.u32 %s2171_s21, 4  ;;  %s2172_s24 = smov [#allocation9]   ;;  %s2293_s22 = int_to_ptr.vmem [resolvable:$true] %s312_s22 }
  0x18   : > { %p2289_p3 = pnand %p1440_p0, %p300_p2  ;;  %s326_s25 = sshll.u32 %s2172_s24, 4  ;;  %s2304_s25 = int_to_ptr.vmem [resolvable:$true] %s326_s25 }
  0x19   : > { %s2173_s26 = smov [#allocation12]   ;;  %s2805_s2 = sld [smem:[#allocation33_spill]] }
  0x1a   : > { %s2802_s20 = scalar_select %p2289_p3, 1, 0 }
  0x1b   : > { %p1629_p4 = pneg %p2289_p3  ;;  %s2306_s27 = sshll.u32 %s2173_s26, 4  ;;  %s351_s27 = int_to_ptr.vmem [resolvable:$true] %s2306_s27 }
  0x1c   : > { %2803 = sst [smem:[#allocation30_spill]] %s2802_s20 }
  0x1d   : > { %p2300_p6 = pnand %p1629_p4, %p2789_p1 }
  0x1f   : > { %s1779_s30 = scalar_lea.hbm %s2805_s2, 256  ;;  %p2316_p8 = pneg %p2300_p6 }
  0x20   : > { %p1780_p7 = scmp.ne.s32.totalorder %s2805_s2, %s1779_s30  ;;  %p1786_p11 = scmp.lt.u32.totalorder %s1779_s30, %s2805_s2 }
  0x22   : > { %p1782_p9 = pnand %p2316_p8, %p1780_p7 }
  0x24   : > { %p1783_p10 = pneg %p1782_p9 }
  0x26   : > { %p1788_p12 = pnand %p1786_p11, %p1783_p10 }
  0x28   : > { %1791 = shalt.err (!%p1788_p12)
}
  0x29   : > { %s1792_s28 = scalar_lea.vmem %s2293_s22, 256  ;;  %p1800_p4 = scmp.lt.s32.totalorder %s2293_s22, %s2293_s22 }
  0x2a   : > { %p1793_p13 = scmp.ne.s32.totalorder %s2293_s22, %s1792_s28  ;;  %p1801_p5 = scmp.lt.s32.totalorder %s1792_s28, %s1792_s28 }
  0x2c   : > { %p1795_p0 = pnand %p1793_p13, %p2316_p8  ;;  %p1802_p7 = por %p1801_p5, %p1800_p4 }
  0x2e   : > { %p1796_p2 = pneg %p1795_p0 }
  0x30   : > { %p1803_p9 = pnand %p1802_p7, %p1796_p2 }
  0x32   : > { %1806 = shalt.err (!%p1803_p9)
}
  0x33   : > { %s2791_s29 = smov 64   ;;  %s2175_s30 = smov 4  }
  0x34   : > { %1632 = dma.hbm_to_vmem [thread:$0]  (!%p2300_p6), %s2805_s2, 256, %s2293_s22, [#allocation7], %s2791_s29, %s2791_s29, %s2175_s30  }
  0x35   : > { %s2807_s3 = sld [smem:[#allocation34_spill]] }
  0x3b   : > { %s1807_s28 = scalar_lea.hbm %s2807_s3, 16 }
  0x3c   : > { %p1808_p5 = scmp.ne.s32.totalorder %s2807_s3, %s1807_s28  ;;  %p1814_p12 = scmp.lt.u32.totalorder %s1807_s28, %s2807_s3 }
  0x3e   : > { %p1810_p10 = pnand %p1808_p5, %p2316_p8 }
  0x40   : > { %p1811_p11 = pneg %p1810_p10 }
  0x42   : > { %p1816_p13 = pnand %p1814_p12, %p1811_p11 }
  0x44   : > { %1819 = shalt.err (!%p1816_p13)
}
  0x45   : > { %s1820_s22 = scalar_lea.vmem %s2304_s25, 16  ;;  %s1827_s10 = scalar_lea.vmem %s2304_s25, 32 }
  0x46   : > { %p1821_p0 = scmp.ne.s32.totalorder %s2304_s25, %s1820_s22  ;;  %p1828_p7 = scmp.lt.s32.totalorder %s2304_s25, %s2304_s25 }
  0x47   : > { %p1829_p9 = scmp.lt.s32.totalorder %s1827_s10, %s1820_s22 }
  0x48   : > { %p1823_p2 = pnand %p1821_p0, %p2316_p8 }
  0x49   : > { %p1830_p5 = por %p1829_p9, %p1828_p7 }
  0x4a   : > { %p1824_p4 = pneg %p1823_p2 }
  0x4c   : > { %p1831_p10 = pnand %p1830_p5, %p1824_p4 }
  0x4e   : > { %1834 = shalt.err (!%p1831_p10)
}
  0x4f   : > { %1635 = dma.hbm_to_vmem [thread:$0]  (!%p2300_p6), %s2807_s3, 16, %s2304_s25, [#allocation10]  }
  0x50   : > { %s2808_s5 = sld [smem:[#allocation36_spill]] }
  0x56   : > { %s1835_s12 = scalar_lea.hbm %s2808_s5, 16 }
  0x57   : > { %p1836_p11 = scmp.ne.s32.totalorder %s2808_s5, %s1835_s12  ;;  %p1842_p0 = scmp.lt.u32.totalorder %s1835_s12, %s2808_s5 }
  0x59   : > { %p1838_p12 = pnand %p1836_p11, %p2316_p8 }
  0x5b   : > { %p1839_p13 = pneg %p1838_p12 }
  0x5d   : > { %p1844_p2 = pnand %p1842_p0, %p1839_p13 }
  0x5f   : > { %1847 = shalt.err (!%p1844_p2)
}
  0x60   : > { %s1848_s10 = scalar_lea.vmem %s351_s27, 16  ;;  %s1855_s25 = scalar_lea.vmem %s351_s27, 32 }
  0x61   : > { %p1849_p4 = scmp.ne.s32.totalorder %s351_s27, %s1848_s10  ;;  %p1856_p5 = scmp.lt.s32.totalorder %s351_s27, %s351_s27 }
  0x62   : > { %p1857_p10 = scmp.lt.s32.totalorder %s1855_s25, %s1848_s10 }
  0x63   : > { %p1851_p7 = pnand %p1849_p4, %p2316_p8 }
  0x64   : > { %p1858_p1 = por %p1857_p10, %p1856_p5 }
  0x65   : > { %p1852_p9 = pneg %p1851_p7 }
  0x67   : > { %p1859_p3 = pnand %p1858_p1, %p1852_p9 }
  0x69   : > { %1862 = shalt.err (!%p1859_p3)
}
  0x6a   : > { %1641 = dma.hbm_to_vmem [thread:$0]  (!%p2300_p6), %s2808_s5, 16, %s351_s27, [#allocation13]  }
  0x6b   : > { %s2176_s20 = smov [#allocation15]   ;;  %s2177_s12 = smov [#allocation11]  }
  0x6c   : > { %s374_s11 = sshll.u32 %s2176_s20, 4  ;;  %s336_s24 = sshll.u32 %s2177_s12, 4  ;;  %s375_s11 = int_to_ptr.vmem [resolvable:$true] %s374_s11  ;;  %s337_s24 = int_to_ptr.vmem [resolvable:$true] %s336_s24 }
  0x6d   : > { %s1863_s22 = scalar_lea.hbm %s2782_s7, 16 }
  0x6e   : > { %p1864_p1 = scmp.ne.s32.totalorder %s2782_s7, %s1863_s22  ;;  %p1870_p12 = scmp.lt.u32.totalorder %s1863_s22, %s2782_s7 }
  0x70   : > { %p1866_p3 = pnand %p1864_p1, %p2316_p8 }
  0x72   : > { %p1867_p11 = pneg %p1866_p3 }
  0x74   : > { %p1872_p13 = pnand %p1870_p12, %p1867_p11 }
  0x76   : > { %1875 = shalt.err (!%p1872_p13)
}
  0x77   : > { %s1876_s27 = scalar_lea.vmem %s375_s11, 16  ;;  %s1883_s16 = scalar_lea.vmem %s375_s11, 32 }
  0x78   : > { %p1877_p0 = scmp.ne.s32.totalorder %s375_s11, %s1876_s27  ;;  %p1884_p7 = scmp.lt.s32.totalorder %s375_s11, %s375_s11 }
  0x79   : > { %p1885_p9 = scmp.lt.s32.totalorder %s1883_s16, %s1876_s27 }
  0x7a   : > { %p1879_p2 = pnand %p1877_p0, %p2316_p8 }
  0x7b   : > { %p1886_p5 = por %p1885_p9, %p1884_p7 }
  0x7c   : > { %p1880_p4 = pneg %p1879_p2 }
  0x7e   : > { %p1887_p10 = pnand %p1886_p5, %p1880_p4 }
  0x80   : > { %1890 = shalt.err (!%p1887_p10)
}
  0x81   : > { %1647 = dma.hbm_to_vmem [thread:$0]  (!%p2300_p6), %s2782_s7, 16, %s375_s11, [#allocation16]  }
  0x82   : > { %s2809_s4 = sld [smem:[#allocation35_spill]] }
  0x88   : > { %s1891_s28 = scalar_lea.hbm %s2809_s4, 256 }
  0x89   : > { %p1892_p1 = scmp.ne.s32.totalorder %s2809_s4, %s1891_s28  ;;  %p1898_p12 = scmp.lt.u32.totalorder %s1891_s28, %s2809_s4 }
  0x8b   : > { %p1894_p3 = pnand %p1892_p1, %p2316_p8 }
  0x8d   : > { %p1895_p11 = pneg %p1894_p3 }
  0x8f   : > { %p1900_p13 = pnand %p1898_p12, %p1895_p11 }
  0x91   : > { %1903 = shalt.err (!%p1900_p13)
}
  0x92   : > { %s1904_s27 = scalar_lea.vmem %s337_s24, 256  ;;  %p1912_p7 = scmp.lt.s32.totalorder %s337_s24, %s337_s24 }
  0x93   : > { %p1905_p0 = scmp.ne.s32.totalorder %s337_s24, %s1904_s27  ;;  %p1913_p9 = scmp.lt.s32.totalorder %s1904_s27, %s1904_s27 }
  0x95   : > { %p1907_p2 = pnand %p1905_p0, %p2316_p8  ;;  %p1914_p5 = por %p1913_p9, %p1912_p7 }
  0x97   : > { %p1908_p4 = pneg %p1907_p2 }
  0x99   : > { %p1915_p10 = pnand %p1914_p5, %p1908_p4 }
  0x9b   : > { %1918 = shalt.err (!%p1915_p10)
}
  0x9c   : > { %s2810_s11 = smov 64   ;;  %s2178_s12 = smov [#allocation14]  }
  0x9d   : > { %1638 = dma.hbm_to_vmem [thread:$0]  (!%p2300_p6), %s2809_s4, 256, %s337_s24, [#allocation10], %s2810_s11, %s2810_s11, %s2175_s30  }
  0x9e   : > { %s360_s29 = sshll.u32 %s2178_s12, 4  ;;  %s2179_s26 = smov [#allocation17]   ;;  %s361_s29 = int_to_ptr.vmem [resolvable:$true] %s360_s29 }
  0x9f   : > { %s385_s28 = sshll.u32 %s2179_s26, 4  ;;  %s1919_s25 = scalar_lea.hbm %s2781_s6, 256  ;;  %s386_s28 = int_to_ptr.vmem [resolvable:$true] %s385_s28 }
  0xa0   : > { %p1920_p1 = scmp.ne.s32.totalorder %s2781_s6, %s1919_s25  ;;  %p1926_p12 = scmp.lt.u32.totalorder %s1919_s25, %s2781_s6 }
  0xa2   : > { %p1922_p3 = pnand %p1920_p1, %p2316_p8 }
  0xa4   : > { %p1923_p11 = pneg %p1922_p3 }
  0xa6   : > { %p1928_p13 = pnand %p1926_p12, %p1923_p11 }
  0xa8   : > { %1931 = shalt.err (!%p1928_p13)
}
  0xa9   : > { %s1932_s24 = scalar_lea.vmem %s361_s29, 256  ;;  %p1940_p7 = scmp.lt.s32.totalorder %s361_s29, %s361_s29 }
  0xaa   : > { %p1933_p0 = scmp.ne.s32.totalorder %s361_s29, %s1932_s24  ;;  %p1941_p9 = scmp.lt.s32.totalorder %s1932_s24, %s1932_s24 }
  0xac   : > { %p1935_p2 = pnand %p1933_p0, %p2316_p8  ;;  %p1942_p5 = por %p1941_p9, %p1940_p7 }
  0xae   : > { %p1936_p4 = pneg %p1935_p2 }
  0xb0   : > { %p1943_p10 = pnand %p1942_p5, %p1936_p4 }
  0xb2   : > { %1946 = shalt.err (!%p1943_p10)
}
  0xb3   : > { %1644 = dma.hbm_to_vmem [thread:$0]  (!%p2300_p6), %s2781_s6, 256, %s361_s29, [#allocation13], %s2810_s11, %s2810_s11, %s2175_s30  }
  0xb4   : > { %s1947_s22 = scalar_lea.hbm %s2783_s8, 16 }
  0xb5   : > { %p1948_p1 = scmp.ne.s32.totalorder %s2783_s8, %s1947_s22  ;;  %p1954_p12 = scmp.lt.u32.totalorder %s1947_s22, %s2783_s8 }
  0xb7   : > { %p1950_p3 = pnand %p1948_p1, %p2316_p8 }
  0xb9   : > { %p1951_p11 = pneg %p1950_p3 }
  0xbb   : > { %p1956_p13 = pnand %p1954_p12, %p1951_p11 }
  0xbd   : > { %1959 = shalt.err (!%p1956_p13)
}
  0xbe   : > { %s1960_s16 = scalar_lea.vmem %s386_s28, 16  ;;  %s1967_s30 = scalar_lea.vmem %s386_s28, 32 }
  0xbf   : > { %p1961_p0 = scmp.ne.s32.totalorder %s386_s28, %s1960_s16  ;;  %p1968_p7 = scmp.lt.s32.totalorder %s386_s28, %s386_s28 }
  0xc0   : > { %p1969_p9 = scmp.lt.s32.totalorder %s1967_s30, %s1960_s16 }
  0xc1   : > { %p1963_p2 = pnand %p1961_p0, %p2316_p8 }
  0xc2   : > { %p1970_p5 = por %p1969_p9, %p1968_p7 }
  0xc3   : > { %p1964_p4 = pneg %p1963_p2 }
  0xc5   : > { %p1971_p10 = pnand %p1970_p5, %p1964_p4 }
  0xc7   : > { %1974 = shalt.err (!%p1971_p10)
}
  0xc8   : > { %1650 = dma.hbm_to_vmem [thread:$0]  (!%p2300_p6), %s2783_s8, 16, %s386_s28, [#allocation16]  }
  0xc9   : > { %s2180_s24 = smov [#allocation18]   ;;  %s1975_s26 = scalar_lea.hbm %s2784_s9, 16 }
  0xca   : > { %s396_s2 = sshll.u32 %s2180_s24, 4  ;;  %p1976_p1 = scmp.ne.s32.totalorder %s2784_s9, %s1975_s26  ;;  %s397_s2 = int_to_ptr.vmem [resolvable:$true] %s396_s2 }
  0xcb   : > { %p1982_p12 = scmp.lt.u32.totalorder %s1975_s26, %s2784_s9 }
  0xcc   : > { %p1978_p3 = pnand %p1976_p1, %p2316_p8 }
  0xce   : > { %p1979_p11 = pneg %p1978_p3 }
  0xd0   : > { %p1984_p13 = pnand %p1982_p12, %p1979_p11 }
  0xd2   : > { %1987 = shalt.err (!%p1984_p13)
}
  0xd3   : > { %s1988_s28 = scalar_lea.vmem %s397_s2, 16  ;;  %s1995_s27 = scalar_lea.vmem %s397_s2, 32 }
  0xd4   : > { %p1989_p0 = scmp.ne.s32.totalorder %s397_s2, %s1988_s28  ;;  %p1996_p7 = scmp.lt.s32.totalorder %s397_s2, %s397_s2 }
  0xd5   : > { %p1997_p9 = scmp.lt.s32.totalorder %s1995_s27, %s1988_s28 }
  0xd6   : > { %p1991_p2 = pnand %p1989_p0, %p2316_p8 }
  0xd7   : > { %p1998_p5 = por %p1997_p9, %p1996_p7 }
  0xd8   : > { %p1992_p4 = pneg %p1991_p2 }
  0xda   : > { %p1999_p10 = pnand %p1998_p5, %p1992_p4 }
  0xdc   : > { %2002 = shalt.err (!%p1999_p10)
}
  0xdd   : > { %1653 = dma.hbm_to_vmem [thread:$0]  (!%p2300_p6), %s2784_s9, 16, %s397_s2, [#allocation19]  }
  0xde   : > { %s1439_s21 = sadd.s32 4294967294, %s2169_s18   ;;  %s45_s11 = sadd.s32 1, %s2165_s17 }
  0xdf   : > { %p47_p8 = scmp.ge.s32.totalorder %s45_s11, 2  ;;  %s54_s23 = sadd.s32 1, %s2157_s15 }
  0xe0   : > { %p61_p1 = scmp.ne.s32.totalorder %s2157_s15, %s2153_s14  ;;  %p62_p3 = scmp.eq.s32.totalorder %s2169_s18, 0 }
  0xe1   : > { %s2843_s11 = smov (%p47_p8, %s45_s11), 0  ;;  %p67_p12 = scmp.ne.s32.totalorder %s2153_s14, %s2149_s13 }
  0xe2   : > { %p2487_p11 = por %p62_p3, %p61_p1  ;;  %s49_s24 = ssub.s32 %s2165_s17, %s2843_s11 }
  0xe3   : > { %p287_p6 = scmp.eq.s32.totalorder %s2284_s19, 1  ;;  %p52_p13 = scmp.eq.s32.totalorder %s49_s24, 0 }
  0xe4   : > { %p2812_p0 = scmp.eq.s32.totalorder %s2284_s19, 0  ;;  %p293_p7 = scmp.eq.s32.totalorder %s1439_s21, 1 }
  0xe5   : > { %p2502_p4 = por %p287_p6, %p61_p1  ;;  %p1673_p5 = scmp.lt.s32.totalorder %s2169_s18, 2 }
  0xe6   : > { %p2498_p2 = por %p2812_p0, %p67_p12  ;;  %p2509_p9 = por %p293_p7, %p67_p12 }
  0xe7   : > { %s2814_s20 = scalar_select %p2502_p4, 1, 0 }
  0xe8   : > { %s2507_s12 = scalar_select %p52_p13, %s2157_s15, %s54_s23  }
  0xe9   : > { %s2815_s26 = scalar_select %p2509_p9, 1, 0 }
  0xea   : > { %s2515_s22 = sand.u32 1, %s2157_s15   ;;  %s1451_s10 = sshll.u32 %s2165_s17, 7 }
  0xeb   : > { %s1450_s25 = sshll.u32 %s2515_s22, 3  ;;  %s2816_s0 = sld [smem:[#allocation31_spill]] }
  0xec   : > { %s411_s16 = scalar_lea.vmem [#allocation3], %s1450_s25  ;;  %p2526_p10 = pnand %p1673_p5, %p2487_p11 }
  0xed   : > { %s419_s30 = sshll.u32 %s411_s16, 4  ;;  %s408_s24 = scalar_lea.sflag [#allocation4], %s2515_s22  ;;  %s2530_s30 = int_to_ptr.vmem [resolvable:$true] %s419_s30 }
  0xee   : > { %p2005_p1 = pneg %p2526_p10 }
  0xf1   : > { %s2522_s27 = scalar_lea.hbm %s2816_s0, %s1451_s10  ;;  %s2008_s25 = scalar_lea.hbm %s2816_s0, 256 }
  0xf2   : > { %s2003_s1 = scalar_lea.hbm %s2522_s27, 128  ;;  %p2009_p11 = scmp.lt.u32.totalorder %s2522_s27, %s2816_s0 }
  0xf3   : > { %p2004_p8 = scmp.ne.s32.totalorder %s2522_s27, %s2003_s1  ;;  %p2010_p6 = scmp.lt.u32.totalorder %s2008_s25, %s2003_s1 }
  0xf4   : > { %p2012_p0 = scmp.lt.u32.totalorder %s2003_s1, %s2522_s27 }
  0xf5   : > { %p2006_p3 = pnand %p2005_p1, %p2004_p8  ;;  %p2011_p13 = por %p2010_p6, %p2009_p11 }
  0xf7   : > { %p2007_p12 = pneg %p2006_p3  ;;  %p2013_p7 = por %p2012_p0, %p2011_p13 }
  0xf9   : > { %p2014_p5 = pnand %p2013_p7, %p2007_p12 }
  0xfb   : > { %2017 = shalt.err (!%p2014_p5)
}
  0xfc   : > { %s2018_s23 = scalar_lea.vmem %s2530_s30, 128  ;;  %s2181_s10 = smov [#allocation3]  }
  0xfd   : > { %p2019_p8 = scmp.ne.s32.totalorder %s2530_s30, %s2018_s23  ;;  %s2023_s29 = sshll.u32 %s2181_s10, 4  ;;  %s2024_s29 = int_to_ptr.vmem [resolvable:$false] %s2023_s29 }
  0xfe   : > { %s2025_s28 = scalar_lea.vmem %s2024_s29, 256  ;;  %p2026_p4 = scmp.lt.s32.totalorder %s2530_s30, %s2024_s29 }
  0xff   : > { %p2021_p3 = pnand %p2019_p8, %p2005_p1  ;;  %p2027_p11 = scmp.lt.s32.totalorder %s2025_s28, %s2018_s23 }
 0x101   : > { %p2022_p9 = pneg %p2021_p3  ;;  %p2028_p6 = por %p2027_p11, %p2026_p4 }
 0x103   : > { %p2029_p13 = pnand %p2028_p6, %p2022_p9 }
 0x105   : > { %2032 = shalt.err (!%p2029_p13)
}
 0x106   : > { %1657 = dma.hbm_to_vmem [thread:$0]  (!%p2526_p10), %s2522_s27, 128, %s2530_s30, %s408_s24  }
 0x107   : > { %s1493_s1 = sshll.u32 %s2165_s17, 8  ;;  %s2818_s25 = sshll.u32 %s2515_s22, 4 }
 0x108   : > { %s430_s16 = scalar_lea.vmem [#allocation6], %s2818_s25  ;;  %s426_s29 = sand.u32 1, %s2169_s18  }
 0x109   : > { %s437_s10 = sshll.u32 %s430_s16, 4  ;;  %s2819_s0 = sld [smem:[#allocation32_spill]]  ;;  %s2562_s10 = int_to_ptr.vmem [resolvable:$true] %s437_s10 }
 0x10a   : > { %s2570_s4 = scalar_lea.sflag [#allocation7], %s426_s29 }
 0x10f   : > { %s2568_s3 = scalar_lea.hbm %s2819_s0, %s1493_s1  ;;  %s2038_s30 = scalar_lea.hbm %s2819_s0, 512 }
 0x110   : > { %s2033_s5 = scalar_lea.hbm %s2568_s3, 256  ;;  %p2039_p0 = scmp.lt.u32.totalorder %s2568_s3, %s2819_s0 }
 0x111   : > { %p2034_p4 = scmp.ne.s32.totalorder %s2568_s3, %s2033_s5  ;;  %p2040_p7 = scmp.lt.u32.totalorder %s2038_s30, %s2033_s5 }
 0x112   : > { %p2042_p8 = scmp.lt.u32.totalorder %s2033_s5, %s2568_s3 }
 0x113   : > { %p2036_p9 = pnand %p2034_p4, %p2005_p1  ;;  %p2041_p5 = por %p2040_p7, %p2039_p0 }
 0x115   : > { %p2037_p12 = pneg %p2036_p9  ;;  %p2043_p3 = por %p2042_p8, %p2041_p5 }
 0x117   : > { %p2044_p11 = pnand %p2043_p3, %p2037_p12 }
 0x119   : > { %2047 = shalt.err (!%p2044_p11)
}
 0x11a   : > { %s2048_s1 = scalar_lea.vmem %s2562_s10, 256  ;;  %s2182_s16 = smov [#allocation6]  }
 0x11b   : > { %p2049_p6 = scmp.ne.s32.totalorder %s2562_s10, %s2048_s1  ;;  %s2053_s29 = sshll.u32 %s2182_s16, 4  ;;  %s2054_s29 = int_to_ptr.vmem [resolvable:$false] %s2053_s29 }
 0x11c   : > { %s2055_s23 = scalar_lea.vmem %s2054_s29, 512  ;;  %p2056_p9 = scmp.lt.s32.totalorder %s2562_s10, %s2054_s29 }
 0x11d   : > { %p2051_p13 = pnand %p2049_p6, %p2005_p1  ;;  %p2057_p0 = scmp.lt.s32.totalorder %s2055_s23, %s2048_s1 }
 0x11f   : > { %p2052_p4 = pneg %p2051_p13  ;;  %p2058_p7 = por %p2057_p0, %p2056_p9 }
 0x121   : > { %p2059_p5 = pnand %p2058_p7, %p2052_p4 }
 0x123   : > { %2062 = shalt.err (!%p2059_p5)
}
 0x124   : > { %s2183_s5 = smov 128   ;;  %s2184_s28 = smov 8  }
 0x125   : > { %1660 = dma.hbm_to_vmem [thread:$0]  (!%p2526_p10), %s2568_s3, 256, %s2562_s10, %s2570_s4, %s2183_s5, %s2183_s5, %s2184_s28  }
 0x126   : > { %s2820_s22 = sld [smem:[#allocation30_spill]] }
 0x12c   : > { %p2821_p1 = scmp.ne.s32.totalorder %s2820_s22, 0 }
 0x12d   : > { %s2599_s27 = sand.u32 (!%p2821_p1), 1, %s2153_s14  }
 0x12e   : > { %449 = sbr.rel (%p2821_p1) target bundleno = 2115 (0x843), region = 60  ;;  %s1456_s30 = sshll.u32 (!%p2821_p1), %s2599_s27, 3 }
 0x12f   : > { %s452_s24 = scalar_lea.sflag (!%p2821_p1), [#allocation4], %s2599_s27  ;;  %s2605_s25 = scalar_lea.vmem (!%p2821_p1), [#allocation3], %s1456_s30 }
 0x135   : > { %2116 = dma.done.wait (%p2498_p2), %s452_s24, 128  }
 0x136   : > { %2118 = vsyncadd (%p2498_p2), %s452_s24, 4294967168  ;;  %s460_s3 = sand.u32 1, %s2284_s19   ;;  %s1457_s4 = sshll.u32 %s2599_s27, 4 }
 0x137   : > { %s461_s21 = scalar_lea.sflag [#allocation7], %s460_s3  ;;  %s464_s10 = scalar_lea.vmem [#allocation6], %s1457_s4 }
 0x138   : > { %2120 = dma.done.wait (%p2498_p2), %s461_s21, 256  }
 0x139   : > { %2122 = vsyncadd (%p2498_p2), %s461_s21, 4294967040  ;;  %p2822_p10 = scmp.eq.s32.totalorder %s2284_s19, 0 }
 0x13b   : > { %2124 = dma.done.wait (%p2822_p10), [#allocation7], 256   ;;  %p2823_p12 = pmov %p2822_p10 }
 0x13c   : > { %p2824_p8 = pmov %p2822_p10 }
 0x13d   : > { %2126 = vsyncadd (%p2823_p12), [#allocation7], 4294967040 }
 0x13e   : > { %2128 = dma.done.wait (%p2824_p8), [#allocation10], 272   ;;  %p2825_p3 = pmov %p2824_p8 }
 0x140   : > { %2130 = vsyncadd (%p2825_p3), [#allocation10], 4294967024  ;;  %p2826_p11 = pmov %p2825_p3 }
 0x141   : > { %p2827_p6 = pmov %p2825_p3 }
 0x142   : > { %2132 = dma.done.wait (%p2826_p11), [#allocation13], 272  }
 0x143   : > { %2134 = vsyncadd (%p2827_p6), [#allocation13], 4294967024  ;;  %p2828_p2 = pmov %p2825_p3 }
 0x145   : > { %2136 = dma.done.wait (%p2828_p2), [#allocation16], 32   ;;  %p2829_p13 = pmov %p2828_p2 }
 0x146   : > { %p2830_p4 = pmov %p2828_p2 }
 0x147   : > { %2138 = vsyncadd (%p2829_p13), [#allocation16], 4294967264 }
 0x148   : > { %2140 = dma.done.wait (%p2830_p4), [#allocation19], 16   ;;  %p2831_p9 = pmov %p2828_p2 }
 0x149   : > { %v2185_v0 = vmov 0.0   ;;  %vm2186_vm0 = vmmov 0   ;;  %v1755_v1 = vld [vmem:[#allocation11] sm:$0xff]   ;;  %v1756_v2 = vld [vmem:[#allocation11 + $0x8] sm:$0xff]   ;;  %v1758_v6 = vld [vmem:[#allocation8 + $0x8] sm:$0xff]   ;;  %vm566_vm1 = vcmask 261120  }
 0x14a   : > { %2142 = vsyncadd (%p2831_p9), [#allocation19], 4294967280  ;;  %1527 = vmatprep.subr.bf16.mxu1 %v2185_v0  ;;  %1519 = vmatprep.subr.bf16.mxu0 %v2185_v0  ;;  %v1757_v3 = vld [vmem:[#allocation8] sm:$0xff]   ;;  %v541_v5 = vld [vmem:[%s464_s10 + $0x8] sm:$0xf]  ;;  %vm680_vm2 = vcmask 64512  }
 0x14b   : > { %1531 = vmatprep.mubr.msk.bf16.mxu1 %vm2186_vm0, %v2185_v0  ;;  %1523 = vmatprep.mubr.msk.bf16.mxu0 %vm2186_vm0, %v2185_v0  ;;  %v540_v4 = vld [vmem:[%s464_s10] sm:$0xff]  ;;  %v2645_v7 = vld [vmem:[%s2605_s25] sm:$0xff]  ;;  %s2187_s19 = smov 112   ;;  %s2188_s2 = smov 120   ;;  %vm728_vm3 = vcmask 97280   ;;  %vm747_vm4 = vcmask 1045504  }
 0x14c   : > { %1528 = vmatpush3.bf16.msra.mxu1 %v1755_v1  ;;  %1520 = vmatpush3.bf16.msra.mxu0 %v1757_v3  ;;  %v610_v8 = vpack.c.bf16 %v541_v5, %v540_v4  ;;  %v542_v9 = vpack.c.bf16 %v2645_v7, %v2645_v7  ;;  %v1471_v10 = vld [vmem:[#allocation12] ss:$0 sm:$0xff]  ;;  %v1467_v12 = vld [vmem:[#allocation9] ss:$0 sm:$0xff]  ;;  %s2189_s1 = smov 104   ;;  %s2190_s16 = smov 96  }
 0x14d   : > { %1529 = vmatprep.subr.bf16.mxu1 %v2185_v0  ;;  %1521 = vmatprep.subr.bf16.mxu0 %v2185_v0  ;;  %s2191_s29 = smov 80   ;;  %s2192_s23 = smov 72   ;;  %vm908_vm5 = vcmask 130112   ;;  %vm1025_vm6 = vcmask 195712   ;;  %vm1142_vm7 = vcmask 261312  }
 0x14e   : > { %s2193_s5 = smov 88   ;;  %s2194_s28 = smov 8  }
 0x14f   : > { %s2195_s22 = smov 16   ;;  %s2196_s24 = smov 24  }
 0x150   : > { %1530 = vmatpush3.bf16.msra.mxu1 %v1756_v2  ;;  %1522 = vmatpush3.bf16.msra.mxu0 %v1758_v6  ;;  %s2832_s25 = sld [smem:[#allocation29_spill]]  ;;  %s537_s4 = scalar_lea.vmem [#allocation20], %s1456_s30 }
 0x151   : > { %1541 = vmatprep.subr.bf16.mxu1 %v2185_v0  ;;  %1535 = vmatprep.subr.bf16.mxu0 %v2185_v0  ;;  %s1259_s21 = sshll.u32 %s537_s4, 4  ;;  %p2834_p7 = scmp.ne.s32.totalorder %s2814_s20, 0  ;;  %s2727_s21 = int_to_ptr.vmem [resolvable:$true] %s1259_s21 }
 0x152   : > { %s2197_s30 = smov [#allocation20]  }
 0x153   : > { %1532 = vmatmul.mubr.msk.bf16.vlgmr.msra.gmra.mrb[0].mxu1 %vm566_vm1, %v610_v8  ;;  %1524 = vmatmul.mubr.msk.bf16.vlgmr.msra.gmra.mrb[0].mxu0 %vm566_vm1, %v542_v9 }
 0x154   : > { %1543 = vmatprep.mubr.msk.bf16.mxu1 %vm2186_vm0, %v2185_v0  ;;  %1537 = vmatprep.mubr.msk.bf16.mxu0 %vm2186_vm0, %v2185_v0 }
 0x156   : > { %s1490_s3 = sshll.u32 %s2832_s25, 7 }
 0x226   : > { %v671_v11 = vpop.f32.mrb[0].mxu1  ;;  %v604_v15 = vpop.f32.mrb[0].mxu0 }
 0x227   : > { %v1533_v13 = vpop.f32.mrb[1].mxu1  ;;  %v672_v16 = vadd.f32 %v1471_v10, %v671_v11  ;;  %v605_v19 = vadd.f32 %v1467_v12, %v604_v15  ;;  %v1525_v20 = vpop.f32.mrb[1].mxu0 }
 0x228   : > { %v674_v14 = vpop.f32.mrb[2].mxu1  ;;  %v607_v21 = vpop.f32.mrb[2].mxu0 }
 0x229   : > { %v675_v17 = vadd.f32 %v1471_v10, %v674_v14  ;;  %v1534_v18 = vpop.f32.mrb[3].mxu1  ;;  %v1526_v23 = vpop.f32.mrb[3].mxu0  ;;  %v678_v24 = vpack.c.bf16 %v605_v19, %v605_v19 }
 0x22b   : > { %v2658_v22 = vpack.c.bf16 %v675_v17, %v672_v16 }
 0x22d   : > { %912 = vrot.lane.b32.xlu1 %v2658_v22, %s2187_s19  ;;  %795 = vrot.lane.b32.xlu0 %v2658_v22, %s2188_s2  ;;  %v685_v25 = vsel %vm680_vm2, %v2658_v22, 0 }
 0x22e   : > { %1536 = vmatpush3.bf16.xpose.msra.mxu0 %v685_v25 }
 0x22f   : > { %1547 = vmatprep.subr.bf16.mxu0 %v2185_v0 }
 0x231   : > { %910 = vrot.lane.b32.xlu1 %v678_v24, %s2187_s19  ;;  %793 = vrot.lane.b32.xlu0 %v678_v24, %s2188_s2  ;;  %s2833_s2 = sld [smem:[#allocation37_spill]] }
 0x235   : > { %1027 = vrot.lane.b32.xlu1 %v678_v24, %s2189_s1  ;;  %1029 = vrot.lane.b32.xlu0 %v2658_v22, %s2189_s1 }
 0x236   : > { %1538 = vmatmul.mubr.msk.bf16.vlgmr.msra.gmra.mrb[4].mxu0 %vm680_vm2, %v678_v24 }
 0x237   : > { %1549 = vmatprep.mubr.msk.bf16.mxu0 %vm2186_vm0, %v2185_v0  ;;  %s2725_s1 = scalar_lea.hbm %s2833_s2, %s1490_s3 }
 0x29f   : > { %v796_v26 = vpop.permute.xlu0 %795  ;;  %v913_v28 = vpop.permute.xlu1 %912 }
 0x2a0   : > { %v801_v27 = vsel %vm680_vm2, %v796_v26, 0  ;;  %v918_v30 = vsel %vm680_vm2, %v913_v28, 0 }
 0x2a1   : > { %1548 = vmatpush3.bf16.xpose.msra.mxu0 %v801_v27 }
 0x2a2   : > { %1559 = vmatprep.subr.bf16.mxu0 %v2185_v0 }
 0x2a3   : > { %v794_v29 = vpop.permute.xlu0 %793  ;;  %v911_v32 = vpop.permute.xlu1 %910 }
 0x2a7   : > { %v1030_v31 = vpop.permute.xlu0 %1029  ;;  %v1028_v34 = vpop.permute.xlu1 %1027 }
 0x2a8   : > { %1550 = vmatmul.mubr.msk.bf16.vlgmr.msra.gmra.mrb[8].mxu0 %vm680_vm2, %v794_v29  ;;  %v1035_v33 = vsel %vm680_vm2, %v1030_v31, 0 }
 0x2a9   : > { %1560 = vmatpush3.bf16.xpose.msra.mxu0 %v918_v30  ;;  %1561 = vmatprep.mubr.msk.bf16.mxu0 %vm2186_vm0, %v2185_v0 }
 0x2aa   : > { %1571 = vmatprep.subr.bf16.mxu0 %v2185_v0 }
 0x2b0   : > { %1562 = vmatmul.mubr.msk.bf16.vlgmr.msra.gmra.mrb[12].mxu0 %vm680_vm2, %v911_v32 }
 0x2b1   : > { %1572 = vmatpush3.bf16.xpose.msra.mxu0 %v1035_v33  ;;  %1573 = vmatprep.mubr.msk.bf16.mxu0 %vm2186_vm0, %v2185_v0 }
 0x2b2   : > { %1583 = vmatprep.subr.bf16.mxu0 %v2185_v0 }
 0x2b8   : > { %1574 = vmatmul.mubr.msk.bf16.vlgmr.msra.gmra.mrb[16].mxu0 %vm680_vm2, %v1028_v34 }
 0x2b9   : > { %1587 = vmatprep.mubr.msk.bf16.mxu0 %vm2186_vm0, %v2185_v0 }
 0x309   : > { %v721_v35 = vpop.f32.mrb[4].mxu0 }
 0x30a   : > { %v727_v36 = vmul.f32 0.35355338, %v721_v35  ;;  %v1539_v37 = vpop.f32.mrb[5].mxu0 }
 0x30b   : > { %v724_v38 = vpop.f32.mrb[6].mxu0 }
 0x30c   : > { %v1540_v39 = vpop.f32.mrb[7].mxu0  ;;  %v729_v40 = vsel %vm728_vm3, %v727_v36, -inf }
 0x30d   : > { %730 = vmax.xlane.f32.xlu0 %v729_v40 }
 0x37b   : > { %v837_v41 = vpop.f32.mrb[8].mxu0 }
 0x37c   : > { %v843_v42 = vmul.f32 0.35355338, %v837_v41  ;;  %v1551_v43 = vpop.f32.mrb[9].mxu0 }
 0x37d   : > { %v840_v44 = vpop.f32.mrb[10].mxu0 }
 0x37e   : > { %v1552_v45 = vpop.f32.mrb[11].mxu0  ;;  %v844_v46 = vsel %vm728_vm3, %v843_v42, -inf }
 0x37f   : > { %845 = vmax.xlane.f32.xlu1 %v844_v46 }
 0x383   : > { %v954_v47 = vpop.f32.mrb[12].mxu0 }
 0x384   : > { %v960_v48 = vmul.f32 0.35355338, %v954_v47  ;;  %v1563_v49 = vpop.f32.mrb[13].mxu0 }
 0x385   : > { %v957_v50 = vpop.f32.mrb[14].mxu0  ;;  %v1759_v49 = vld [vmem:[#allocation14] sm:$0xff]  }
 0x386   : > { %v1564_v51 = vpop.f32.mrb[15].mxu0  ;;  %v961_v52 = vsel %vm728_vm3, %v960_v48, -inf  ;;  %1584 = vmatpush3.bf16.msra.mxu0 %v1759_v49  ;;  %v1760_v50 = vld [vmem:[#allocation14 + $0x8] sm:$0xff]  }
 0x387   : > { %962 = vmax.xlane.f32.xlu0 %v961_v52  ;;  %1585 = vmatprep.subr.bf16.mxu0 %v2185_v0 }
 0x38a   : > { %1586 = vmatpush3.bf16.msra.mxu0 %v1760_v50 }
 0x38b   : > { %v1071_v53 = vpop.f32.mrb[16].mxu0 }
 0x38c   : > { %v1077_v54 = vmul.f32 0.35355338, %v1071_v53  ;;  %v1575_v55 = vpop.f32.mrb[17].mxu0 }
 0x38d   : > { %v1074_v56 = vpop.f32.mrb[18].mxu0 }
 0x38e   : > { %v1576_v57 = vpop.f32.mrb[19].mxu0  ;;  %v1078_v58 = vsel %vm728_vm3, %v1077_v54, -inf }
 0x38f   : > { %1079 = vmax.xlane.f32.xlu0 %v1078_v58 }
 0x39a   : > { %v731_v59 = vpop.xlane.xlu0 %730 }
 0x39b   : > { %v732_v60 = vsub.f32 %v727_v36, %v731_v59 }
 0x39d   : > { %v733_v61 = vmul.f32 1.442695, %v732_v60 }
 0x39f   : > { %1761 = vpow2.f32 %v733_v61 }
 0x3a9   : > { %v1762_v62 = vpop.eup %1761 }
 0x3aa   : > { %v735_v63 = vsel %vm728_vm3, %v1762_v62, 0.0 }
 0x3ab   : > { %736 = vadd.xlane.f32.xlu1 %v735_v63  ;;  %v1483_v63 = vld [vmem:[#allocation15] ss:$0 sm:$0xff] }
 0x3bc   : > { %742 = vrot.lane.b32.xlu1 %v2658_v22, %s2190_s16  ;;  %s1245_s16 = scalar_lea.sflag [#allocation5], %s2599_s27 }
 0x40c   : > { %v846_v1 = vpop.xlane.xlu1 %845 }
 0x40d   : > { %v847_v2 = vsub.f32 %v843_v42, %v846_v1 }
 0x40f   : > { %v848_v3 = vmul.f32 1.442695, %v847_v2 }
 0x411   : > { %1763 = vpow2.f32 %v848_v3 }
 0x414   : > { %v963_v4 = vpop.xlane.xlu0 %962 }
 0x415   : > { %v964_v5 = vsub.f32 %v960_v48, %v963_v4 }
 0x417   : > { %v965_v6 = vmul.f32 1.442695, %v964_v5 }
 0x419   : > { %1765 = vpow2.f32 %v965_v6 }
 0x41b   : > { %v1764_v8 = vpop.eup %1763 }
 0x41c   : > { %v1080_v9 = vpop.xlane.xlu0 %1079  ;;  %v850_v10 = vsel %vm728_vm3, %v1764_v8, 0.0 }
 0x41d   : > { %v1081_v11 = vsub.f32 %v1077_v54, %v1080_v9  ;;  %851 = vadd.xlane.f32.xlu0 %v850_v10 }
 0x41f   : > { %v1082_v12 = vmul.f32 1.442695, %v1081_v11 }
 0x421   : > { %1767 = vpow2.f32 %v1082_v12 }
 0x423   : > { %v1766_v13 = vpop.eup %1765 }
 0x424   : > { %v967_v14 = vsel %vm728_vm3, %v1766_v13, 0.0 }
 0x425   : > { %968 = vadd.xlane.f32.xlu1 %v967_v14 }
 0x42b   : > { %v1768_v15 = vpop.eup %1767 }
 0x42c   : > { %v1084_v16 = vsel %vm728_vm3, %v1768_v15, 0.0 }
 0x42d   : > { %1085 = vadd.xlane.f32.xlu0 %v1084_v16 }
 0x436   : > { %973 = vrot.lane.b32.xlu1 %v2658_v22, %s2191_s29  ;;  %s2063_s29 = scalar_lea.vmem %s2727_s21, 128 }
 0x437   : > { %p2064_p0 = scmp.ne.s32.totalorder %s2727_s21, %s2063_s29 }
 0x438   : > { %v737_v17 = vpop.xlane.xlu1 %736 }
 0x439   : > { %1769 = vrcp.f32 %v737_v17  ;;  %p2065_p5 = pnand %p2064_p0, %p2834_p7 }
 0x43a   : > { %1090 = vrot.lane.b32.xlu1 %v2658_v22, %s2192_s23  ;;  %s2067_s23 = sshll.u32 %s2197_s30, 4  ;;  %s2068_s23 = int_to_ptr.vmem [resolvable:$false] %s2067_s23 }
 0x43b   : > { %p2066_p1 = pneg %p2065_p5  ;;  %p2070_p10 = scmp.lt.s32.totalorder %s2727_s21, %s2068_s23 }
 0x43c   : > { %v743_v18 = vpop.permute.xlu1 %742 }
 0x43d   : > { %v749_v19 = vsel %vm747_vm4, %v743_v18, 0 }
 0x43e   : > { %1542 = vmatpush3.bf16.msra.mxu1 %v749_v19  ;;  %v1488_v19 = vld [vmem:[#allocation18] ss:$0 sm:$0xff] }
 0x43f   : > { %1553 = vmatprep.subr.bf16.mxu1 %v2185_v0 }
 0x443   : > { %v1770_v20 = vpop.eup %1769  ;;  %856 = vrot.lane.b32.xlu0 %v2658_v22, %s2193_s5  ;;  %s2069_s5 = scalar_lea.vmem %s2068_s23, 256 }
 0x444   : > { %v739_v21 = vmul.f32 %v1770_v20, %v1762_v62  ;;  %p2071_p12 = scmp.lt.s32.totalorder %s2069_s5, %s2063_s29 }
 0x446   : > { %v740_v23 = vpack.c.bf16 %v739_v21, %v739_v21  ;;  %p2072_p8 = por %p2071_p12, %p2070_p10 }
 0x448   : > { %1544 = vmatmul.mubr.msk.bf16.vlgmr.msra.gmra.mrb[4].mxu1 %vm728_vm3, %v740_v23  ;;  %p2073_p3 = pnand %p2072_p8, %p2066_p1 }
 0x449   : > { %1555 = vmatprep.mubr.msk.bf16.mxu1 %vm2186_vm0, %v2185_v0 }
 0x4aa   : > { %v852_v24 = vpop.xlane.xlu0 %851 }
 0x4ab   : > { %1771 = vrcp.f32 %v852_v24 }
 0x4b2   : > { %v969_v25 = vpop.xlane.xlu1 %968 }
 0x4b3   : > { %1773 = vrcp.f32 %v969_v25 }
 0x4b5   : > { %v1772_v26 = vpop.eup %1771 }
 0x4b6   : > { %v854_v28 = vmul.f32 %v1772_v26, %v1764_v8  ;;  %v974_v31 = vpop.permute.xlu1 %973 }
 0x4b7   : > { %v979_v33 = vsel %vm747_vm4, %v974_v31, 0 }
 0x4b8   : > { %v855_v22 = vpack.c.bf16 %v854_v28, %v854_v28 }
 0x4ba   : > { %v1086_v27 = vpop.xlane.xlu0 %1085  ;;  %v1091_v35 = vpop.permute.xlu1 %1090 }
 0x4bb   : > { %1775 = vrcp.f32 %v1086_v27  ;;  %v1096_v38 = vsel %vm747_vm4, %v1091_v35, 0 }
 0x4bd   : > { %v1774_v32 = vpop.eup %1773 }
 0x4be   : > { %v857_v29 = vpop.permute.xlu0 %856  ;;  %v971_v34 = vmul.f32 %v1774_v32, %v1766_v13 }
 0x4bf   : > { %v862_v30 = vsel %vm747_vm4, %v857_v29, 0 }
 0x4c0   : > { %1554 = vmatpush3.bf16.msra.mxu1 %v862_v30  ;;  %v972_v36 = vpack.c.bf16 %v971_v34, %v971_v34 }
 0x4c1   : > { %1565 = vmatprep.subr.bf16.mxu1 %v2185_v0 }
 0x4c3   : > { %1556 = vmatmul.mubr.msk.bf16.vlgmr.msra.gmra.mrb[8].mxu1 %vm728_vm3, %v855_v22 }
 0x4c4   : > { %1566 = vmatpush3.bf16.msra.mxu1 %v979_v33  ;;  %1567 = vmatprep.mubr.msk.bf16.mxu1 %vm2186_vm0, %v2185_v0 }
 0x4c5   : > { %1577 = vmatprep.subr.bf16.mxu1 %v2185_v0  ;;  %v1776_v37 = vpop.eup %1775 }
 0x4c6   : > { %v1088_v39 = vmul.f32 %v1776_v37, %v1768_v15 }
 0x4c8   : > { %v1089_v40 = vpack.c.bf16 %v1088_v39, %v1088_v39 }
 0x4cb   : > { %1568 = vmatmul.mubr.msk.bf16.vlgmr.msra.gmra.mrb[12].mxu1 %vm728_vm3, %v972_v36 }
 0x4cc   : > { %1578 = vmatpush3.bf16.msra.mxu1 %v1096_v38  ;;  %1579 = vmatprep.mubr.msk.bf16.mxu1 %vm2186_vm0, %v2185_v0 }
 0x4d3   : > { %1580 = vmatmul.mubr.msk.bf16.vlgmr.msra.gmra.mrb[16].mxu1 %vm728_vm3, %v1089_v40 }
 0x51b   : > { %v785_v41 = vpop.f32.mrb[4].mxu1 }
 0x51c   : > { %791 = vst.msk [vmem:[#allocation2] sm:$0xff] %vm680_vm2, %v785_v41  ;;  %v1545_v42 = vpop.f32.mrb[5].mxu1 }
 0x51d   : > { %v788_v43 = vpop.f32.mrb[6].mxu1 }
 0x51e   : > { %v1546_v44 = vpop.f32.mrb[7].mxu1 }
 0x596   : > { %v898_v45 = vpop.f32.mrb[8].mxu1 }
 0x597   : > { %905 = vrot.lane.b32.xlu0 %v898_v45, %s2194_s28  ;;  %v1557_v46 = vpop.f32.mrb[9].mxu1 }
 0x598   : > { %v901_v47 = vpop.f32.mrb[10].mxu1 }
 0x599   : > { %v1558_v48 = vpop.f32.mrb[11].mxu1 }
 0x59e   : > { %v1015_v51 = vpop.f32.mrb[12].mxu1 }
 0x59f   : > { %1022 = vrot.lane.b32.xlu1 %v1015_v51, %s2195_s22  ;;  %v1569_v52 = vpop.f32.mrb[13].mxu1 }
 0x5a0   : > { %v1018_v53 = vpop.f32.mrb[14].mxu1 }
 0x5a1   : > { %v1570_v54 = vpop.f32.mrb[15].mxu1 }
 0x5a6   : > { %v1132_v55 = vpop.f32.mrb[16].mxu1 }
 0x5a7   : > { %1139 = vrot.lane.b32.xlu0 %v1132_v55, %s2196_s24  ;;  %v1581_v56 = vpop.f32.mrb[17].mxu1 }
 0x5a8   : > { %v1135_v57 = vpop.f32.mrb[18].mxu1 }
 0x5a9   : > { %v1582_v58 = vpop.f32.mrb[19].mxu1 }
 0x609   : > { %v906_v59 = vpop.permute.xlu0 %905 }
 0x60a   : > { %909 = vst.msk [vmem:[#allocation2] sm:$0xff] %vm908_vm5, %v906_v59 }
 0x611   : > { %v1023_v60 = vpop.permute.xlu1 %1022 }
 0x612   : > { %1026 = vst.msk [vmem:[#allocation2] sm:$0xff] %vm1025_vm6, %v1023_v60 }
 0x619   : > { %v1140_v0 = vpop.permute.xlu0 %1139 }
 0x61a   : > { %1143 = vst.msk [vmem:[#allocation2] sm:$0xff] %vm1142_vm7, %v1140_v0 }
 0x621   : > { %v1144_v61 = vld [vmem:[#allocation2] sm:$0xff] }
 0x622   : > { %v1145_v62 = vpack.c.bf16 %v1144_v61, %v1144_v61 }
 0x624   : > { %1588 = vmatmul.mubr.msk.bf16.vlgmr.msra.gmra.mrb[20].mxu0 %vm566_vm1, %v1145_v62 }
 0x6f7   : > { %v1206_v1 = vpop.f32.mrb[20].mxu0 }
 0x6f8   : > { %v1207_v2 = vadd.f32 %v1483_v63, %v1206_v1  ;;  %v1589_v3 = vpop.f32.mrb[21].mxu0 }
 0x6f9   : > { %v1209_v4 = vpop.f32.mrb[22].mxu0 }
 0x6fa   : > { %v1590_v5 = vpop.f32.mrb[23].mxu0  ;;  %v1212_v6 = vadd.f32 %v1207_v2, %v2645_v7  ;;  %v1487_v7 = vld [vmem:[#allocation17] ss:$0 sm:$0xff] }
 0x6fc   : > { %v1215_v8 = vsel %vm566_vm1, %v1212_v6, 0.0 }
 0x6fd   : > { %1216 = vadd.xlane.f32.xlu1 %v1215_v8 }
 0x78a   : > { %v1217_v9 = vpop.xlane.xlu1 %1216 }
 0x78b   : > { %v1219_v10 = vmul.f32 0.03125, %v1217_v9 }
 0x78d   : > { %v1220_v11 = vsub.f32 %v1212_v6, %v1219_v10 }
 0x78f   : > { %v1221_v12 = vmul.f32 %v1220_v11, %v1220_v11 }
 0x791   : > { %v1222_v13 = vsel %vm566_vm1, %v1221_v12, 0.0 }
 0x792   : > { %1223 = vadd.xlane.f32.xlu0 %v1222_v13 }
 0x81f   : > { %v1224_v14 = vpop.xlane.xlu0 %1223 }
 0x820   : > { %v1225_v15 = vmul.f32 0.03125, %v1224_v14 }
 0x822   : > { %v1226_v16 = vadd.f32 1e-05, %v1225_v15 }
 0x824   : > { %1777 = vrsqrt.f32 %v1226_v16 }
 0x82e   : > { %v1778_v17 = vpop.eup %1777 }
 0x82f   : > { %v1228_v18 = vmul.f32 %v1778_v17, %v1220_v11 }
 0x831   : > { %v1235_v20 = vmul.f32 %v1487_v7, %v1228_v18 }
 0x833   : > { %v1242_v21 = vadd.f32 %v1488_v19, %v1235_v20 }
 0x835   : > { %1243 = vst.msk [vmem:[%s537_s4] sm:$0xff] %vm566_vm1, %v1242_v21 }
 0x836   : > { %2076 = shalt.err (!%p2073_p3)
}
 0x837   : > { %s2077_s27 = scalar_lea.hbm %s2725_s1, 128  ;;  %s2081_s24 = scalar_lea.hbm %s2833_s2, 256 }
 0x838   : > { %p2078_p11 = scmp.ne.s32.totalorder %s2725_s1, %s2077_s27  ;;  %p2082_p13 = scmp.lt.u32.totalorder %s2725_s1, %s2833_s2 }
 0x839   : > { %p2083_p4 = scmp.lt.u32.totalorder %s2081_s24, %s2077_s27  ;;  %p2085_p0 = scmp.lt.u32.totalorder %s2077_s27, %s2725_s1 }
 0x83a   : > { %p2079_p6 = pnand %p2078_p11, %p2834_p7 }
 0x83b   : > { %p2084_p9 = por %p2083_p4, %p2082_p13 }
 0x83c   : > { %p2080_p2 = pneg %p2079_p6 }
 0x83d   : > { %p2086_p5 = por %p2085_p0, %p2084_p9 }
 0x83f   : > { %p2087_p1 = pnand %p2086_p5, %p2080_p2 }
 0x841   : > { %2090 = shalt.err (!%p2087_p1)
}
 0x842   : > { %1627 = dma.vmem_to_hbm [thread:$0]  (%p2834_p7), %s2727_s21, 128, %s2725_s1, %s1245_s16  }
 0x843 PF: > { %s1271_s4 = sand.u32 1, %s2149_s13   ;;  %p2835_p10 = scmp.ne.s32.totalorder %s2815_s26, 0 }
 0x844   : > { %p2836_p12 = scmp.ge.s32.totalorder %s2169_s18, 2  ;;  %s1272_s10 = scalar_lea.sflag [#allocation5], %s1271_s4 }
 0x846   : > { %p1662_p8 = pnand %p2836_p12, %p2835_p10 }
 0x848   : > { %2144 = dma.done.wait (!%p1662_p8), %s1272_s10, 128  }
 0x849   : > { %2146 = vsyncadd (!%p1662_p8), %s1272_s10, 4294967168  ;;  %s33_s18 = sadd.s32 1, %s2169_s18   ;;  %s2837_s13 = smov %s2153_s14 }
 0x84a   : > { %p30_p3 = scmp.ge.s32.totalorder %s33_s18, 4   ;;  %s2838_s14 = smov %s2157_s15 }
 0x84b   : > { %s2839_s15 = smov %s2507_s12  ;;  %s2840_s16 = smov %s2165_s17 }
 0x84c   : > { %s2841_s17 = smov %s2843_s11  ;;  %32 = sbr.rel (!%p30_p3) target bundleno = 20 (0x14), region = 150 }
 0x853   :  { %1277 = vsyncpa [#allocation4], 1 }
 0x854   :  { %1279 = vsyncpa [#allocation4 + $0x1], 1 }
 0x855   :  { %1280 = vsyncpa [#allocation7], 1 }
 0x856   :  { %1282 = vsyncpa [#allocation7 + $0x1], 1 }
 0x857   :  { %1283 = vsyncpa [#allocation10], 1 }
 0x858   :  { %1284 = vsyncpa [#allocation13], 1 }
 0x859   :  { %1285 = vsyncpa [#allocation16], 1 }
 0x85a   :  { %1286 = vsyncpa [#allocation19], 1 }
 0x85b   :  { %1287 = vsyncpa [#allocation5], 1 }
 0x85c   :  { %1289 = vsyncpa [#allocation5 + $0x1], 1 }

// kernel: decoder_forward.7
= control target key start
LH: loop header
LB: loop body
LE: loop exit
PB: predicated region body
PF: predicated region fallthrough
CT: control target
= control target key end

     0   :  { %s2763_s0 = inlined_call_operand.hbm [shape: f32[2,8,32], index: 0, kind: input, shape index: {}, may-alias: {0,1}]   ;;  %s2764_s1 = inlined_call_operand.hbm [shape: f32[2,8,32], index: 1, kind: input, shape index: {}, may-alias: {0,1}]   ;;  %s2765_s2 = inlined_call_operand.hbm [shape: bf16[32,32], index: 2, kind: input, shape index: {}]   ;;  %s2766_s3 = inlined_call_operand.hbm [shape: f32[1,32], index: 3, kind: input, shape index: {}]   ;;  %s2767_s4 = inlined_call_operand.hbm [shape: bf16[32,64], index: 4, kind: input, shape index: {}]   ;;  %s2768_s5 = inlined_call_operand.hbm [shape: f32[1,64], index: 5, kind: input, shape index: {}]   ;;  %s2769_s6 = inlined_call_operand.hbm [shape: bf16[32,32], index: 6, kind: input, shape index: {}]   ;;  %s2770_s7 = inlined_call_operand.hbm [shape: f32[1,32], index: 7, kind: input, shape index: {}]   ;;  %s2771_s8 = inlined_call_operand.hbm [shape: f32[1,32], index: 8, kind: input, shape index: {}]   ;;  %s2772_s9 = inlined_call_operand.hbm [shape: f32[1,32], index: 9, kind: input, shape index: {}]   ;;  %s2773_s10 = inlined_call_operand.hbm [shape: f32[2,8,32], index: 10, kind: output, shape index: {}]  }
   0x1   :  { %2783 = sst [smem:[#allocation31_spill]] %s2764_s1 }
   0x2   :  { %2784 = sst [smem:[#allocation32_spill]] %s2765_s2 }
   0x3   :  { %2785 = sst [smem:[#allocation33_spill]] %s2766_s3 }
   0x4   :  { %2786 = sst [smem:[#allocation34_spill]] %s2767_s4 }
   0x5   :  { %2787 = sst [smem:[#allocation35_spill]] %s2768_s5 }
   0x6   :  { %2788 = sst [smem:[#allocation36_spill]] %s2769_s6 }
   0x7   :  { %2789 = sst [smem:[#allocation37_spill]] %s2770_s7 }
   0x8   :  { %2790 = sst [smem:[#allocation38_spill]] %s2773_s10 }
   0x9   :  { %15 = vsyncpa [#allocation4], 0 }
   0xa   :  { %17 = vsyncpa [#allocation4 + $0x1], 0 }
   0xb   :  { %18 = vsyncpa [#allocation7], 0 }
   0xc   :  { %20 = vsyncpa [#allocation7 + $0x1], 0 }
   0xd   :  { %21 = vsyncpa [#allocation10], 0 }
   0xe   :  { %22 = vsyncpa [#allocation13], 0 }
   0xf   :  { %23 = vsyncpa [#allocation16], 0 }
  0x10   :  { %24 = vsyncpa [#allocation19], 0 }
  0x11   :  { %25 = vsyncpa [#allocation5], 0 }
  0x12   :  { %27 = vsyncpa [#allocation5 + $0x1], 0  ;;  %s2254_s13 = smov 0   ;;  %s2256_s14 = smov 0  }
  0x13   :  { %s2258_s15 = smov 0   ;;  %s2260_s16 = smov 0  }
  0x14   :  { %s2262_s17 = smov 0   ;;  %s2264_s18 = smov 0  }
  0x15 LB: > { %2791 = sst [smem:[#allocation29_spill]] %s2164_s16  ;;  %s2285_s19 = sadd.s32 4294967295, %s2172_s18   ;;  %s2172_s18 = sphi %s2264_s18, %s33_s18   ;;  %s2168_s17 = sphi %s2262_s17, %s2832_s17   ;;  %s2164_s16 = sphi %s2260_s16, %s2831_s16   ;;  %s2160_s15 = sphi %s2258_s15, %s2830_s15   ;;  %s2156_s14 = sphi %s2256_s14, %s2829_s14   ;;  %s2152_s13 = sphi %s2254_s13, %s2828_s13  }
  0x16   : > { %p1447_p0 = scmp.ge.s32.totalorder %s2172_s18, 1  ;;  %p2777_p1 = scmp.eq.s32.totalorder %s2285_s19, 0 }
  0x17   : > { %p300_p2 = scmp.lt.s32.totalorder %s2172_s18, 3  ;;  %s2174_s21 = smov [#allocation8]  }
  0x18   : > { %s312_s22 = sshll.u32 %s2174_s21, 4  ;;  %s2175_s24 = smov [#allocation9]   ;;  %s2294_s22 = int_to_ptr.vmem [resolvable:$true] %s312_s22 }
  0x19   : > { %p2290_p3 = pnand %p1447_p0, %p300_p2  ;;  %s326_s25 = sshll.u32 %s2175_s24, 4  ;;  %s2305_s25 = int_to_ptr.vmem [resolvable:$true] %s326_s25 }
  0x1a   : > { %s2176_s26 = smov [#allocation12]   ;;  %s2795_s2 = sld [smem:[#allocation32_spill]] }
  0x1b   : > { %s2792_s20 = scalar_select %p2290_p3, 1, 0 }
  0x1c   : > { %p1634_p4 = pneg %p2290_p3  ;;  %s2307_s27 = sshll.u32 %s2176_s26, 4  ;;  %s351_s27 = int_to_ptr.vmem [resolvable:$true] %s2307_s27 }
  0x1d   : > { %2793 = sst [smem:[#allocation30_spill]] %s2792_s20 }
  0x1e   : > { %p2301_p6 = pnand %p1634_p4, %p2777_p1 }
  0x20   : > { %s1782_s30 = scalar_lea.hbm %s2795_s2, 256  ;;  %p2317_p8 = pneg %p2301_p6 }
  0x21   : > { %p1783_p7 = scmp.ne.s32.totalorder %s2795_s2, %s1782_s30  ;;  %p1789_p11 = scmp.lt.u32.totalorder %s1782_s30, %s2795_s2 }
  0x23   : > { %p1785_p9 = pnand %p2317_p8, %p1783_p7 }
  0x25   : > { %p1786_p10 = pneg %p1785_p9 }
  0x27   : > { %p1791_p12 = pnand %p1789_p11, %p1786_p10 }
  0x29   : > { %1794 = shalt.err (!%p1791_p12)
}
  0x2a   : > { %s1795_s28 = scalar_lea.vmem %s2294_s22, 256  ;;  %p1803_p4 = scmp.lt.s32.totalorder %s2294_s22, %s2294_s22 }
  0x2b   : > { %p1796_p13 = scmp.ne.s32.totalorder %s2294_s22, %s1795_s28  ;;  %p1804_p5 = scmp.lt.s32.totalorder %s1795_s28, %s1795_s28 }
  0x2d   : > { %p1798_p0 = pnand %p1796_p13, %p2317_p8  ;;  %p1805_p7 = por %p1804_p5, %p1803_p4 }
  0x2f   : > { %p1799_p2 = pneg %p1798_p0 }
  0x31   : > { %p1806_p9 = pnand %p1805_p7, %p1799_p2 }
  0x33   : > { %1809 = shalt.err (!%p1806_p9)
}
  0x34   : > { %s2779_s29 = smov 64   ;;  %s2178_s30 = smov 4  }
  0x35   : > { %1637 = dma.hbm_to_vmem [thread:$0]  (!%p2301_p6), %s2795_s2, 256, %s2294_s22, [#allocation7], %s2779_s29, %s2779_s29, %s2178_s30  }
  0x36   : > { %s2797_s3 = sld [smem:[#allocation33_spill]] }
  0x3c   : > { %s1810_s28 = scalar_lea.hbm %s2797_s3, 16 }
  0x3d   : > { %p1811_p5 = scmp.ne.s32.totalorder %s2797_s3, %s1810_s28  ;;  %p1817_p12 = scmp.lt.u32.totalorder %s1810_s28, %s2797_s3 }
  0x3f   : > { %p1813_p10 = pnand %p1811_p5, %p2317_p8 }
  0x41   : > { %p1814_p11 = pneg %p1813_p10 }
  0x43   : > { %p1819_p13 = pnand %p1817_p12, %p1814_p11 }
  0x45   : > { %1822 = shalt.err (!%p1819_p13)
}
  0x46   : > { %s1823_s22 = scalar_lea.vmem %s2305_s25, 16  ;;  %s1830_s10 = scalar_lea.vmem %s2305_s25, 32 }
  0x47   : > { %p1824_p0 = scmp.ne.s32.totalorder %s2305_s25, %s1823_s22  ;;  %p1831_p7 = scmp.lt.s32.totalorder %s2305_s25, %s2305_s25 }
  0x48   : > { %p1832_p9 = scmp.lt.s32.totalorder %s1830_s10, %s1823_s22 }
  0x49   : > { %p1826_p2 = pnand %p1824_p0, %p2317_p8 }
  0x4a   : > { %p1833_p5 = por %p1832_p9, %p1831_p7 }
  0x4b   : > { %p1827_p4 = pneg %p1826_p2 }
  0x4d   : > { %p1834_p10 = pnand %p1833_p5, %p1827_p4 }
  0x4f   : > { %1837 = shalt.err (!%p1834_p10)
}
  0x50   : > { %1640 = dma.hbm_to_vmem [thread:$0]  (!%p2301_p6), %s2797_s3, 16, %s2305_s25, [#allocation10]  }
  0x51   : > { %s2798_s5 = sld [smem:[#allocation35_spill]] }
  0x57   : > { %s1838_s12 = scalar_lea.hbm %s2798_s5, 16 }
  0x58   : > { %p1839_p11 = scmp.ne.s32.totalorder %s2798_s5, %s1838_s12  ;;  %p1845_p0 = scmp.lt.u32.totalorder %s1838_s12, %s2798_s5 }
  0x5a   : > { %p1841_p12 = pnand %p1839_p11, %p2317_p8 }
  0x5c   : > { %p1842_p13 = pneg %p1841_p12 }
  0x5e   : > { %p1847_p2 = pnand %p1845_p0, %p1842_p13 }
  0x60   : > { %1850 = shalt.err (!%p1847_p2)
}
  0x61   : > { %s1851_s10 = scalar_lea.vmem %s351_s27, 16  ;;  %s1858_s25 = scalar_lea.vmem %s351_s27, 32 }
  0x62   : > { %p1852_p4 = scmp.ne.s32.totalorder %s351_s27, %s1851_s10  ;;  %p1859_p5 = scmp.lt.s32.totalorder %s351_s27, %s351_s27 }
  0x63   : > { %p1860_p10 = scmp.lt.s32.totalorder %s1858_s25, %s1851_s10 }
  0x64   : > { %p1854_p7 = pnand %p1852_p4, %p2317_p8 }
  0x65   : > { %p1861_p1 = por %p1860_p10, %p1859_p5 }
  0x66   : > { %p1855_p9 = pneg %p1854_p7 }
  0x68   : > { %p1862_p3 = pnand %p1861_p1, %p1855_p9 }
  0x6a   : > { %1865 = shalt.err (!%p1862_p3)
}
  0x6b   : > { %1646 = dma.hbm_to_vmem [thread:$0]  (!%p2301_p6), %s2798_s5, 16, %s351_s27, [#allocation13]  }
  0x6c   : > { %s2179_s20 = smov [#allocation15]   ;;  %s2180_s12 = smov [#allocation11]  }
  0x6d   : > { %s374_s11 = sshll.u32 %s2179_s20, 4  ;;  %s336_s24 = sshll.u32 %s2180_s12, 4  ;;  %s375_s11 = int_to_ptr.vmem [resolvable:$true] %s374_s11  ;;  %s337_s24 = int_to_ptr.vmem [resolvable:$true] %s336_s24 }
  0x6e   : > { %s2799_s7 = sld [smem:[#allocation37_spill]] }
  0x74   : > { %s1866_s22 = scalar_lea.hbm %s2799_s7, 16 }
  0x75   : > { %p1867_p1 = scmp.ne.s32.totalorder %s2799_s7, %s1866_s22  ;;  %p1873_p12 = scmp.lt.u32.totalorder %s1866_s22, %s2799_s7 }
  0x77   : > { %p1869_p3 = pnand %p1867_p1, %p2317_p8 }
  0x79   : > { %p1870_p11 = pneg %p1869_p3 }
  0x7b   : > { %p1875_p13 = pnand %p1873_p12, %p1870_p11 }
  0x7d   : > { %1878 = shalt.err (!%p1875_p13)
}
  0x7e   : > { %s1879_s27 = scalar_lea.vmem %s375_s11, 16  ;;  %s1886_s16 = scalar_lea.vmem %s375_s11, 32 }
  0x7f   : > { %p1880_p0 = scmp.ne.s32.totalorder %s375_s11, %s1879_s27  ;;  %p1887_p7 = scmp.lt.s32.totalorder %s375_s11, %s375_s11 }
  0x80   : > { %p1888_p9 = scmp.lt.s32.totalorder %s1886_s16, %s1879_s27 }
  0x81   : > { %p1882_p2 = pnand %p1880_p0, %p2317_p8 }
  0x82   : > { %p1889_p5 = por %p1888_p9, %p1887_p7 }
  0x83   : > { %p1883_p4 = pneg %p1882_p2 }
  0x85   : > { %p1890_p10 = pnand %p1889_p5, %p1883_p4 }
  0x87   : > { %1893 = shalt.err (!%p1890_p10)
}
  0x88   : > { %1652 = dma.hbm_to_vmem [thread:$0]  (!%p2301_p6), %s2799_s7, 16, %s375_s11, [#allocation16]  }
  0x89   : > { %s2800_s4 = sld [smem:[#allocation34_spill]] }
  0x8f   : > { %s1894_s28 = scalar_lea.hbm %s2800_s4, 256 }
  0x90   : > { %p1895_p1 = scmp.ne.s32.totalorder %s2800_s4, %s1894_s28  ;;  %p1901_p12 = scmp.lt.u32.totalorder %s1894_s28, %s2800_s4 }
  0x92   : > { %p1897_p3 = pnand %p1895_p1, %p2317_p8 }
  0x94   : > { %p1898_p11 = pneg %p1897_p3 }
  0x96   : > { %p1903_p13 = pnand %p1901_p12, %p1898_p11 }
  0x98   : > { %1906 = shalt.err (!%p1903_p13)
}
  0x99   : > { %s1907_s27 = scalar_lea.vmem %s337_s24, 256  ;;  %p1915_p7 = scmp.lt.s32.totalorder %s337_s24, %s337_s24 }
  0x9a   : > { %p1908_p0 = scmp.ne.s32.totalorder %s337_s24, %s1907_s27  ;;  %p1916_p9 = scmp.lt.s32.totalorder %s1907_s27, %s1907_s27 }
  0x9c   : > { %p1910_p2 = pnand %p1908_p0, %p2317_p8  ;;  %p1917_p5 = por %p1916_p9, %p1915_p7 }
  0x9e   : > { %p1911_p4 = pneg %p1910_p2 }
  0xa0   : > { %p1918_p10 = pnand %p1917_p5, %p1911_p4 }
  0xa2   : > { %1921 = shalt.err (!%p1918_p10)
}
  0xa3   : > { %s2801_s11 = smov 64   ;;  %s2181_s12 = smov [#allocation14]  }
  0xa4   : > { %1643 = dma.hbm_to_vmem [thread:$0]  (!%p2301_p6), %s2800_s4, 256, %s337_s24, [#allocation10], %s2801_s11, %s2801_s11, %s2178_s30  }
  0xa5   : > { %s360_s29 = sshll.u32 %s2181_s12, 4  ;;  %s2182_s26 = smov [#allocation17]   ;;  %s361_s29 = int_to_ptr.vmem [resolvable:$true] %s360_s29 }
  0xa6   : > { %s385_s28 = sshll.u32 %s2182_s26, 4  ;;  %s2802_s6 = sld [smem:[#allocation36_spill]]  ;;  %s386_s28 = int_to_ptr.vmem [resolvable:$true] %s385_s28 }
  0xac   : > { %s1922_s25 = scalar_lea.hbm %s2802_s6, 256 }
  0xad   : > { %p1923_p1 = scmp.ne.s32.totalorder %s2802_s6, %s1922_s25  ;;  %p1929_p12 = scmp.lt.u32.totalorder %s1922_s25, %s2802_s6 }
  0xaf   : > { %p1925_p3 = pnand %p1923_p1, %p2317_p8 }
  0xb1   : > { %p1926_p11 = pneg %p1925_p3 }
  0xb3   : > { %p1931_p13 = pnand %p1929_p12, %p1926_p11 }
  0xb5   : > { %1934 = shalt.err (!%p1931_p13)
}
  0xb6   : > { %s1935_s24 = scalar_lea.vmem %s361_s29, 256  ;;  %p1943_p7 = scmp.lt.s32.totalorder %s361_s29, %s361_s29 }
  0xb7   : > { %p1936_p0 = scmp.ne.s32.totalorder %s361_s29, %s1935_s24  ;;  %p1944_p9 = scmp.lt.s32.totalorder %s1935_s24, %s1935_s24 }
  0xb9   : > { %p1938_p2 = pnand %p1936_p0, %p2317_p8  ;;  %p1945_p5 = por %p1944_p9, %p1943_p7 }
  0xbb   : > { %p1939_p4 = pneg %p1938_p2 }
  0xbd   : > { %p1946_p10 = pnand %p1945_p5, %p1939_p4 }
  0xbf   : > { %1949 = shalt.err (!%p1946_p10)
}
  0xc0   : > { %1649 = dma.hbm_to_vmem [thread:$0]  (!%p2301_p6), %s2802_s6, 256, %s361_s29, [#allocation13], %s2801_s11, %s2801_s11, %s2178_s30  }
  0xc1   : > { %s1950_s22 = scalar_lea.hbm %s2771_s8, 16 }
  0xc2   : > { %p1951_p1 = scmp.ne.s32.totalorder %s2771_s8, %s1950_s22  ;;  %p1957_p12 = scmp.lt.u32.totalorder %s1950_s22, %s2771_s8 }
  0xc4   : > { %p1953_p3 = pnand %p1951_p1, %p2317_p8 }
  0xc6   : > { %p1954_p11 = pneg %p1953_p3 }
  0xc8   : > { %p1959_p13 = pnand %p1957_p12, %p1954_p11 }
  0xca   : > { %1962 = shalt.err (!%p1959_p13)
}
  0xcb   : > { %s1963_s16 = scalar_lea.vmem %s386_s28, 16  ;;  %s1970_s30 = scalar_lea.vmem %s386_s28, 32 }
  0xcc   : > { %p1964_p0 = scmp.ne.s32.totalorder %s386_s28, %s1963_s16  ;;  %p1971_p7 = scmp.lt.s32.totalorder %s386_s28, %s386_s28 }
  0xcd   : > { %p1972_p9 = scmp.lt.s32.totalorder %s1970_s30, %s1963_s16 }
  0xce   : > { %p1966_p2 = pnand %p1964_p0, %p2317_p8 }
  0xcf   : > { %p1973_p5 = por %p1972_p9, %p1971_p7 }
  0xd0   : > { %p1967_p4 = pneg %p1966_p2 }
  0xd2   : > { %p1974_p10 = pnand %p1973_p5, %p1967_p4 }
  0xd4   : > { %1977 = shalt.err (!%p1974_p10)
}
  0xd5   : > { %1655 = dma.hbm_to_vmem [thread:$0]  (!%p2301_p6), %s2771_s8, 16, %s386_s28, [#allocation16]  }
  0xd6   : > { %s2183_s24 = smov [#allocation18]   ;;  %s1978_s26 = scalar_lea.hbm %s2772_s9, 16 }
  0xd7   : > { %s396_s2 = sshll.u32 %s2183_s24, 4  ;;  %p1979_p1 = scmp.ne.s32.totalorder %s2772_s9, %s1978_s26  ;;  %s397_s2 = int_to_ptr.vmem [resolvable:$true] %s396_s2 }
  0xd8   : > { %p1985_p12 = scmp.lt.u32.totalorder %s1978_s26, %s2772_s9 }
  0xd9   : > { %p1981_p3 = pnand %p1979_p1, %p2317_p8 }
  0xdb   : > { %p1982_p11 = pneg %p1981_p3 }
  0xdd   : > { %p1987_p13 = pnand %p1985_p12, %p1982_p11 }
  0xdf   : > { %1990 = shalt.err (!%p1987_p13)
}
  0xe0   : > { %s1991_s28 = scalar_lea.vmem %s397_s2, 16  ;;  %s1998_s27 = scalar_lea.vmem %s397_s2, 32 }
  0xe1   : > { %p1992_p0 = scmp.ne.s32.totalorder %s397_s2, %s1991_s28  ;;  %p1999_p7 = scmp.lt.s32.totalorder %s397_s2, %s397_s2 }
  0xe2   : > { %p2000_p9 = scmp.lt.s32.totalorder %s1998_s27, %s1991_s28 }
  0xe3   : > { %p1994_p2 = pnand %p1992_p0, %p2317_p8 }
  0xe4   : > { %p2001_p5 = por %p2000_p9, %p1999_p7 }
  0xe5   : > { %p1995_p4 = pneg %p1994_p2 }
  0xe7   : > { %p2002_p10 = pnand %p2001_p5, %p1995_p4 }
  0xe9   : > { %2005 = shalt.err (!%p2002_p10)
}
  0xea   : > { %1658 = dma.hbm_to_vmem [thread:$0]  (!%p2301_p6), %s2772_s9, 16, %s397_s2, [#allocation19]  }
  0xeb   : > { %s1446_s21 = sadd.s32 4294967294, %s2172_s18   ;;  %s45_s11 = sadd.s32 1, %s2168_s17 }
  0xec   : > { %p47_p8 = scmp.ge.s32.totalorder %s45_s11, 2  ;;  %s54_s23 = sadd.s32 1, %s2160_s15 }
  0xed   : > { %p61_p1 = scmp.ne.s32.totalorder %s2160_s15, %s2156_s14  ;;  %p62_p3 = scmp.eq.s32.totalorder %s2172_s18, 0 }
  0xee   : > { %s2834_s11 = smov (%p47_p8, %s45_s11), 0  ;;  %p67_p12 = scmp.ne.s32.totalorder %s2156_s14, %s2152_s13 }
  0xef   : > { %p2488_p11 = por %p62_p3, %p61_p1  ;;  %s49_s24 = ssub.s32 %s2168_s17, %s2834_s11 }
  0xf0   : > { %p287_p6 = scmp.eq.s32.totalorder %s2285_s19, 1  ;;  %p52_p13 = scmp.eq.s32.totalorder %s49_s24, 0 }
  0xf1   : > { %p2804_p0 = scmp.eq.s32.totalorder %s2285_s19, 0  ;;  %p293_p7 = scmp.eq.s32.totalorder %s1446_s21, 1 }
  0xf2   : > { %p2503_p4 = por %p287_p6, %p61_p1  ;;  %p1678_p5 = scmp.lt.s32.totalorder %s2172_s18, 2 }
  0xf3   : > { %p2499_p2 = por %p2804_p0, %p67_p12  ;;  %p2510_p9 = por %p293_p7, %p67_p12 }
  0xf4   : > { %s2806_s20 = scalar_select %p2503_p4, 1, 0 }
  0xf5   : > { %s2805_s2 = scalar_select %p2499_p2, 1, 0 }
  0xf6   : > { %s2508_s12 = scalar_select %p52_p13, %s2160_s15, %s54_s23  }
  0xf7   : > { %s2807_s26 = scalar_select %p2510_p9, 1, 0 }
  0xf8   : > { %s407_s22 = sand.u32 1, %s2160_s15   ;;  %s1458_s10 = sshll.u32 %s2168_s17, 7 }
  0xf9   : > { %s2517_s25 = sshll.u32 %s407_s22, 3  ;;  %s2522_s27 = scalar_lea.hbm %s2763_s0, %s1458_s10 }
  0xfa   : > { %s411_s16 = scalar_lea.vmem [#allocation3], %s2517_s25  ;;  %p2527_p10 = pnand %p1678_p5, %p2488_p11 }
  0xfb   : > { %s419_s30 = sshll.u32 %s411_s16, 4  ;;  %s2809_s1 = sld [smem:[#allocation31_spill]]  ;;  %s2531_s30 = int_to_ptr.vmem [resolvable:$true] %s419_s30 }
  0xfc   : > { %s408_s3 = scalar_lea.sflag [#allocation4], %s407_s22  ;;  %s2006_s4 = scalar_lea.hbm %s2522_s27, 128 }
  0xfd   : > { %p2007_p8 = scmp.ne.s32.totalorder %s2522_s27, %s2006_s4  ;;  %p2008_p1 = pneg %p2527_p10 }
  0xfe   : > { %s2011_s5 = scalar_lea.hbm %s2763_s0, 256  ;;  %p2012_p12 = scmp.lt.u32.totalorder %s2522_s27, %s2763_s0 }
  0xff   : > { %p2009_p3 = pnand %p2008_p1, %p2007_p8  ;;  %p2013_p6 = scmp.lt.u32.totalorder %s2011_s5, %s2006_s4 }
 0x100   : > { %p2015_p0 = scmp.lt.u32.totalorder %s2006_s4, %s2522_s27 }
 0x101   : > { %s2536_s28 = scalar_lea.hbm %s2809_s1, %s1458_s10  ;;  %p2010_p11 = pneg %p2009_p3 }
 0x102   : > { %p2014_p13 = por %p2013_p6, %p2012_p12 }
 0x104   : > { %p2016_p7 = por %p2015_p0, %p2014_p13 }
 0x106   : > { %p2017_p5 = pnand %p2016_p7, %p2010_p11 }
 0x108   : > { %2020 = shalt.err (!%p2017_p5)
}
 0x109   : > { %s2021_s22 = scalar_lea.vmem %s2531_s30, 128  ;;  %s2184_s10 = smov [#allocation3]  }
 0x10a   : > { %p2022_p8 = scmp.ne.s32.totalorder %s2531_s30, %s2021_s22  ;;  %s2026_s23 = sshll.u32 %s2184_s10, 4  ;;  %s2027_s23 = int_to_ptr.vmem [resolvable:$false] %s2026_s23 }
 0x10b   : > { %s2028_s6 = scalar_lea.vmem %s2027_s23, 256  ;;  %p2029_p4 = scmp.lt.s32.totalorder %s2531_s30, %s2027_s23 }
 0x10c   : > { %p2024_p3 = pnand %p2022_p8, %p2008_p1  ;;  %p2030_p12 = scmp.lt.s32.totalorder %s2028_s6, %s2021_s22 }
 0x10e   : > { %p2025_p9 = pneg %p2024_p3  ;;  %p2031_p6 = por %p2030_p12, %p2029_p4 }
 0x110   : > { %p2032_p13 = pnand %p2031_p6, %p2025_p9 }
 0x112   : > { %2035 = shalt.err (!%p2032_p13)
}
 0x113   : > { %1662 = dma.hbm_to_vmem [thread:$0]  (!%p2527_p10), %s2522_s27, 128, %s2531_s30, %s408_s3  }
 0x114   : > { %s426_s4 = sand.u32 1, %s2172_s18   ;;  %s430_s5 = scalar_lea.vmem [#allocation6], %s2517_s25 }
 0x115   : > { %s437_s7 = sshll.u32 %s430_s5, 4  ;;  %s427_s24 = scalar_lea.sflag [#allocation7], %s426_s4  ;;  %s438_s7 = int_to_ptr.vmem [resolvable:$true] %s437_s7 }
 0x116   : > { %s2036_s29 = scalar_lea.hbm %s2536_s28, 128  ;;  %s2041_s10 = scalar_lea.hbm %s2809_s1, 256 }
 0x117   : > { %p2037_p4 = scmp.ne.s32.totalorder %s2536_s28, %s2036_s29  ;;  %p2042_p0 = scmp.lt.u32.totalorder %s2536_s28, %s2809_s1 }
 0x118   : > { %p2043_p7 = scmp.lt.u32.totalorder %s2041_s10, %s2036_s29  ;;  %p2045_p8 = scmp.lt.u32.totalorder %s2036_s29, %s2536_s28 }
 0x119   : > { %p2039_p9 = pnand %p2037_p4, %p2008_p1 }
 0x11a   : > { %p2044_p5 = por %p2043_p7, %p2042_p0 }
 0x11b   : > { %p2040_p11 = pneg %p2039_p9 }
 0x11c   : > { %p2046_p3 = por %p2045_p8, %p2044_p5 }
 0x11e   : > { %p2047_p12 = pnand %p2046_p3, %p2040_p11 }
 0x120   : > { %2050 = shalt.err (!%p2047_p12)
}
 0x121   : > { %s2051_s3 = scalar_lea.vmem %s438_s7, 128  ;;  %s2185_s25 = smov [#allocation6]  }
 0x122   : > { %p2052_p6 = scmp.ne.s32.totalorder %s438_s7, %s2051_s3  ;;  %s2056_s27 = sshll.u32 %s2185_s25, 4  ;;  %s2057_s27 = int_to_ptr.vmem [resolvable:$false] %s2056_s27 }
 0x123   : > { %s2058_s30 = scalar_lea.vmem %s2057_s27, 256  ;;  %p2059_p9 = scmp.lt.s32.totalorder %s438_s7, %s2057_s27 }
 0x124   : > { %p2054_p13 = pnand %p2052_p6, %p2008_p1  ;;  %p2060_p2 = scmp.lt.s32.totalorder %s2058_s30, %s2051_s3 }
 0x126   : > { %p2055_p4 = pneg %p2054_p13  ;;  %p2061_p0 = por %p2060_p2, %p2059_p9 }
 0x128   : > { %p2062_p7 = pnand %p2061_p0, %p2055_p4 }
 0x12a   : > { %2065 = shalt.err (!%p2062_p7)
}
 0x12b   : > { %1665 = dma.hbm_to_vmem [thread:$0]  (!%p2527_p10), %s2536_s28, 128, %s438_s7, %s427_s24  }
 0x12c   : > { %s2810_s4 = sld [smem:[#allocation30_spill]] }
 0x132   : > { %p2811_p11 = scmp.ne.s32.totalorder %s2810_s4, 0 }
 0x133   : > { %s2587_s5 = sand.u32 (!%p2811_p11), 1, %s2156_s14   ;;  %p2812_p2 = scmp.ne.s32.totalorder (!%p2811_p11), %s2805_s2, 0 }
 0x134   : > { %446 = sbr.rel (%p2811_p11) target bundleno = 2121 (0x849), region = 60  ;;  %s2590_s29 = sshll.u32 (!%p2811_p11), %s2587_s5, 3 }
 0x135   : > { %s449_s16 = scalar_lea.sflag (!%p2811_p11), [#allocation4], %s2587_s5  ;;  %s452_s22 = scalar_lea.vmem (!%p2811_p11), [#allocation3], %s2590_s29 }
 0x13b   : > { %2119 = dma.done.wait (%p2812_p2), %s449_s16, 128  }
 0x13c   : > { %2121 = vsyncadd (%p2812_p2), %s449_s16, 4294967168  ;;  %s457_s21 = sand.u32 1, %s2285_s19   ;;  %s461_s7 = scalar_lea.vmem [#allocation6], %s2590_s29 }
 0x13d   : > { %s458_s28 = scalar_lea.sflag [#allocation7], %s457_s21 }
 0x13e   : > { %2123 = dma.done.wait (%p2812_p2), %s458_s28, 128  }
 0x13f   : > { %2125 = vsyncadd (%p2812_p2), %s458_s28, 4294967168  ;;  %p2813_p10 = scmp.eq.s32.totalorder %s2285_s19, 0 }
 0x141   : > { %2127 = dma.done.wait (%p2813_p10), [#allocation7], 256   ;;  %p2814_p1 = pmov %p2813_p10 }
 0x143   : > { %2129 = vsyncadd (%p2814_p1), [#allocation7], 4294967040  ;;  %p2815_p5 = pmov %p2814_p1 }
 0x144   : > { %p2816_p8 = pmov %p2814_p1 }
 0x145   : > { %2131 = dma.done.wait (%p2815_p5), [#allocation10], 272  }
 0x146   : > { %2133 = vsyncadd (%p2816_p8), [#allocation10], 4294967024  ;;  %p2817_p3 = pmov %p2814_p1 }
 0x147   : > { %p2818_p12 = pmov %p2814_p1 }
 0x148   : > { %2135 = dma.done.wait (%p2817_p3), [#allocation13], 272  }
 0x149   : > { %2137 = vsyncadd (%p2818_p12), [#allocation13], 4294967024  ;;  %p2819_p6 = pmov %p2814_p1 }
 0x14a   : > { %p2820_p13 = pmov %p2814_p1 }
 0x14b   : > { %2139 = dma.done.wait (%p2819_p6), [#allocation16], 32  }
 0x14c   : > { %2141 = vsyncadd (%p2820_p13), [#allocation16], 4294967264  ;;  %p2821_p4 = pmov %p2814_p1 }
 0x14d   : > { %p2822_p9 = pmov %p2814_p1 }
 0x14e   : > { %2143 = dma.done.wait (%p2821_p4), [#allocation19], 16  }
 0x14f   : > { %2145 = vsyncadd (%p2822_p9), [#allocation19], 4294967280  ;;  %v2186_v0 = vmov 0.0   ;;  %vm2187_vm0 = vmmov 0   ;;  %v1758_v1 = vld [vmem:[#allocation11] sm:$0xff]   ;;  %v1759_v2 = vld [vmem:[#allocation8] sm:$0xff]   ;;  %v676_v33 = vlaneseq }
 0x150   : > { %1532 = vmatprep.subr.bf16.mxu1 %v2186_v0  ;;  %1524 = vmatprep.subr.bf16.mxu0 %v2186_v0  ;;  %v1760_v3 = vld [vmem:[#allocation11 + $0x8] sm:$0xff]   ;;  %v1761_v5 = vld [vmem:[#allocation8 + $0x8] sm:$0xff]   ;;  %vm562_vm1 = vcmask 261120   ;;  %v1477_v9 = vld [vmem:[#allocation12] ss:$0 sm:$0xff]  ;;  %vm684_vm2 = vcmask 64512  }
 0x151   : > { %1536 = vmatprep.mubr.msk.bf16.mxu1 %vm2187_vm0, %v2186_v0  ;;  %1528 = vmatprep.mubr.msk.bf16.mxu0 %vm2187_vm0, %v2186_v0  ;;  %v537_v4 = vld [vmem:[%s461_s7] sm:$0xff]  ;;  %v2634_v6 = vld [vmem:[%s452_s22] sm:$0xff]  ;;  %s2188_s19 = smov 112   ;;  %s2189_s2 = smov 120   ;;  %v677_v34 = vshrl.u32 %v676_v33, 7  ;;  %v681_v35 = vand.u32 127, %v676_v33 }
 0x152   : > { %1533 = vmatpush3.bf16.msra.mxu1 %v1758_v1  ;;  %1525 = vmatpush3.bf16.msra.mxu0 %v1759_v2  ;;  %v606_v7 = vpack.c.bf16 %v537_v4, %v537_v4  ;;  %v538_v8 = vpack.c.bf16 %v2634_v6, %v2634_v6  ;;  %v1473_v10 = vld [vmem:[#allocation9] ss:$0 sm:$0xff]  ;;  %s2190_s24 = smov 104   ;;  %s2191_s10 = smov 96   ;;  %vm751_vm4 = vcmask 1043456   ;;  %vm913_vm5 = vcmask 130112  }
 0x153   : > { %1534 = vmatprep.subr.bf16.mxu1 %v2186_v0  ;;  %1526 = vmatprep.subr.bf16.mxu0 %v2186_v0  ;;  %vm682_vm3 = vcmp.gt.s32.totalorder %v681_v35, %v677_v34  ;;  %s2192_s23 = smov 80   ;;  %s2193_s6 = smov 72   ;;  %vm1031_vm6 = vcmask 195712   ;;  %vm1149_vm7 = vcmask 261312  }
 0x154   : > { %v683_v37 = vsel %vm682_vm3, -1e+09, %v2186_v0  ;;  %s2194_s3 = smov 88   ;;  %s2195_s25 = smov 8  }
 0x155   : > { %s2196_s27 = smov 16   ;;  %s2197_s30 = smov 24  }
 0x156   : > { %1535 = vmatpush3.bf16.msra.mxu1 %v1760_v3  ;;  %1527 = vmatpush3.bf16.msra.mxu0 %v1761_v5  ;;  %s2823_s4 = sld [smem:[#allocation29_spill]]  ;;  %s534_s22 = scalar_lea.vmem [#allocation20], %s2590_s29 }
 0x157   : > { %1546 = vmatprep.subr.bf16.mxu1 %v2186_v0  ;;  %1540 = vmatprep.subr.bf16.mxu0 %v2186_v0  ;;  %s1266_s21 = sshll.u32 %s534_s22, 4  ;;  %p2825_p7 = scmp.ne.s32.totalorder %s2806_s20, 0  ;;  %s2715_s21 = int_to_ptr.vmem [resolvable:$true] %s1266_s21 }
 0x158   : > { %s2198_s29 = smov [#allocation20]  }
 0x159   : > { %1537 = vmatmul.mubr.msk.bf16.vlgmr.msra.gmra.mrb[0].mxu1 %vm562_vm1, %v606_v7  ;;  %1529 = vmatmul.mubr.msk.bf16.vlgmr.msra.gmra.mrb[0].mxu0 %vm562_vm1, %v538_v8 }
 0x15a   : > { %1548 = vmatprep.mubr.msk.bf16.mxu1 %vm2187_vm0, %v2186_v0  ;;  %1542 = vmatprep.mubr.msk.bf16.mxu0 %vm2187_vm0, %v2186_v0 }
 0x15c   : > { %s1496_s16 = sshll.u32 %s2823_s4, 7 }
 0x22c   : > { %v667_v11 = vpop.f32.mrb[0].mxu1  ;;  %v600_v14 = vpop.f32.mrb[0].mxu0 }
 0x22d   : > { %v668_v12 = vadd.f32 %v1477_v9, %v667_v11  ;;  %v1538_v13 = vpop.f32.mrb[1].mxu1  ;;  %v601_v16 = vadd.f32 %v1473_v10, %v600_v14  ;;  %v1530_v17 = vpop.f32.mrb[1].mxu0 }
 0x22e   : > { %v670_v15 = vpop.f32.mrb[2].mxu1  ;;  %v603_v20 = vpop.f32.mrb[2].mxu0 }
 0x22f   : > { %v2646_v18 = vpack.c.bf16 %v668_v12, %v668_v12  ;;  %v1539_v19 = vpop.f32.mrb[3].mxu1  ;;  %v1531_v21 = vpop.f32.mrb[3].mxu0  ;;  %v673_v22 = vpack.c.bf16 %v601_v16, %v601_v16 }
 0x231   : > { %917 = vrot.lane.b32.xlu1 %v2646_v18, %s2188_s19  ;;  %799 = vrot.lane.b32.xlu0 %v2646_v18, %s2189_s2  ;;  %v689_v23 = vsel %vm684_vm2, %v2646_v18, 0 }
 0x232   : > { %1541 = vmatpush3.bf16.xpose.msra.mxu0 %v689_v23 }
 0x233   : > { %1552 = vmatprep.subr.bf16.mxu0 %v2186_v0 }
 0x235   : > { %915 = vrot.lane.b32.xlu1 %v673_v22, %s2188_s19  ;;  %797 = vrot.lane.b32.xlu0 %v673_v22, %s2189_s2  ;;  %s2824_s19 = sld [smem:[#allocation38_spill]] }
 0x239   : > { %1033 = vrot.lane.b32.xlu1 %v673_v22, %s2190_s24  ;;  %1035 = vrot.lane.b32.xlu0 %v2646_v18, %s2190_s24  ;;  %s1252_s24 = scalar_lea.sflag [#allocation5], %s2587_s5 }
 0x23a   : > { %1543 = vmatmul.mubr.msk.bf16.vlgmr.msra.gmra.mrb[4].mxu0 %vm684_vm2, %v673_v22 }
 0x23b   : > { %1554 = vmatprep.mubr.msk.bf16.mxu0 %vm2187_vm0, %v2186_v0  ;;  %s2713_s2 = scalar_lea.hbm %s2824_s19, %s1496_s16 }
 0x2a3   : > { %v800_v24 = vpop.permute.xlu0 %799  ;;  %v918_v26 = vpop.permute.xlu1 %917 }
 0x2a4   : > { %v805_v25 = vsel %vm684_vm2, %v800_v24, 0  ;;  %v923_v28 = vsel %vm684_vm2, %v918_v26, 0 }
 0x2a5   : > { %1553 = vmatpush3.bf16.xpose.msra.mxu0 %v805_v25 }
 0x2a6   : > { %1564 = vmatprep.subr.bf16.mxu0 %v2186_v0 }
 0x2a7   : > { %v798_v27 = vpop.permute.xlu0 %797  ;;  %v916_v30 = vpop.permute.xlu1 %915 }
 0x2ab   : > { %v1036_v29 = vpop.permute.xlu0 %1035  ;;  %v1034_v32 = vpop.permute.xlu1 %1033 }
 0x2ac   : > { %1555 = vmatmul.mubr.msk.bf16.vlgmr.msra.gmra.mrb[8].mxu0 %vm684_vm2, %v798_v27  ;;  %v1041_v31 = vsel %vm684_vm2, %v1036_v29, 0 }
 0x2ad   : > { %1565 = vmatpush3.bf16.xpose.msra.mxu0 %v923_v28  ;;  %1566 = vmatprep.mubr.msk.bf16.mxu0 %vm2187_vm0, %v2186_v0 }
 0x2ae   : > { %1576 = vmatprep.subr.bf16.mxu0 %v2186_v0 }
 0x2b4   : > { %1567 = vmatmul.mubr.msk.bf16.vlgmr.msra.gmra.mrb[12].mxu0 %vm684_vm2, %v916_v30 }
 0x2b5   : > { %1577 = vmatpush3.bf16.xpose.msra.mxu0 %v1041_v31  ;;  %1578 = vmatprep.mubr.msk.bf16.mxu0 %vm2187_vm0, %v2186_v0 }
 0x2b6   : > { %1588 = vmatprep.subr.bf16.mxu0 %v2186_v0 }
 0x2bc   : > { %1579 = vmatmul.mubr.msk.bf16.vlgmr.msra.gmra.mrb[16].mxu0 %vm684_vm2, %v1034_v32 }
 0x2bd   : > { %1592 = vmatprep.mubr.msk.bf16.mxu0 %vm2187_vm0, %v2186_v0 }
 0x30d   : > { %v725_v36 = vpop.f32.mrb[4].mxu0 }
 0x30e   : > { %v731_v38 = vmul.f32 0.35355338, %v725_v36  ;;  %v1544_v39 = vpop.f32.mrb[5].mxu0 }
 0x30f   : > { %v728_v40 = vpop.f32.mrb[6].mxu0 }
 0x310   : > { %v1545_v41 = vpop.f32.mrb[7].mxu0  ;;  %v732_v42 = vadd.f32 %v731_v38, %v683_v37 }
 0x312   : > { %v733_v43 = vsel %vm684_vm2, %v732_v42, -inf }
 0x313   : > { %734 = vmax.xlane.f32.xlu0 %v733_v43 }
 0x37f   : > { %v841_v44 = vpop.f32.mrb[8].mxu0 }
 0x380   : > { %v847_v45 = vmul.f32 0.35355338, %v841_v44  ;;  %v1556_v46 = vpop.f32.mrb[9].mxu0 }
 0x381   : > { %v844_v47 = vpop.f32.mrb[10].mxu0 }
 0x382   : > { %v1557_v48 = vpop.f32.mrb[11].mxu0  ;;  %v848_v49 = vadd.f32 %v847_v45, %v683_v37 }
 0x384   : > { %v849_v50 = vsel %vm684_vm2, %v848_v49, -inf }
 0x385   : > { %850 = vmax.xlane.f32.xlu1 %v849_v50 }
 0x387   : > { %v959_v51 = vpop.f32.mrb[12].mxu0 }
 0x388   : > { %v965_v52 = vmul.f32 0.35355338, %v959_v51  ;;  %v1568_v53 = vpop.f32.mrb[13].mxu0 }
 0x389   : > { %v962_v54 = vpop.f32.mrb[14].mxu0 }
 0x38a   : > { %v1569_v55 = vpop.f32.mrb[15].mxu0  ;;  %v966_v56 = vadd.f32 %v965_v52, %v683_v37 }
 0x38b   : > { %v1762_v55 = vld [vmem:[#allocation14] sm:$0xff]  }
 0x38c   : > { %v967_v57 = vsel %vm684_vm2, %v966_v56, -inf  ;;  %1589 = vmatpush3.bf16.msra.mxu0 %v1762_v55 }
 0x38d   : > { %968 = vmax.xlane.f32.xlu0 %v967_v57  ;;  %1590 = vmatprep.subr.bf16.mxu0 %v2186_v0 }
 0x38f   : > { %v1077_v58 = vpop.f32.mrb[16].mxu0 }
 0x390   : > { %v1083_v59 = vmul.f32 0.35355338, %v1077_v58  ;;  %v1580_v60 = vpop.f32.mrb[17].mxu0 }
 0x391   : > { %v1080_v61 = vpop.f32.mrb[18].mxu0 }
 0x392   : > { %v1581_v62 = vpop.f32.mrb[19].mxu0  ;;  %v1084_v63 = vadd.f32 %v1083_v59, %v683_v37 }
 0x394   : > { %v1085_v1 = vsel %vm684_vm2, %v1084_v63, -inf }
 0x395   : > { %1086 = vmax.xlane.f32.xlu0 %v1085_v1 }
 0x3a0   : > { %v735_v2 = vpop.xlane.xlu0 %734 }
 0x3a1   : > { %v736_v3 = vsub.f32 %v732_v42, %v735_v2 }
 0x3a3   : > { %v737_v4 = vmul.f32 1.442695, %v736_v3 }
 0x3a5   : > { %1764 = vpow2.f32 %v737_v4 }
 0x3af   : > { %v1765_v5 = vpop.eup %1764 }
 0x3b0   : > { %v739_v7 = vsel %vm684_vm2, %v1765_v5, 0.0 }
 0x3b1   : > { %740 = vadd.xlane.f32.xlu1 %v739_v7  ;;  %v1489_v7 = vld [vmem:[#allocation15] ss:$0 sm:$0xff] }
 0x3c2   : > { %746 = vrot.lane.b32.xlu1 %v2646_v18, %s2191_s10  ;;  %s2066_s10 = scalar_lea.vmem %s2715_s21, 128 }
 0x3c3   : > { %p2067_p0 = scmp.ne.s32.totalorder %s2715_s21, %s2066_s10 }
 0x3c5   : > { %p2068_p11 = pnand %p2067_p0, %p2825_p7 }
 0x3c7   : > { %p2069_p2 = pneg %p2068_p11 }
 0x412   : > { %v851_v8 = vpop.xlane.xlu1 %850 }
 0x413   : > { %v852_v9 = vsub.f32 %v848_v49, %v851_v8 }
 0x415   : > { %v853_v10 = vmul.f32 1.442695, %v852_v9 }
 0x417   : > { %1766 = vpow2.f32 %v853_v10 }
 0x41a   : > { %v969_v11 = vpop.xlane.xlu0 %968 }
 0x41b   : > { %v970_v12 = vsub.f32 %v966_v56, %v969_v11  ;;  %v1763_v56 = vld [vmem:[#allocation14 + $0x8] sm:$0xff]  }
 0x41c   : > { %1591 = vmatpush3.bf16.msra.mxu0 %v1763_v56 }
 0x41d   : > { %v971_v13 = vmul.f32 1.442695, %v970_v12 }
 0x41f   : > { %1768 = vpow2.f32 %v971_v13 }
 0x421   : > { %v1767_v14 = vpop.eup %1766 }
 0x422   : > { %v1087_v15 = vpop.xlane.xlu0 %1086  ;;  %v855_v16 = vsel %vm684_vm2, %v1767_v14, 0.0 }
 0x423   : > { %v1088_v17 = vsub.f32 %v1084_v63, %v1087_v15  ;;  %856 = vadd.xlane.f32.xlu0 %v855_v16 }
 0x425   : > { %v1089_v19 = vmul.f32 1.442695, %v1088_v17 }
 0x427   : > { %1770 = vpow2.f32 %v1089_v19 }
 0x429   : > { %v1769_v20 = vpop.eup %1768 }
 0x42a   : > { %v973_v21 = vsel %vm684_vm2, %v1769_v20, 0.0 }
 0x42b   : > { %974 = vadd.xlane.f32.xlu1 %v973_v21 }
 0x431   : > { %v1771_v22 = vpop.eup %1770 }
 0x432   : > { %v1091_v23 = vsel %vm684_vm2, %v1771_v22, 0.0 }
 0x433   : > { %1092 = vadd.xlane.f32.xlu0 %v1091_v23 }
 0x43c   : > { %979 = vrot.lane.b32.xlu1 %v2646_v18, %s2192_s23  ;;  %s2070_s23 = sshll.u32 %s2198_s29, 4  ;;  %s2071_s23 = int_to_ptr.vmem [resolvable:$false] %s2070_s23 }
 0x43d   : > { %p2073_p10 = scmp.lt.s32.totalorder %s2715_s21, %s2071_s23 }
 0x43e   : > { %v741_v24 = vpop.xlane.xlu1 %740 }
 0x43f   : > { %1772 = vrcp.f32 %v741_v24 }
 0x440   : > { %1097 = vrot.lane.b32.xlu1 %v2646_v18, %s2193_s6  ;;  %s2072_s6 = scalar_lea.vmem %s2071_s23, 256 }
 0x441   : > { %p2074_p1 = scmp.lt.s32.totalorder %s2072_s6, %s2066_s10 }
 0x442   : > { %v747_v25 = vpop.permute.xlu1 %746 }
 0x443   : > { %v753_v26 = vsel %vm751_vm4, %v747_v25, 0  ;;  %p2075_p5 = por %p2074_p1, %p2073_p10 }
 0x444   : > { %1547 = vmatpush3.bf16.msra.mxu1 %v753_v26  ;;  %v1494_v26 = vld [vmem:[#allocation18] ss:$0 sm:$0xff] }
 0x445   : > { %1558 = vmatprep.subr.bf16.mxu1 %v2186_v0  ;;  %p2076_p8 = pnand %p2075_p5, %p2069_p2 }
 0x449   : > { %v1773_v27 = vpop.eup %1772  ;;  %861 = vrot.lane.b32.xlu0 %v2646_v18, %s2194_s3 }
 0x44a   : > { %v743_v28 = vmul.f32 %v1773_v27, %v1765_v5 }
 0x44c   : > { %v744_v29 = vpack.c.bf16 %v743_v28, %v743_v28 }
 0x44e   : > { %1549 = vmatmul.mubr.msk.bf16.vlgmr.msra.gmra.mrb[4].mxu1 %vm684_vm2, %v744_v29 }
 0x44f   : > { %1560 = vmatprep.mubr.msk.bf16.mxu1 %vm2187_vm0, %v2186_v0 }
 0x4b0   : > { %v857_v30 = vpop.xlane.xlu0 %856 }
 0x4b1   : > { %1774 = vrcp.f32 %v857_v30 }
 0x4b8   : > { %v975_v31 = vpop.xlane.xlu1 %974 }
 0x4b9   : > { %1776 = vrcp.f32 %v975_v31 }
 0x4bb   : > { %v1775_v32 = vpop.eup %1774 }
 0x4bc   : > { %v859_v34 = vmul.f32 %v1775_v32, %v1767_v14  ;;  %v980_v37 = vpop.permute.xlu1 %979 }
 0x4bd   : > { %v985_v39 = vsel %vm751_vm4, %v980_v37, 0 }
 0x4be   : > { %v860_v18 = vpack.c.bf16 %v859_v34, %v859_v34 }
 0x4c0   : > { %v1093_v33 = vpop.xlane.xlu0 %1092  ;;  %v1098_v41 = vpop.permute.xlu1 %1097 }
 0x4c1   : > { %1778 = vrcp.f32 %v1093_v33  ;;  %v1103_v44 = vsel %vm751_vm4, %v1098_v41, 0 }
 0x4c3   : > { %v1777_v38 = vpop.eup %1776 }
 0x4c4   : > { %v862_v35 = vpop.permute.xlu0 %861  ;;  %v977_v40 = vmul.f32 %v1777_v38, %v1769_v20 }
 0x4c5   : > { %v867_v36 = vsel %vm751_vm4, %v862_v35, 0 }
 0x4c6   : > { %1559 = vmatpush3.bf16.msra.mxu1 %v867_v36  ;;  %v978_v42 = vpack.c.bf16 %v977_v40, %v977_v40 }
 0x4c7   : > { %1570 = vmatprep.subr.bf16.mxu1 %v2186_v0 }
 0x4c9   : > { %1561 = vmatmul.mubr.msk.bf16.vlgmr.msra.gmra.mrb[8].mxu1 %vm684_vm2, %v860_v18 }
 0x4ca   : > { %1571 = vmatpush3.bf16.msra.mxu1 %v985_v39  ;;  %1572 = vmatprep.mubr.msk.bf16.mxu1 %vm2187_vm0, %v2186_v0 }
 0x4cb   : > { %1582 = vmatprep.subr.bf16.mxu1 %v2186_v0  ;;  %v1779_v43 = vpop.eup %1778 }
 0x4cc   : > { %v1095_v45 = vmul.f32 %v1779_v43, %v1771_v22 }
 0x4ce   : > { %v1096_v46 = vpack.c.bf16 %v1095_v45, %v1095_v45 }
 0x4d1   : > { %1573 = vmatmul.mubr.msk.bf16.vlgmr.msra.gmra.mrb[12].mxu1 %vm684_vm2, %v978_v42 }
 0x4d2   : > { %1583 = vmatpush3.bf16.msra.mxu1 %v1103_v44  ;;  %1584 = vmatprep.mubr.msk.bf16.mxu1 %vm2187_vm0, %v2186_v0 }
 0x4d9   : > { %1585 = vmatmul.mubr.msk.bf16.vlgmr.msra.gmra.mrb[16].mxu1 %vm684_vm2, %v1096_v46 }
 0x521   : > { %v789_v47 = vpop.f32.mrb[4].mxu1 }
 0x522   : > { %795 = vst.msk [vmem:[#allocation2] sm:$0xff] %vm684_vm2, %v789_v47  ;;  %v1550_v48 = vpop.f32.mrb[5].mxu1 }
 0x523   : > { %v792_v49 = vpop.f32.mrb[6].mxu1 }
 0x524   : > { %v1551_v50 = vpop.f32.mrb[7].mxu1 }
 0x59c   : > { %v903_v51 = vpop.f32.mrb[8].mxu1 }
 0x59d   : > { %910 = vrot.lane.b32.xlu0 %v903_v51, %s2195_s25  ;;  %v1562_v52 = vpop.f32.mrb[9].mxu1 }
 0x59e   : > { %v906_v53 = vpop.f32.mrb[10].mxu1 }
 0x59f   : > { %v1563_v54 = vpop.f32.mrb[11].mxu1 }
 0x5a4   : > { %v1021_v57 = vpop.f32.mrb[12].mxu1 }
 0x5a5   : > { %1028 = vrot.lane.b32.xlu1 %v1021_v57, %s2196_s27  ;;  %v1574_v58 = vpop.f32.mrb[13].mxu1 }
 0x5a6   : > { %v1024_v59 = vpop.f32.mrb[14].mxu1 }
 0x5a7   : > { %v1575_v60 = vpop.f32.mrb[15].mxu1 }
 0x5ac   : > { %v1139_v61 = vpop.f32.mrb[16].mxu1 }
 0x5ad   : > { %1146 = vrot.lane.b32.xlu0 %v1139_v61, %s2197_s30  ;;  %v1586_v62 = vpop.f32.mrb[17].mxu1 }
 0x5ae   : > { %v1142_v63 = vpop.f32.mrb[18].mxu1 }
 0x5af   : > { %v1587_v1 = vpop.f32.mrb[19].mxu1 }
 0x60f   : > { %v911_v2 = vpop.permute.xlu0 %910 }
 0x610   : > { %914 = vst.msk [vmem:[#allocation2] sm:$0xff] %vm913_vm5, %v911_v2 }
 0x617   : > { %v1029_v3 = vpop.permute.xlu1 %1028 }
 0x618   : > { %1032 = vst.msk [vmem:[#allocation2] sm:$0xff] %vm1031_vm6, %v1029_v3 }
 0x61f   : > { %v1147_v0 = vpop.permute.xlu0 %1146 }
 0x620   : > { %1150 = vst.msk [vmem:[#allocation2] sm:$0xff] %vm1149_vm7, %v1147_v0 }
 0x627   : > { %v1151_v4 = vld [vmem:[#allocation2] sm:$0xff] }
 0x628   : > { %v1152_v5 = vpack.c.bf16 %v1151_v4, %v1151_v4 }
 0x62a   : > { %1593 = vmatmul.mubr.msk.bf16.vlgmr.msra.gmra.mrb[20].mxu0 %vm562_vm1, %v1152_v5 }
 0x6fd   : > { %v1213_v8 = vpop.f32.mrb[20].mxu0 }
 0x6fe   : > { %v1214_v9 = vadd.f32 %v1489_v7, %v1213_v8  ;;  %v1594_v10 = vpop.f32.mrb[21].mxu0 }
 0x6ff   : > { %v1216_v11 = vpop.f32.mrb[22].mxu0 }
 0x700   : > { %v1595_v12 = vpop.f32.mrb[23].mxu0  ;;  %v1219_v13 = vadd.f32 %v1214_v9, %v2634_v6  ;;  %v1493_v6 = vld [vmem:[#allocation17] ss:$0 sm:$0xff] }
 0x702   : > { %v1222_v14 = vsel %vm562_vm1, %v1219_v13, 0.0 }
 0x703   : > { %1223 = vadd.xlane.f32.xlu1 %v1222_v14 }
 0x790   : > { %v1224_v15 = vpop.xlane.xlu1 %1223 }
 0x791   : > { %v1226_v16 = vmul.f32 0.03125, %v1224_v15 }
 0x793   : > { %v1227_v17 = vsub.f32 %v1219_v13, %v1226_v16 }
 0x795   : > { %v1228_v19 = vmul.f32 %v1227_v17, %v1227_v17 }
 0x797   : > { %v1229_v20 = vsel %vm562_vm1, %v1228_v19, 0.0 }
 0x798   : > { %1230 = vadd.xlane.f32.xlu0 %v1229_v20 }
 0x825   : > { %v1231_v21 = vpop.xlane.xlu0 %1230 }
 0x826   : > { %v1232_v22 = vmul.f32 0.03125, %v1231_v21 }
 0x828   : > { %v1233_v23 = vadd.f32 1e-05, %v1232_v22 }
 0x82a   : > { %1780 = vrsqrt.f32 %v1233_v23 }
 0x834   : > { %v1781_v24 = vpop.eup %1780 }
 0x835   : > { %v1235_v25 = vmul.f32 %v1781_v24, %v1227_v17 }
 0x837   : > { %v1242_v27 = vmul.f32 %v1493_v6, %v1235_v25 }
 0x839   : > { %v1249_v28 = vadd.f32 %v1494_v26, %v1242_v27 }
 0x83b   : > { %1250 = vst.msk [vmem:[%s534_s22] sm:$0xff] %vm562_vm1, %v1249_v28 }
 0x83c   : > { %2079 = shalt.err (!%p2076_p8)
}
 0x83d   : > { %s2080_s5 = scalar_lea.hbm %s2713_s2, 128  ;;  %s2084_s27 = scalar_lea.hbm %s2824_s19, 256 }
 0x83e   : > { %p2081_p3 = scmp.ne.s32.totalorder %s2713_s2, %s2080_s5  ;;  %p2085_p13 = scmp.lt.u32.totalorder %s2713_s2, %s2824_s19 }
 0x83f   : > { %p2086_p4 = scmp.lt.u32.totalorder %s2084_s27, %s2080_s5  ;;  %p2088_p0 = scmp.lt.u32.totalorder %s2080_s5, %s2713_s2 }
 0x840   : > { %p2082_p12 = pnand %p2081_p3, %p2825_p7 }
 0x841   : > { %p2087_p9 = por %p2086_p4, %p2085_p13 }
 0x842   : > { %p2083_p6 = pneg %p2082_p12 }
 0x843   : > { %p2089_p11 = por %p2088_p0, %p2087_p9 }
 0x845   : > { %p2090_p2 = pnand %p2089_p11, %p2083_p6 }
 0x847   : > { %2093 = shalt.err (!%p2090_p2)
}
 0x848   : > { %1632 = dma.vmem_to_hbm [thread:$0]  (%p2825_p7), %s2715_s21, 128, %s2713_s2, %s1252_s24  }
 0x849 PF: > { %s1278_s16 = sand.u32 1, %s2152_s13   ;;  %p2826_p10 = scmp.ne.s32.totalorder %s2807_s26, 0 }
 0x84a   : > { %p2827_p1 = scmp.ge.s32.totalorder %s2172_s18, 2  ;;  %s1279_s22 = scalar_lea.sflag [#allocation5], %s1278_s16 }
 0x84c   : > { %p1667_p5 = pnand %p2827_p1, %p2826_p10 }
 0x84e   : > { %2147 = dma.done.wait (!%p1667_p5), %s1279_s22, 128  }
 0x84f   : > { %2149 = vsyncadd (!%p1667_p5), %s1279_s22, 4294967168  ;;  %s33_s18 = sadd.s32 1, %s2172_s18   ;;  %s2828_s13 = smov %s2156_s14 }
 0x850   : > { %p30_p8 = scmp.ge.s32.totalorder %s33_s18, 4   ;;  %s2829_s14 = smov %s2160_s15 }
 0x851   : > { %s2830_s15 = smov %s2508_s12  ;;  %s2831_s16 = smov %s2168_s17 }
 0x852   : > { %s2832_s17 = smov %s2834_s11  ;;  %32 = sbr.rel (!%p30_p8) target bundleno = 21 (0x15), region = 150 }
 0x859   :  { %1284 = vsyncpa [#allocation4], 1 }
 0x85a   :  { %1286 = vsyncpa [#allocation4 + $0x1], 1 }
 0x85b   :  { %1287 = vsyncpa [#allocation7], 1 }
 0x85c   :  { %1289 = vsyncpa [#allocation7 + $0x1], 1 }
 0x85d   :  { %1290 = vsyncpa [#allocation10], 1 }
 0x85e   :  { %1291 = vsyncpa [#allocation13], 1 }
 0x85f   :  { %1292 = vsyncpa [#allocation16], 1 }
 0x860   :  { %1293 = vsyncpa [#allocation19], 1 }
 0x861   :  { %1294 = vsyncpa [#allocation5], 1 }
 0x862   :  { %1296 = vsyncpa [#allocation5 + $0x1], 1 }

</bundles_post_ra>
